<compile_context>
chip_gen: v6e
topology: v6e:2x2x1
jax: 0.10.0
libtpu: 0.0.40
codegen_flags: <defaults>
</compile_context>

<pallas_src>
import functools
import numpy as np
import jax
import jax.numpy as jnp
from jax.experimental import pallas as pl
from jax.experimental.pallas import tpu as pltpu

EPS = 1e-5  # PyTorch nn.LayerNorm default


def _round_up(x, m):
    return (x + m - 1) // m * m


def _cdiv(a, b):
    return (a + b - 1) // b


def _layernorm(x, gamma, beta):
    mu = jnp.mean(x, axis=-1, keepdims=True)
    var = jnp.mean((x - mu) ** 2, axis=-1, keepdims=True)
    return (x - mu) * jax.lax.rsqrt(var + EPS) * gamma + beta


# ---------------------------------------------------------------------------
# Per-generation tiling / VMEM defaults (v7x has 64 MiB VMEM + 2 TCs/chip,
# v5e/v6e have 128 MiB; defaults picked from measured roofline data).
# ---------------------------------------------------------------------------
def _hw_defaults():
    try:
        kind = jax.devices()[0].device_kind.lower()
    except Exception:
        kind = ""
    if "v7" in kind:
        return dict(row_cap=256, row_tile=256, hid_tile=1024, vmem=48 * 1024 * 1024)
    if "v5 lite" in kind or "v5e" in kind or "v5litepod" in kind:
        return dict(row_cap=512, row_tile=512, hid_tile=2048, vmem=64 * 1024 * 1024)
    # v6e / default
    return dict(row_cap=512, row_tile=512, hid_tile=2048, vmem=64 * 1024 * 1024)


def _pick_row_tile(M, row_tile):
    TM = min(row_tile, _round_up(M, 8))
    # prefer >=2 grid steps so the (parallel) row axis can shard across the two
    # TensorCores on v7x instead of serializing on one.
    if M <= TM and M > 16:
        TM = _round_up(_cdiv(M, 2), 8)
    return TM


# ---------------------------------------------------------------------------
# Host-side parameter prep: fold the attention scale into the q slice of the
# qkv projection, cast matmul weights to bf16 (f32 accumulation in-kernel),
# reshape biases / norm params to (1, ...) rows.
# ---------------------------------------------------------------------------
def prepare_swin_params(params, num_heads, *, compute_dtype=jnp.bfloat16):
    C = params['qkv_w'].shape[0]
    Hd = params['fc1_w'].shape[1]
    head_dim = C // num_heads
    scale = head_dim ** (-0.5)
    q_scale = jnp.concatenate([jnp.full((C,), scale, jnp.float32),
                               jnp.ones((2 * C,), jnp.float32)])
    return {
        'rel_bias': params['rel_bias'].astype(jnp.float32),
        'norm1_g': params['norm1_g'].reshape(1, C).astype(jnp.float32),
        'norm1_b': params['norm1_b'].reshape(1, C).astype(jnp.float32),
        'norm2_g': params['norm2_g'].reshape(1, C).astype(jnp.float32),
        'norm2_b': params['norm2_b'].reshape(1, C).astype(jnp.float32),
        'qkv_w': (params['qkv_w'] * q_scale[None, :]).astype(compute_dtype),
        'qkv_b': (params['qkv_b'] * q_scale).reshape(1, 3 * C).astype(jnp.float32),
        'proj_w': params['proj_w'].astype(compute_dtype),
        'proj_b': params['proj_b'].reshape(1, C).astype(jnp.float32),
        'fc1_w': params['fc1_w'].astype(compute_dtype),
        'fc1_b': params['fc1_b'].reshape(1, Hd).astype(jnp.float32),
        'fc2_w': params['fc2_w'].astype(compute_dtype),
        'fc2_b': params['fc2_b'].reshape(1, C).astype(jnp.float32),
    }


# ---------------------------------------------------------------------------
# Kernel 1: row-tiled LayerNorm (norm1) — only used on the padding path where
#           the normalization must happen before zero padding.
# ---------------------------------------------------------------------------
def _ln_kernel(x_ref, g_ref, b_ref, o_ref):
    x = x_ref[...].astype(jnp.float32)
    o_ref[...] = _layernorm(x, g_ref[...], b_ref[...]).astype(o_ref.dtype)


def layernorm_pallas(x2d, gamma, beta, *, row_tile, vmem_limit):
    M, C = x2d.shape
    TM = _pick_row_tile(M, row_tile)
    Mp = _round_up(M, TM)
    xp = jnp.pad(x2d, ((0, Mp - M), (0, 0))) if Mp != M else x2d
    out = pl.pallas_call(
        _ln_kernel,
        out_shape=jax.ShapeDtypeStruct((Mp, C), x2d.dtype),
        grid=(Mp // TM,),
        in_specs=[pl.BlockSpec((TM, C), lambda i: (i, 0)),
                  pl.BlockSpec((1, C), lambda i: (0, 0)),
                  pl.BlockSpec((1, C), lambda i: (0, 0))],
        out_specs=pl.BlockSpec((TM, C), lambda i: (i, 0)),
        compiler_params=pltpu.CompilerParams(
            dimension_semantics=("parallel",), vmem_limit_bytes=vmem_limit),
        cost_estimate=pl.CostEstimate(flops=10 * Mp * C, transcendentals=0,
                                      bytes_accessed=2 * Mp * C * 4),
    )(xp, gamma.reshape(1, C), beta.reshape(1, C))
    return out[:M] if Mp != M else out


# ---------------------------------------------------------------------------
# Kernel 2: window multi-head self-attention, WB windows per grid step,
#           optional fused norm1, optional shift mask (compile-time flags).
# ---------------------------------------------------------------------------
def _attn_body(x_ref, rel_ref, mask_ref, g1_ref, b1_ref, qkvw_ref, qkvb_ref,
               pw_ref, pb_ref, o_ref, *, num_heads, head_dim, wb, mask_rep,
               fuse_ln, compute_dtype):
    N = x_ref.shape[1]
    C = x_ref.shape[2]
    T = wb * N                                        # tokens in this window block

    x = x_ref[...].astype(jnp.float32)                # (WB, N, C)
    if fuse_ln:
        # norm1 fused here: LayerNorm is per-token, so it commutes with the
        # roll / window-partition glue when there is no zero padding.
        x = _layernorm(x, g1_ref[...], b1_ref[...])   # f32 statistics
    xf = x.reshape(T, C).astype(compute_dtype)        # bf16 rows -> MXU

    # fused qkv projection; attention scale is pre-folded into the q weights.
    qkv = jnp.dot(xf, qkvw_ref[...],
                  preferred_element_type=jnp.float32) + qkvb_ref[...]   # (T, 3C) f32

    # head split with pure lane slices (no per-head XLU transposes).
    def split(comp):
        cols = [qkv[:, comp * C + h * head_dim: comp * C + (h + 1) * head_dim]
                for h in range(num_heads)]            # each (T, hd)
        return jnp.stack(cols, axis=0).reshape(num_heads * wb, N, head_dim)

    q = split(0).astype(compute_dtype)
    k = split(1).astype(compute_dtype)
    v = split(2).astype(compute_dtype)

    # scores for all (head, window) pairs in one batched matmul (f32 accum)
    s = jnp.einsum('bqd,bkd->bqk', q, k,
                   preferred_element_type=jnp.float32)          # (nH*WB, N, N)

    # rel-pos bias (+ shift mask) added by broadcasting onto s — no explicit
    # (nH, WB, N, N) bias temporary is materialized.
    s = s.reshape(num_heads, wb, N, N) + rel_ref[...][:, None, :, :]
    if mask_ref is not None:
        m = mask_ref[...]                              # (mB, N, N)
        if mask_rep > 1:
            m = jnp.broadcast_to(m[None], (mask_rep,) + m.shape).reshape(wb, N, N)
        s = s + m[None, :, :, :]
    s = s.reshape(num_heads * wb, N, N)

    # softmax in f32 (approx reciprocal -> EUP slot)
    s = s - jnp.max(s, axis=-1, keepdims=True)
    p = jnp.exp(s)
    p = p * pl.reciprocal(jnp.sum(p, axis=-1, keepdims=True), approx=True)

    o = jnp.einsum('bqk,bkd->bqd', p.astype(compute_dtype), v,
                   preferred_element_type=jnp.float32)          # (nH*WB, N, hd)

    # merge heads back to channels-last with a single lane-axis concatenation
    o = o.reshape(num_heads, T, head_dim)
    of = jnp.concatenate([o[h] for h in range(num_heads)], axis=-1)      # (T, C)

    out = jnp.dot(of.astype(compute_dtype), pw_ref[...],
                  preferred_element_type=jnp.float32) + pb_ref[...]
    o_ref[...] = out.reshape(wb, N, C).astype(o_ref.dtype)


def _pick_window_block(B_, mW, N, row_cap):
    """Pick how many windows (WB) to process per grid step and the padded
    window count.  WB must be compatible with the mask period mW (multiple or
    divisor) so the mask BlockSpec can address it."""
    max_wb = max(1, row_cap // max(N, 1))
    cands = [w for w in range(1, max_wb + 1) if (w % mW == 0) or (mW % w == 0)]

    def key(w):
        padded = _cdiv(B_, w) * w
        pad = padded - B_
        steps = padded // w
        rows = w * N
        # prefer: MXU-friendly row count with limited padding waste, then no
        # padding at all, then >=2 grid steps (v7x megacore), then bigger tiles.
        return (rows >= 128 and pad * 4 <= B_, pad == 0, steps >= 2, rows)

    wb = max(cands, key=key)
    return wb, _cdiv(B_, wb) * wb


def window_attention_pallas(xw, mask, params, num_heads, *, fuse_ln, row_cap,
                            vmem_limit, compute_dtype=jnp.bfloat16):
    B_, N, C = xw.shape
    head_dim = C // num_heads
    has_mask = mask is not None
    mW = int(mask.shape[0]) if has_mask else 1

    WB, Bp = _pick_window_block(B_, mW, N, row_cap)
    if Bp != B_:                        # pad window batch instead of shrinking WB to 1
        xw = jnp.pad(xw, ((0, Bp - B_), (0, 0), (0, 0)))

    in_specs = [
        pl.BlockSpec((WB, N, C), lambda i: (i, 0, 0)),            # window tokens
        pl.BlockSpec((num_heads, N, N), lambda i: (0, 0, 0)),     # rel-pos bias (shared)
    ]
    args = [xw, params['rel_bias']]

    mask_rep = 1
    if has_mask:
        if WB % mW == 0:
            mask_rep = WB // mW
            in_specs.append(pl.BlockSpec((mW, N, N), lambda i: (0, 0, 0)))
        else:                                                     # mW % WB == 0
            r = mW // WB
            in_specs.append(pl.BlockSpec((WB, N, N), lambda i: (i % r, 0, 0)))
        args.append(mask)

    in_specs += [
        pl.BlockSpec((1, C), lambda i: (0, 0)),                   # norm1 gamma
        pl.BlockSpec((1, C), lambda i: (0, 0)),                   # norm1 beta
        pl.BlockSpec((C, 3 * C), lambda i: (0, 0)),               # qkv weight (bf16, q pre-scaled)
        pl.BlockSpec((1, 3 * C), lambda i: (0, 0)),               # qkv bias (f32, q pre-scaled)
        pl.BlockSpec((C, C), lambda i: (0, 0)),                   # proj weight (bf16)
        pl.BlockSpec((1, C), lambda i: (0, 0)),                   # proj bias
    ]
    args += [params['norm1_g'], params['norm1_b'],
             params['qkv_w'], params['qkv_b'], params['proj_w'], params['proj_b']]

    def kernel(*refs):
        if has_mask:
            (x_ref, rel_ref, mask_ref, g1_ref, b1_ref,
             qkvw_ref, qkvb_ref, pw_ref, pb_ref, o_ref) = refs
        else:
            (x_ref, rel_ref, g1_ref, b1_ref,
             qkvw_ref, qkvb_ref, pw_ref, pb_ref, o_ref) = refs
            mask_ref = None
        _attn_body(x_ref, rel_ref, mask_ref, g1_ref, b1_ref, qkvw_ref, qkvb_ref,
                   pw_ref, pb_ref, o_ref, num_heads=num_heads, head_dim=head_dim,
                   wb=WB, mask_rep=mask_rep, fuse_ln=fuse_ln,
                   compute_dtype=compute_dtype)

    flops = int(Bp) * (6 * N * C * C + 4 * num_heads * N * N * head_dim + 2 * N * C * C)
    cost = pl.CostEstimate(
        flops=flops,
        transcendentals=int(Bp) * num_heads * N * N,
        bytes_accessed=int(Bp) * N * C * 4 * 2 + 8 * C * C + num_heads * N * N * 4)

    out = pl.pallas_call(
        kernel,
        out_shape=jax.ShapeDtypeStruct((Bp, N, C), xw.dtype),
        grid=(Bp // WB,),
        in_specs=in_specs,
        out_specs=pl.BlockSpec((WB, N, C), lambda i: (i, 0, 0)),
        compiler_params=pltpu.CompilerParams(
            dimension_semantics=("parallel",), vmem_limit_bytes=vmem_limit),
        cost_estimate=cost,
    )(*args)
    return out[:B_] if Bp != B_ else out


# ---------------------------------------------------------------------------
# Kernel 3: fused (shortcut + attn) -> norm2 -> MLP(GELU) -> residual.
#           Rows are tiled on a "parallel" axis; the MLP hidden dim is tiled on
#           a trailing "arbitrary" axis with an f32 VMEM accumulator so fc1/fc2
#           weight blocks stay small enough for v7x's 64 MiB VMEM.
# ---------------------------------------------------------------------------
def _mlp_block_kernel(sc_ref, a_ref, g_ref, b_ref, w1_ref, b1_ref, w2_ref, b2_ref,
                      o_ref, x_sc, y_sc, acc_sc, *, approx_gelu, compute_dtype):
    k = pl.program_id(1)

    @pl.when(k == 0)
    def _():
        x = sc_ref[...].astype(jnp.float32) + a_ref[...].astype(jnp.float32)  # residual 1
        x_sc[...] = x
        y_sc[...] = _layernorm(x, g_ref[...], b_ref[...]).astype(y_sc.dtype)
        acc_sc[...] = jnp.zeros_like(acc_sc)

    h = jnp.dot(y_sc[...], w1_ref[...], preferred_element_type=jnp.float32) + b1_ref[...]
    h = jax.nn.gelu(h, approximate=approx_gelu)       # exact erf GELU by default
    acc_sc[...] += jnp.dot(h.astype(compute_dtype), w2_ref[...],
                           preferred_element_type=jnp.float32)

    @pl.when(k == pl.num_programs(1) - 1)
    def _():
        o_ref[...] = (x_sc[...] + acc_sc[...] + b2_ref[...]).astype(o_ref.dtype)


def mlp_block_pallas(shortcut2d, attn2d, params, *, row_tile, hid_tile, vmem_limit,
                     compute_dtype=jnp.bfloat16, approx_gelu=False):
    M, C = shortcut2d.shape
    Hd = params['fc1_w'].shape[1]

    TM = _pick_row_tile(M, row_tile)
    Mp = _round_up(M, TM)
    if Mp != M:
        pad = ((0, Mp - M), (0, 0))
        shortcut2d = jnp.pad(shortcut2d, pad)
        attn2d = jnp.pad(attn2d, pad)

    THd = min(_round_up(Hd, 128), _round_up(hid_tile, 128))
    Hdp = _round_up(Hd, THd)
    fc1_w, fc1_b, fc2_w = params['fc1_w'], params['fc1_b'], params['fc2_w']
    if Hdp != Hd:   # zero-pad hidden dim: gelu(0) == 0, so the result is exact
        fc1_w = jnp.pad(fc1_w, ((0, 0), (0, Hdp - Hd)))
        fc1_b = jnp.pad(fc1_b, ((0, 0), (0, Hdp - Hd)))
        fc2_w = jnp.pad(fc2_w, ((0, Hdp - Hd), (0, 0)))
    Kt = Hdp // THd

    kernel = functools.partial(_mlp_block_kernel, approx_gelu=approx_gelu,
                               compute_dtype=compute_dtype)
    cost = pl.CostEstimate(flops=4 * Mp * C * Hdp, transcendentals=Mp * Hdp,
                           bytes_accessed=3 * Mp * C * 4 + 4 * C * Hdp)

    out = pl.pallas_call(
        kernel,
        out_shape=jax.ShapeDtypeStruct((Mp, C), shortcut2d.dtype),
        grid=(Mp // TM, Kt),
        in_specs=[pl.BlockSpec((TM, C), lambda i, k: (i, 0)),      # shortcut
                  pl.BlockSpec((TM, C), lambda i, k: (i, 0)),      # attention output
                  pl.BlockSpec((1, C), lambda i, k: (0, 0)),       # norm2 gamma
                  pl.BlockSpec((1, C), lambda i, k: (0, 0)),       # norm2 beta
                  pl.BlockSpec((C, THd), lambda i, k: (0, k)),     # fc1 weight tile (bf16)
                  pl.BlockSpec((1, THd), lambda i, k: (0, k)),     # fc1 bias tile
                  pl.BlockSpec((THd, C), lambda i, k: (k, 0)),     # fc2 weight tile (bf16)
                  pl.BlockSpec((1, C), lambda i, k: (0, 0))],      # fc2 bias
        out_specs=pl.BlockSpec((TM, C), lambda i, k: (i, 0)),
        scratch_shapes=[pltpu.VMEM((TM, C), jnp.float32),          # residual x
                        pltpu.VMEM((TM, C), compute_dtype),        # norm2(x) in bf16
                        pltpu.VMEM((TM, C), jnp.float32)],         # fc2 accumulator
        compiler_params=pltpu.CompilerParams(
            dimension_semantics=("parallel", "arbitrary"),
            vmem_limit_bytes=vmem_limit),
        cost_estimate=cost,
    )(shortcut2d, attn2d,
      params['norm2_g'], params['norm2_b'],
      fc1_w, fc1_b, fc2_w, params['fc2_b'])
    return out[:M] if Mp != M else out


# ---------------------------------------------------------------------------
# Glue: window partition / reverse, shift mask, relative-position index
# ---------------------------------------------------------------------------
def window_partition_jax(x, ws):
    B, H, W, C = x.shape
    x = x.reshape(B, H // ws, ws, W // ws, ws, C)
    return x.transpose(0, 1, 3, 2, 4, 5).reshape(-1, ws, ws, C)


def window_reverse_jax(windows, ws, H, W):
    B = windows.shape[0] // (H * W // ws // ws)
    x = windows.reshape(B, H // ws, W // ws, ws, ws, -1)
    return x.transpose(0, 1, 3, 2, 4, 5).reshape(B, H, W, -1)


def relative_position_index_np(ws):
    coords = np.stack(np.meshgrid(np.arange(ws), np.arange(ws), indexing='ij'))
    coords_flat = coords.reshape(2, -1)
    rel = coords_flat[:, :, None] - coords_flat[:, None, :]
    rel = rel.transpose(1, 2, 0).astype(np.int64)
    rel[:, :, 0] += ws - 1
    rel[:, :, 1] += ws - 1
    rel[:, :, 0] *= 2 * ws - 1
    return rel.sum(-1)                                                   # (N, N)


def create_attn_mask_np(Hp, Wp, ws, shift):
    img_mask = np.zeros((1, Hp, Wp, 1), np.float32)
    h_slices = (slice(0, -ws), slice(-ws, -shift), slice(-shift, None))
    w_slices = (slice(0, -ws), slice(-ws, -shift), slice(-shift, None))
    cnt = 0
    for hs in h_slices:
        for wsl in w_slices:
            img_mask[:, hs, wsl, :] = cnt
            cnt += 1
    m = img_mask.reshape(1, Hp // ws, ws, Wp // ws, ws, 1)
    m = m.transpose(0, 1, 3, 2, 4, 5).reshape(-1, ws * ws)
    attn_mask = m[:, None, :] - m[:, :, None]
    return np.where(attn_mask != 0, -100.0, 0.0).astype(np.float32)      # (nW, N, N)


# ---------------------------------------------------------------------------
# Full SwinTransformerBlock forward (eval mode: dropout / drop_path identity)
# ---------------------------------------------------------------------------
def swin_block_pallas(x, attn_mask, params, *, H, W, ws, shift, num_heads,
                      compute_dtype=jnp.bfloat16, approx_gelu=False,
                      mlp_hidden_tile=None):
    B, L, C = x.shape
    assert L == H * W
    hw = _hw_defaults()
    vmem_limit = hw['vmem']
    hid_tile = mlp_hidden_tile if mlp_hidden_tile is not None else hw['hid_tile']

    p = prepare_swin_params(params, num_heads, compute_dtype=compute_dtype)

    shortcut = x
    pad_r = (ws - W % ws) % ws
    pad_b = (ws - H % ws) % ws
    fuse_ln = (pad_r == 0 and pad_b == 0)

    if fuse_ln:
        xi = x.reshape(B, H, W, C)                  # norm1 fused in attention kernel
    else:
        # LayerNorm must happen before zero padding so padded tokens stay zero.
        xn = layernorm_pallas(x.reshape(B * L, C), params['norm1_g'], params['norm1_b'],
                              row_tile=hw['row_tile'], vmem_limit=vmem_limit)
        xi = jnp.pad(xn.reshape(B, H, W, C), ((0, 0), (0, pad_b), (0, pad_r), (0, 0)))
    Hp, Wp = H + pad_b, W + pad_r

    shifted = jnp.roll(xi, (-shift, -shift), axis=(1, 2)) if shift > 0 else xi

    N = ws * ws
    x_windows = window_partition_jax(shifted, ws).reshape(-1, N, C)

    # maskless kernel variant for unshifted blocks (no mask DMA / add at all)
    mask = attn_mask.astype(jnp.float32) if shift > 0 else None

    attn_windows = window_attention_pallas(
        x_windows, mask, p, num_heads, fuse_ln=fuse_ln,
        row_cap=hw['row_cap'], vmem_limit=vmem_limit, compute_dtype=compute_dtype)

    shifted_out = window_reverse_jax(attn_windows.reshape(-1, ws, ws, C), ws, Hp, Wp)
    xo = jnp.roll(shifted_out, (shift, shift), axis=(1, 2)) if shift > 0 else shifted_out
    if pad_r > 0 or pad_b > 0:
        xo = xo[:, :H, :W, :]
    xo = xo.reshape(B * L, C)

    out = mlp_block_pallas(shortcut.reshape(B * L, C), xo, p,
                           row_tile=hw['row_tile'], hid_tile=hid_tile,
                           vmem_limit=vmem_limit, compute_dtype=compute_dtype,
                           approx_gelu=approx_gelu)
    return out.reshape(B, L, C)


# --------------------------- pure-JAX reference ----------------------------
def swin_block_ref(x, attn_mask, params, *, H, W, ws, shift, num_heads):
    B, L, C = x.shape
    shortcut = x
    xn = _layernorm(x, params['norm1_g'], params['norm1_b']).reshape(B, H, W, C)
    pad_r = (ws - W % ws) % ws
    pad_b = (ws - H % ws) % ws
    if pad_r or pad_b:
        xn = jnp.pad(xn, ((0, 0), (0, pad_b), (0, pad_r), (0, 0)))
    Hp, Wp = H + pad_b, W + pad_r
    if shift > 0:
        shifted = jnp.roll(xn, (-shift, -shift), axis=(1, 2))
        mask = attn_mask
    else:
        shifted = xn
        mask = None
    N = ws * ws
    xw = window_partition_jax(shifted, ws).reshape(-1, N, C)
    B_ = xw.shape[0]
    nW = (Hp // ws) * (Wp // ws)
    hd = C // num_heads
    scale = hd ** (-0.5)
    qkv = xw @ params['qkv_w'] + params['qkv_b']
    qkv = qkv.reshape(B_, N, 3, num_heads, hd).transpose(2, 0, 3, 1, 4)
    q, k, v = qkv[0] * scale, qkv[1], qkv[2]
    attn = jnp.einsum('bhnd,bhmd->bhnm', q, k) + params['rel_bias'][None]
    if mask is not None:
        attn = attn.reshape(B_ // nW, nW, num_heads, N, N) + mask[None, :, None]
        attn = attn.reshape(B_, num_heads, N, N)
    attn = jax.nn.softmax(attn, axis=-1)
    out = jnp.einsum('bhnm,bhmd->bhnd', attn, v).transpose(0, 2, 1, 3).reshape(B_, N, C)
    out = out @ params['proj_w'] + params['proj_b']
    out = window_reverse_jax(out.reshape(-1, ws, ws, C), ws, Hp, Wp)
    if shift > 0:
        out = jnp.roll(out, (shift, shift), axis=(1, 2))
    out = out[:, :H, :W, :].reshape(B, L, C)
    x1 = shortcut + out
    y = _layernorm(x1, params['norm2_g'], params['norm2_b'])
    h = jax.nn.gelu(y @ params['fc1_w'] + params['fc1_b'], approximate=False)
    return x1 + h @ params['fc2_w'] + params['fc2_b']


def _make_params(key, dim, num_heads, ws, mlp_ratio=4.0):
    hidden = int(dim * mlp_ratio)
    N = ws * ws
    ks = jax.random.split(key, 9)
    p = {
        'norm1_g': jnp.ones((dim,), jnp.float32),
        'norm1_b': jnp.zeros((dim,), jnp.float32),
        'norm2_g': jnp.ones((dim,), jnp.float32),
        'norm2_b': jnp.zeros((dim,), jnp.float32),
        'qkv_w': jax.random.normal(ks[0], (dim, 3 * dim), jnp.float32) * 0.02,
        'qkv_b': jax.random.normal(ks[1], (3 * dim,), jnp.float32) * 0.02,
        'proj_w': jax.random.normal(ks[2], (dim, dim), jnp.float32) * 0.02,
        'proj_b': jax.random.normal(ks[3], (dim,), jnp.float32) * 0.02,
        'fc1_w': jax.random.normal(ks[4], (dim, hidden), jnp.float32) * 0.02,
        'fc1_b': jax.random.normal(ks[5], (hidden,), jnp.float32) * 0.02,
        'fc2_w': jax.random.normal(ks[6], (hidden, dim), jnp.float32) * 0.02,
        'fc2_b': jax.random.normal(ks[7], (dim,), jnp.float32) * 0.02,
    }
    table = jax.random.normal(ks[8], ((2 * ws - 1) ** 2, num_heads), jnp.float32) * 0.02
    rpi = relative_position_index_np(ws)
    p['rel_bias'] = jnp.asarray(table)[rpi.reshape(-1)].reshape(N, N, num_heads).transpose(2, 0, 1)
    return p


# ---------------------------------------------------------------------------
if __name__ == "__main__":
    key = jax.random.PRNGKey(0)
    configs = [
        # (B, H, W, dim, heads, window, shift, mlp_hidden_tile)
        (2, 8, 8, 32, 4, 4, 2, None),    # shifted, fused norm1, mask_rep>1 path
        (2, 6, 6, 32, 4, 4, 0, None),    # padding path -> standalone LN, maskless
        (1, 16, 16, 64, 4, 4, 2, 128),   # shifted, mW % WB path, MLP hidden-dim K-tiling
    ]
    for idx, (B, H, W, dim, heads, ws, shift, hid_tile) in enumerate(configs):
        kp, kx, key = jax.random.split(key, 3)
        params = _make_params(kp, dim, heads, ws)
        x = jax.random.normal(kx, (B, H * W, dim), jnp.float32)
        Hp = H + (ws - H % ws) % ws
        Wp = W + (ws - W % ws) % ws
        attn_mask = (jnp.asarray(create_attn_mask_np(Hp, Wp, ws, shift))
                     if shift > 0 else None)

        out = swin_block_pallas(x, attn_mask, params, H=H, W=W, ws=ws,
                                shift=shift, num_heads=heads,
                                mlp_hidden_tile=hid_tile)
        out = jax.block_until_ready(out)
        ref = jax.block_until_ready(
            swin_block_ref(x, attn_mask, params, H=H, W=W, ws=ws,
                           shift=shift, num_heads=heads))

        assert out.shape == (B, H * W, dim)
        # bf16 matmul operands (f32 accumulation) + approx-reciprocal softmax
        # => looser tolerance than the pure-f32 reference.
        if not np.allclose(np.asarray(out), np.asarray(ref), atol=2e-2, rtol=2e-2):
            err = float(np.max(np.abs(np.asarray(out) - np.asarray(ref))))
            raise AssertionError(f"config {idx}: Pallas vs reference mismatch (max abs err {err})")
    print("KERNEL_OK")
</pallas_src>

<mosaic_0001>
module attributes {stable_mosaic.version = 11 : i64} {
  func.func @kernel(%arg0: i32, %arg1: memref<8x16x32xf32, #tpu.memory_space<vmem>>, %arg2: memref<4x16x16xf32, #tpu.memory_space<vmem>>, %arg3: memref<4x16x16xf32, #tpu.memory_space<vmem>>, %arg4: memref<1x32xf32, #tpu.memory_space<vmem>>, %arg5: memref<1x32xf32, #tpu.memory_space<vmem>>, %arg6: memref<32x96xbf16, #tpu.memory_space<vmem>>, %arg7: memref<1x96xf32, #tpu.memory_space<vmem>>, %arg8: memref<32x32xbf16, #tpu.memory_space<vmem>>, %arg9: memref<1x32xf32, #tpu.memory_space<vmem>>, %arg10: memref<8x16x32xf32, #tpu.memory_space<vmem>>) attributes {dimension_semantics = [#tpu.dimension_semantics<parallel>], iteration_bounds = array<i64: 1>, scalar_prefetch = 0 : i64, scratch_operands = 0 : i64, tpu.core_type = #tpu.core_type<tc>, window_params = [{transform_indices = @transform_0, window_bounds = array<i64: 8, 16, 32>}, {pipeline_mode = #tpu.pipeline_mode<synchronous>, transform_indices = @transform_1, window_bounds = array<i64: 4, 16, 16>}, {pipeline_mode = #tpu.pipeline_mode<synchronous>, transform_indices = @transform_2, window_bounds = array<i64: 4, 16, 16>}, {pipeline_mode = #tpu.pipeline_mode<synchronous>, transform_indices = @transform_3, window_bounds = array<i64: 1, 32>}, {pipeline_mode = #tpu.pipeline_mode<synchronous>, transform_indices = @transform_4, window_bounds = array<i64: 1, 32>}, {pipeline_mode = #tpu.pipeline_mode<synchronous>, transform_indices = @transform_5, window_bounds = array<i64: 32, 96>}, {pipeline_mode = #tpu.pipeline_mode<synchronous>, transform_indices = @transform_6, window_bounds = array<i64: 1, 96>}, {pipeline_mode = #tpu.pipeline_mode<synchronous>, transform_indices = @transform_7, window_bounds = array<i64: 32, 32>}, {pipeline_mode = #tpu.pipeline_mode<synchronous>, transform_indices = @transform_8, window_bounds = array<i64: 1, 32>}, {transform_indices = @transform_9, window_bounds = array<i64: 8, 16, 32>}]} {
    %c0 = arith.constant 0 : index
    %c0_0 = arith.constant 0 : index
    %c0_1 = arith.constant 0 : index
    %0 = vector.load %arg1[%c0, %c0_0, %c0_1] : memref<8x16x32xf32, #tpu.memory_space<vmem>>, vector<8x16x32xf32>
    %c0_2 = arith.constant 0 : index
    %c0_3 = arith.constant 0 : index
    %1 = vector.load %arg4[%c0_2, %c0_3] : memref<1x32xf32, #tpu.memory_space<vmem>>, vector<1x32xf32>
    %c0_4 = arith.constant 0 : index
    %c0_5 = arith.constant 0 : index
    %2 = vector.load %arg5[%c0_4, %c0_5] : memref<1x32xf32, #tpu.memory_space<vmem>>, vector<1x32xf32>
    %cst = arith.constant dense<0.000000e+00> : vector<8x16xf32>
    %3 = vector.multi_reduction <add>, %0, %cst [2] : vector<8x16x32xf32> to vector<8x16xf32>
    %4 = vector.shape_cast %3 : vector<8x16xf32> to vector<8x16x1xf32>
    %cst_6 = arith.constant 3.200000e+01 : f32
    %5 = vector.broadcast %cst_6 : f32 to vector<8x16x1xf32>
    %6 = arith.divf %4, %5 : vector<8x16x1xf32>
    %7 = vector.broadcast %6 : vector<8x16x1xf32> to vector<8x16x32xf32>
    %8 = arith.subf %0, %7 : vector<8x16x32xf32>
    %9 = arith.mulf %8, %8 : vector<8x16x32xf32>
    %cst_7 = arith.constant dense<0.000000e+00> : vector<8x16xf32>
    %10 = vector.multi_reduction <add>, %9, %cst_7 [2] : vector<8x16x32xf32> to vector<8x16xf32>
    %11 = vector.shape_cast %10 : vector<8x16xf32> to vector<8x16x1xf32>
    %cst_8 = arith.constant 3.200000e+01 : f32
    %12 = vector.broadcast %cst_8 : f32 to vector<8x16x1xf32>
    %13 = arith.divf %11, %12 : vector<8x16x1xf32>
    %14 = vector.broadcast %6 : vector<8x16x1xf32> to vector<8x16x32xf32>
    %15 = arith.subf %0, %14 : vector<8x16x32xf32>
    %cst_9 = arith.constant 9.99999974E-6 : f32
    %16 = vector.broadcast %cst_9 : f32 to vector<8x16x1xf32>
    %17 = arith.addf %13, %16 : vector<8x16x1xf32>
    %18 = math.rsqrt %17 : vector<8x16x1xf32>
    %19 = vector.broadcast %18 : vector<8x16x1xf32> to vector<8x16x32xf32>
    %20 = arith.mulf %15, %19 : vector<8x16x32xf32>
    %21 = vector.shape_cast %1 : vector<1x32xf32> to vector<1x1x32xf32>
    %22 = vector.broadcast %21 : vector<1x1x32xf32> to vector<8x16x32xf32>
    %23 = arith.mulf %20, %22 : vector<8x16x32xf32>
    %24 = vector.shape_cast %2 : vector<1x32xf32> to vector<1x1x32xf32>
    %25 = vector.broadcast %24 : vector<1x1x32xf32> to vector<8x16x32xf32>
    %26 = arith.addf %23, %25 : vector<8x16x32xf32>
    %27 = vector.shape_cast %26 : vector<8x16x32xf32> to vector<128x32xf32>
    %28 = arith.truncf %27 : vector<128x32xf32> to vector<128x32xbf16>
    %c0_10 = arith.constant 0 : index
    %c0_11 = arith.constant 0 : index
    %29 = vector.load %arg6[%c0_10, %c0_11] : memref<32x96xbf16, #tpu.memory_space<vmem>>, vector<32x96xbf16>
    %cst_12 = arith.constant dense<0.000000e+00> : vector<128x96xf32>
    %30 = tpu.matmul %28, %29, %cst_12 {dimension_numbers = #tpu.dot_dimension_numbers<[1], [0], [0], [1], [0, 0, 1, 1], [], []>} : vector<128x32xbf16>, vector<32x96xbf16>, vector<128x96xf32> -> vector<128x96xf32>
    %c0_13 = arith.constant 0 : index
    %c0_14 = arith.constant 0 : index
    %31 = vector.load %arg7[%c0_13, %c0_14] : memref<1x96xf32, #tpu.memory_space<vmem>>, vector<1x96xf32>
    %32 = vector.broadcast %31 : vector<1x96xf32> to vector<128x96xf32>
    %33 = arith.addf %30, %32 : vector<128x96xf32>
    %34 = vector.extract_strided_slice %33 {offsets = [0, 0], sizes = [128, 8], strides = [1, 1]} : vector<128x96xf32> to vector<128x8xf32>
    %35 = vector.extract_strided_slice %33 {offsets = [0, 8], sizes = [128, 8], strides = [1, 1]} : vector<128x96xf32> to vector<128x8xf32>
    %36 = vector.extract_strided_slice %33 {offsets = [0, 16], sizes = [128, 8], strides = [1, 1]} : vector<128x96xf32> to vector<128x8xf32>
    %37 = vector.extract_strided_slice %33 {offsets = [0, 24], sizes = [128, 8], strides = [1, 1]} : vector<128x96xf32> to vector<128x8xf32>
    %38 = vector.shape_cast %34 : vector<128x8xf32> to vector<1x128x8xf32>
    %39 = vector.shape_cast %35 : vector<128x8xf32> to vector<1x128x8xf32>
    %40 = vector.shape_cast %36 : vector<128x8xf32> to vector<1x128x8xf32>
    %41 = vector.shape_cast %37 : vector<128x8xf32> to vector<1x128x8xf32>
    %42 = tpu.concatenate %38, %39, %40, %41 in 0 : vector<1x128x8xf32>, vector<1x128x8xf32>, vector<1x128x8xf32>, vector<1x128x8xf32> -> vector<4x128x8xf32>
    %43 = vector.shape_cast %42 : vector<4x128x8xf32> to vector<32x16x8xf32>
    %44 = arith.truncf %43 : vector<32x16x8xf32> to vector<32x16x8xbf16>
    %45 = vector.extract_strided_slice %33 {offsets = [0, 32], sizes = [128, 8], strides = [1, 1]} : vector<128x96xf32> to vector<128x8xf32>
    %46 = vector.extract_strided_slice %33 {offsets = [0, 40], sizes = [128, 8], strides = [1, 1]} : vector<128x96xf32> to vector<128x8xf32>
    %47 = vector.extract_strided_slice %33 {offsets = [0, 48], sizes = [128, 8], strides = [1, 1]} : vector<128x96xf32> to vector<128x8xf32>
    %48 = vector.extract_strided_slice %33 {offsets = [0, 56], sizes = [128, 8], strides = [1, 1]} : vector<128x96xf32> to vector<128x8xf32>
    %49 = vector.shape_cast %45 : vector<128x8xf32> to vector<1x128x8xf32>
    %50 = vector.shape_cast %46 : vector<128x8xf32> to vector<1x128x8xf32>
    %51 = vector.shape_cast %47 : vector<128x8xf32> to vector<1x128x8xf32>
    %52 = vector.shape_cast %48 : vector<128x8xf32> to vector<1x128x8xf32>
    %53 = tpu.concatenate %49, %50, %51, %52 in 0 : vector<1x128x8xf32>, vector<1x128x8xf32>, vector<1x128x8xf32>, vector<1x128x8xf32> -> vector<4x128x8xf32>
    %54 = vector.shape_cast %53 : vector<4x128x8xf32> to vector<32x16x8xf32>
    %55 = arith.truncf %54 : vector<32x16x8xf32> to vector<32x16x8xbf16>
    %56 = vector.extract_strided_slice %33 {offsets = [0, 64], sizes = [128, 8], strides = [1, 1]} : vector<128x96xf32> to vector<128x8xf32>
    %57 = vector.extract_strided_slice %33 {offsets = [0, 72], sizes = [128, 8], strides = [1, 1]} : vector<128x96xf32> to vector<128x8xf32>
    %58 = vector.extract_strided_slice %33 {offsets = [0, 80], sizes = [128, 8], strides = [1, 1]} : vector<128x96xf32> to vector<128x8xf32>
    %59 = vector.extract_strided_slice %33 {offsets = [0, 88], sizes = [128, 8], strides = [1, 1]} : vector<128x96xf32> to vector<128x8xf32>
    %60 = vector.shape_cast %56 : vector<128x8xf32> to vector<1x128x8xf32>
    %61 = vector.shape_cast %57 : vector<128x8xf32> to vector<1x128x8xf32>
    %62 = vector.shape_cast %58 : vector<128x8xf32> to vector<1x128x8xf32>
    %63 = vector.shape_cast %59 : vector<128x8xf32> to vector<1x128x8xf32>
    %64 = tpu.concatenate %60, %61, %62, %63 in 0 : vector<1x128x8xf32>, vector<1x128x8xf32>, vector<1x128x8xf32>, vector<1x128x8xf32> -> vector<4x128x8xf32>
    %65 = vector.shape_cast %64 : vector<4x128x8xf32> to vector<32x16x8xf32>
    %66 = arith.truncf %65 : vector<32x16x8xf32> to vector<32x16x8xbf16>
    "tpu.trace_start"() <{level = 10 : i32, message = "bqd,bkd->bqk"}> : () -> ()
    %cst_15 = arith.constant dense<0.000000e+00> : vector<32x16x16xf32>
    %67 = tpu.matmul %44, %55, %cst_15 {dimension_numbers = #tpu.dot_dimension_numbers<[2], [2], [1], [1], [0, 0, 0, 1, 1, 1], [0], [0]>} : vector<32x16x8xbf16>, vector<32x16x8xbf16>, vector<32x16x16xf32> -> vector<32x16x16xf32>
    "tpu.trace_stop"() : () -> ()
    %68 = vector.shape_cast %67 : vector<32x16x16xf32> to vector<4x8x16x16xf32>
    %c0_16 = arith.constant 0 : index
    %c0_17 = arith.constant 0 : index
    %c0_18 = arith.constant 0 : index
    %69 = vector.load %arg2[%c0_16, %c0_17, %c0_18] : memref<4x16x16xf32, #tpu.memory_space<vmem>>, vector<4x16x16xf32>
    %70 = vector.shape_cast %69 : vector<4x16x16xf32> to vector<4x1x16x16xf32>
    %71 = vector.broadcast %70 : vector<4x1x16x16xf32> to vector<4x8x16x16xf32>
    %72 = arith.addf %68, %71 : vector<4x8x16x16xf32>
    %c0_19 = arith.constant 0 : index
    %c0_20 = arith.constant 0 : index
    %c0_21 = arith.constant 0 : index
    %73 = vector.load %arg3[%c0_19, %c0_20, %c0_21] : memref<4x16x16xf32, #tpu.memory_space<vmem>>, vector<4x16x16xf32>
    %74 = vector.shape_cast %73 : vector<4x16x16xf32> to vector<1x4x16x16xf32>
    %75 = vector.shape_cast %74 : vector<1x4x16x16xf32> to vector<1x4x16x16xf32>
    %76 = vector.broadcast %75 : vector<1x4x16x16xf32> to vector<2x4x16x16xf32>
    %77 = vector.shape_cast %76 : vector<2x4x16x16xf32> to vector<8x16x16xf32>
    %78 = vector.shape_cast %77 : vector<8x16x16xf32> to vector<1x8x16x16xf32>
    %79 = vector.broadcast %78 : vector<1x8x16x16xf32> to vector<4x8x16x16xf32>
    %80 = arith.addf %72, %79 : vector<4x8x16x16xf32>
    %81 = vector.shape_cast %80 : vector<4x8x16x16xf32> to vector<32x16x16xf32>
    %cst_22 = arith.constant dense<0xFF800000> : vector<32x16xf32>
    %82 = vector.multi_reduction <maximumf>, %81, %cst_22 [2] : vector<32x16x16xf32> to vector<32x16xf32>
    %83 = vector.shape_cast %82 : vector<32x16xf32> to vector<32x16x1xf32>
    %84 = vector.broadcast %83 : vector<32x16x1xf32> to vector<32x16x16xf32>
    %85 = arith.subf %81, %84 : vector<32x16x16xf32>
    %86 = math.exp %85 : vector<32x16x16xf32>
    %cst_23 = arith.constant dense<0.000000e+00> : vector<32x16xf32>
    %87 = vector.multi_reduction <add>, %86, %cst_23 [2] : vector<32x16x16xf32> to vector<32x16xf32>
    %88 = vector.shape_cast %87 : vector<32x16xf32> to vector<32x16x1xf32>
    %89 = tpu.reciprocal %88 {approx = true} : vector<32x16x1xf32> -> vector<32x16x1xf32>
    %90 = vector.broadcast %89 : vector<32x16x1xf32> to vector<32x16x16xf32>
    %91 = arith.mulf %86, %90 : vector<32x16x16xf32>
    %92 = arith.truncf %91 : vector<32x16x16xf32> to vector<32x16x16xbf16>
    "tpu.trace_start"() <{level = 10 : i32, message = "bqk,bkd->bqd"}> : () -> ()
    %cst_24 = arith.constant dense<0.000000e+00> : vector<32x16x8xf32>
    %93 = tpu.matmul %92, %66, %cst_24 {dimension_numbers = #tpu.dot_dimension_numbers<[2], [1], [1], [2], [0, 0, 0, 1, 1, 2], [0], [0]>} : vector<32x16x16xbf16>, vector<32x16x8xbf16>, vector<32x16x8xf32> -> vector<32x16x8xf32>
    "tpu.trace_stop"() : () -> ()
    %94 = vector.shape_cast %93 : vector<32x16x8xf32> to vector<4x128x8xf32>
    %95 = vector.extract_strided_slice %94 {offsets = [0, 0, 0], sizes = [1, 128, 8], strides = [1, 1, 1]} : vector<4x128x8xf32> to vector<1x128x8xf32>
    %96 = vector.shape_cast %95 : vector<1x128x8xf32> to vector<128x8xf32>
    %97 = vector.extract_strided_slice %94 {offsets = [1, 0, 0], sizes = [1, 128, 8], strides = [1, 1, 1]} : vector<4x128x8xf32> to vector<1x128x8xf32>
    %98 = vector.shape_cast %97 : vector<1x128x8xf32> to vector<128x8xf32>
    %99 = vector.extract_strided_slice %94 {offsets = [2, 0, 0], sizes = [1, 128, 8], strides = [1, 1, 1]} : vector<4x128x8xf32> to vector<1x128x8xf32>
    %100 = vector.shape_cast %99 : vector<1x128x8xf32> to vector<128x8xf32>
    %101 = vector.extract_strided_slice %94 {offsets = [3, 0, 0], sizes = [1, 128, 8], strides = [1, 1, 1]} : vector<4x128x8xf32> to vector<1x128x8xf32>
    %102 = vector.shape_cast %101 : vector<1x128x8xf32> to vector<128x8xf32>
    %103 = tpu.concatenate %96, %98, %100, %102 in 1 : vector<128x8xf32>, vector<128x8xf32>, vector<128x8xf32>, vector<128x8xf32> -> vector<128x32xf32>
    %104 = arith.truncf %103 : vector<128x32xf32> to vector<128x32xbf16>
    %c0_25 = arith.constant 0 : index
    %c0_26 = arith.constant 0 : index
    %105 = vector.load %arg8[%c0_25, %c0_26] : memref<32x32xbf16, #tpu.memory_space<vmem>>, vector<32x32xbf16>
    %cst_27 = arith.constant dense<0.000000e+00> : vector<128x32xf32>
    %106 = tpu.matmul %104, %105, %cst_27 {dimension_numbers = #tpu.dot_dimension_numbers<[1], [0], [0], [1], [0, 0, 1, 1], [], []>} : vector<128x32xbf16>, vector<32x32xbf16>, vector<128x32xf32> -> vector<128x32xf32>
    %c0_28 = arith.constant 0 : index
    %c0_29 = arith.constant 0 : index
    %107 = vector.load %arg9[%c0_28, %c0_29] : memref<1x32xf32, #tpu.memory_space<vmem>>, vector<1x32xf32>
    %108 = vector.broadcast %107 : vector<1x32xf32> to vector<128x32xf32>
    %109 = arith.addf %106, %108 : vector<128x32xf32>
    %110 = vector.shape_cast %109 : vector<128x32xf32> to vector<8x16x32xf32>
    %c0_30 = arith.constant 0 : index
    %c0_31 = arith.constant 0 : index
    %c0_32 = arith.constant 0 : index
    %111 = vector.load %arg10[%c0_30, %c0_31, %c0_32] : memref<8x16x32xf32, #tpu.memory_space<vmem>>, vector<8x16x32xf32>
    tpu.vector_store %arg10[%c0_30, %c0_31, %c0_32], %110 {strides = array<i32>} : memref<8x16x32xf32, #tpu.memory_space<vmem>>, vector<8x16x32xf32>,
    return
  }
  func.func @transform_0(%arg0: i32) -> (i32, i32, i32) {
    %c0_i32 = arith.constant 0 : i32
    %c0_i32_0 = arith.constant 0 : i32
    %c0_i32_1 = arith.constant 0 : i32
    return %arg0, %c0_i32, %c0_i32_0 : i32, i32, i32
  }
  func.func @transform_1(%arg0: i32) -> (i32, i32, i32) {
    %c0_i32 = arith.constant 0 : i32
    %c0_i32_0 = arith.constant 0 : i32
    %c0_i32_1 = arith.constant 0 : i32
    %c0_i32_2 = arith.constant 0 : i32
    return %c0_i32, %c0_i32_0, %c0_i32_1 : i32, i32, i32
  }
  func.func @transform_2(%arg0: i32) -> (i32, i32, i32) {
    %c0_i32 = arith.constant 0 : i32
    %c0_i32_0 = arith.constant 0 : i32
    %c0_i32_1 = arith.constant 0 : i32
    %c0_i32_2 = arith.constant 0 : i32
    return %c0_i32, %c0_i32_0, %c0_i32_1 : i32, i32, i32
  }
  func.func @transform_3(%arg0: i32) -> (i32, i32) {
    %c0_i32 = arith.constant 0 : i32
    %c0_i32_0 = arith.constant 0 : i32
    %c0_i32_1 = arith.constant 0 : i32
    return %c0_i32, %c0_i32_0 : i32, i32
  }
  func.func @transform_4(%arg0: i32) -> (i32, i32) {
    %c0_i32 = arith.constant 0 : i32
    %c0_i32_0 = arith.constant 0 : i32
    %c0_i32_1 = arith.constant 0 : i32
    return %c0_i32, %c0_i32_0 : i32, i32
  }
  func.func @transform_5(%arg0: i32) -> (i32, i32) {
    %c0_i32 = arith.constant 0 : i32
    %c0_i32_0 = arith.constant 0 : i32
    %c0_i32_1 = arith.constant 0 : i32
    return %c0_i32, %c0_i32_0 : i32, i32
  }
  func.func @transform_6(%arg0: i32) -> (i32, i32) {
    %c0_i32 = arith.constant 0 : i32
    %c0_i32_0 = arith.constant 0 : i32
    %c0_i32_1 = arith.constant 0 : i32
    return %c0_i32, %c0_i32_0 : i32, i32
  }
  func.func @transform_7(%arg0: i32) -> (i32, i32) {
    %c0_i32 = arith.constant 0 : i32
    %c0_i32_0 = arith.constant 0 : i32
    %c0_i32_1 = arith.constant 0 : i32
    return %c0_i32, %c0_i32_0 : i32, i32
  }
  func.func @transform_8(%arg0: i32) -> (i32, i32) {
    %c0_i32 = arith.constant 0 : i32
    %c0_i32_0 = arith.constant 0 : i32
    %c0_i32_1 = arith.constant 0 : i32
    return %c0_i32, %c0_i32_0 : i32, i32
  }
  func.func @transform_9(%arg0: i32) -> (i32, i32, i32) {
    %c0_i32 = arith.constant 0 : i32
    %c0_i32_0 = arith.constant 0 : i32
    %c0_i32_1 = arith.constant 0 : i32
    return %arg0, %c0_i32, %c0_i32_0 : i32, i32, i32
  }
}

</mosaic_0001>

<bundles_post_ra>
// kernel: tpu_custom_call.1
= control target key start
LH: loop header
LB: loop body
LE: loop exit
PB: predicated region body
PF: predicated region fallthrough
CT: control target
= control target key end

     0   :  { %14 = vsyncpa [#allocation3], 0  ;;  %s8445_s0 = inlined_call_operand.hbm [shape: f32[8,16,32], index: 0, kind: input, shape index: {}]   ;;  %s8446_s1 = inlined_call_operand.hbm [shape: f32[4,16,16], index: 1, kind: input, shape index: {}]   ;;  %s8447_s2 = inlined_call_operand.hbm [shape: f32[4,16,16], index: 2, kind: input, shape index: {}]   ;;  %s8448_s3 = inlined_call_operand.vmem [shape: f32[1,32], index: 3, kind: input, shape index: {}]   ;;  %s8449_s4 = inlined_call_operand.vmem [shape: f32[1,32], index: 4, kind: input, shape index: {}]   ;;  %s8450_s5 = inlined_call_operand.hbm [shape: bf16[32,96], index: 5, kind: input, shape index: {}]   ;;  %s8451_s6 = inlined_call_operand.vmem [shape: f32[1,96], index: 6, kind: input, shape index: {}]   ;;  %s8452_s7 = inlined_call_operand.hbm [shape: bf16[32,32], index: 7, kind: input, shape index: {}]   ;;  %s8453_s8 = inlined_call_operand.vmem [shape: f32[1,32], index: 8, kind: input, shape index: {}]   ;;  %s8454_s9 = inlined_call_operand.hbm [shape: f32[8,16,32], index: 9, kind: output, shape index: {}]  }
   0x1   :  { %15 = vsyncpa [#allocation6], 0 }
   0x2   :  { %16 = vsyncpa [#allocation9], 0 }
   0x3   :  { %17 = vsyncpa [#allocation4], 0  ;;  %s6479_s30 = smov [#allocation5]   ;;  %s6480_s11 = smov [#allocation8]  }
   0x4   :  { %s35_s10 = sshll.u32 %s6479_s30, 4  ;;  %s63_s12 = sshll.u32 %s6480_s11, 4  ;;  %s36_s10 = int_to_ptr.vmem [resolvable:$true] %s35_s10  ;;  %s64_s12 = int_to_ptr.vmem [resolvable:$true] %s63_s12 }
   0x5   :  { %s6359_s13 = scalar_lea.vmem %s36_s10, 1024  ;;  %p6364_p1 = scmp.lt.s32.totalorder %s36_s10, %s36_s10 }
   0x6   :  { %p6360_p0 = scmp.ne.s32.totalorder %s36_s10, %s6359_s13  ;;  %p6365_p2 = scmp.lt.s32.totalorder %s6359_s13, %s6359_s13 }
   0x8   :  { %p6366_p3 = por %p6365_p2, %p6364_p1 }
   0xa   :  { %p6367_p4 = pnand %p6366_p3, %p6360_p0 }
   0xc   :  { %6370 = shalt.err (!%p6367_p4)
}
   0xd   :  { %s6481_s14 = smov 128   ;;  %s6482_s15 = smov 8  }
   0xe   :  { %41 = dma.hbm_to_vmem [thread:$0]  %s8446_s1, 1024, %s36_s10, [#allocation6], %s6481_s14, %s6481_s14, %s6482_s15  }
   0xf   :  { %s6379_s18 = scalar_lea.vmem %s64_s12, 256  ;;  %p6384_p6 = scmp.lt.s32.totalorder %s64_s12, %s64_s12 }
  0x10   :  { %p6380_p5 = scmp.ne.s32.totalorder %s64_s12, %s6379_s18  ;;  %p6385_p7 = scmp.lt.s32.totalorder %s6379_s18, %s6379_s18 }
  0x12   :  { %p6386_p8 = por %p6385_p7, %p6384_p6 }
  0x14   :  { %p6387_p9 = pnand %p6386_p8, %p6380_p5 }
  0x16   :  { %6390 = shalt.err (!%p6387_p9)
}
  0x17   :  { %s6483_s19 = smov 64   ;;  %s6484_s20 = smov 4  }
  0x18   :  { %69 = dma.hbm_to_vmem [thread:$0]  %s8450_s5, 256, %s64_s12, [#allocation9], %s6483_s19, %s6483_s19, %s6484_s20  }
  0x19   :  { %s6485_s23 = smov [#allocation2]   ;;  %s6486_s25 = smov [#allocation7]  }
  0x1a   :  { %s23_s24 = sshll.u32 %s6485_s23, 4  ;;  %s47_s1 = sshll.u32 %s6486_s25, 4  ;;  %s24_s24 = int_to_ptr.vmem [resolvable:$true] %s23_s24  ;;  %s48_s1 = int_to_ptr.vmem [resolvable:$true] %s47_s1 }
  0x1b   :  { %s6399_s26 = scalar_lea.vmem %s24_s24, 2048  ;;  %p6404_p11 = scmp.lt.s32.totalorder %s24_s24, %s24_s24 }
  0x1c   :  { %p6400_p10 = scmp.ne.s32.totalorder %s24_s24, %s6399_s26  ;;  %p6405_p12 = scmp.lt.s32.totalorder %s6399_s26, %s6399_s26 }
  0x1e   :  { %p6406_p13 = por %p6405_p12, %p6404_p11 }
  0x20   :  { %p6407_p0 = pnand %p6406_p13, %p6400_p10 }
  0x22   :  { %6410 = shalt.err (!%p6407_p0)
}
  0x23   :  { %29 = dma.hbm_to_vmem [thread:$0]  %s8445_s0, 2048, %s24_s24, [#allocation3], %s6481_s14, %s6481_s14, %s6482_s15  }
  0x24   :  { %s6419_s5 = scalar_lea.vmem %s48_s1, 1024  ;;  %p6424_p2 = scmp.lt.s32.totalorder %s48_s1, %s48_s1 }
  0x25   :  { %p6420_p1 = scmp.ne.s32.totalorder %s48_s1, %s6419_s5  ;;  %p6425_p3 = scmp.lt.s32.totalorder %s6419_s5, %s6419_s5 }
  0x27   :  { %p6426_p4 = por %p6425_p3, %p6424_p2 }
  0x29   :  { %p6427_p5 = pnand %p6426_p4, %p6420_p1 }
  0x2b   :  { %6430 = shalt.err (!%p6427_p5)
}
  0x2c   :  { %53 = dma.hbm_to_vmem [thread:$0]  %s8447_s2, 1024, %s48_s1, [#allocation6], %s6481_s14, %s6481_s14, %s6482_s15  }
  0x2d   :  { %s6487_s10 = smov [#allocation10]  }
  0x2e   :  { %s77_s11 = sshll.u32 %s6487_s10, 4  ;;  %s78_s11 = int_to_ptr.vmem [resolvable:$true] %s77_s11 }
  0x2f   :  { %s6439_s12 = scalar_lea.vmem %s78_s11, 256  ;;  %p6444_p7 = scmp.lt.s32.totalorder %s78_s11, %s78_s11 }
  0x30   :  { %p6440_p6 = scmp.ne.s32.totalorder %s78_s11, %s6439_s12  ;;  %p6445_p8 = scmp.lt.s32.totalorder %s6439_s12, %s6439_s12 }
  0x32   :  { %p6446_p9 = por %p6445_p8, %p6444_p7 }
  0x34   :  { %p6447_p10 = pnand %p6446_p9, %p6440_p6 }
  0x36   :  { %6450 = shalt.err (!%p6447_p10)
}
  0x37   :  { %83 = dma.hbm_to_vmem [thread:$0]  %s8452_s7, 256, %s78_s11, [#allocation9], %s6483_s19, %s6483_s19, %s6484_s20  }
  0x38   :  { %6471 = dma.done.wait [#allocation3], 2048  }
  0x39   :  { %6472 = vsyncadd [#allocation3], 4294965248 }
  0x3a   :  { %6473 = dma.done.wait [#allocation6], 2048  }
  0x3b   :  { %6474 = vsyncadd [#allocation6], 4294965248 }
  0x3c   :  { %6475 = dma.done.wait [#allocation9], 512  }
  0x3d   :  { %6476 = vsyncadd [#allocation9], 4294966784  ;;  %vm120_vm0 = vcmask 261120   ;;  %v102_v0 = vld [vmem:[#allocation2] sm:$0xff]  ;;  %v104_v1 = vld [vmem:[#allocation2 + $0x10] sm:$0xff]  ;;  %s6489_s18 = smov 120  }
  0x3e   :  { %v103_v2 = vld [vmem:[#allocation2 + $0x8] sm:$0xff]  ;;  %v121_v3 = vsel %vm120_vm0, %v102_v0, 0.0  ;;  %v127_v4 = vsel %vm120_vm0, %v104_v1, 0.0  ;;  %v105_v5 = vld [vmem:[#allocation2 + $0x18] sm:$0xff]  ;;  %v6579_v6 = vld [vmem:[#allocation2 + $0x20] sm:$0xff]  ;;  %vm6490_vm1 = vmmov 0  }
  0x3f   :  { %122 = vadd.xlane.f32.xlu0 %v121_v3  ;;  %128 = vadd.xlane.f32.xlu1 %v127_v4  ;;  %v124_v7 = vsel %vm120_vm0, %v103_v2, 0.0  ;;  %v130_v8 = vsel %vm120_vm0, %v105_v5, 0.0  ;;  %v107_v9 = vld [vmem:[#allocation2 + $0x28] sm:$0xff]  ;;  %v133_v10 = vsel %vm120_vm0, %v6579_v6, 0.0  ;;  %v6586_v12 = vld [vmem:[#allocation2 + $0x30] sm:$0xff]  ;;  %v6588_v13 = vld [vmem:[#allocation2 + $0x38] sm:$0xff] }
  0x40   :  { %v136_v11 = vsel %vm120_vm0, %v107_v9, 0.0  ;;  %v139_v14 = vsel %vm120_vm0, %v6586_v12, 0.0  ;;  %v142_v15 = vsel %vm120_vm0, %v6588_v13, 0.0  ;;  %v6594_v16 = vld [vmem:[#allocation2 + $0x40] sm:$0xff]  ;;  %v6596_v17 = vld [vmem:[#allocation2 + $0x48] sm:$0xff]  ;;  %v6602_v20 = vld [vmem:[#allocation2 + $0x50] sm:$0xff] }
  0x41   :  { %v145_v18 = vsel %vm120_vm0, %v6594_v16, 0.0  ;;  %v148_v19 = vsel %vm120_vm0, %v6596_v17, 0.0  ;;  %v6604_v21 = vld [vmem:[#allocation2 + $0x58] sm:$0xff]  ;;  %v151_v22 = vsel %vm120_vm0, %v6602_v20, 0.0  ;;  %v6610_v24 = vld [vmem:[#allocation2 + $0x60] sm:$0xff]  ;;  %v6612_v25 = vld [vmem:[#allocation2 + $0x68] sm:$0xff] }
  0x42   :  { %v154_v23 = vsel %vm120_vm0, %v6604_v21, 0.0  ;;  %v157_v26 = vsel %vm120_vm0, %v6610_v24, 0.0  ;;  %v160_v27 = vsel %vm120_vm0, %v6612_v25, 0.0  ;;  %v6618_v28 = vld [vmem:[#allocation2 + $0x70] sm:$0xff]  ;;  %v6620_v29 = vld [vmem:[#allocation2 + $0x78] sm:$0xff]  ;;  %s6492_s20 = smov 112  }
  0x43   :  { %125 = vadd.xlane.f32.xlu0 %v124_v7  ;;  %131 = vadd.xlane.f32.xlu1 %v130_v8  ;;  %v163_v30 = vsel %vm120_vm0, %v6618_v28, 0.0  ;;  %v166_v31 = vsel %vm120_vm0, %v6620_v29, 0.0  ;;  %vm721_vm2 = vcmask 64512   ;;  %s6493_s21 = smov 104   ;;  %vm2463_vm3 = vcmask 130048   ;;  %s6495_s22 = smov 24  }
  0x44   :  { %vm4928_vm4 = vcmask 195584  }
  0x47   :  { %134 = vadd.xlane.f32.xlu0 %v133_v10  ;;  %137 = vadd.xlane.f32.xlu1 %v136_v11 }
  0x4b   :  { %140 = vadd.xlane.f32.xlu0 %v139_v14  ;;  %143 = vadd.xlane.f32.xlu1 %v142_v15 }
  0x4f   :  { %146 = vadd.xlane.f32.xlu0 %v145_v18  ;;  %149 = vadd.xlane.f32.xlu1 %v148_v19 }
  0x53   :  { %152 = vadd.xlane.f32.xlu0 %v151_v22  ;;  %155 = vadd.xlane.f32.xlu1 %v154_v23 }
  0x57   :  { %158 = vadd.xlane.f32.xlu0 %v157_v26  ;;  %161 = vadd.xlane.f32.xlu1 %v160_v27 }
  0x5b   :  { %164 = vadd.xlane.f32.xlu0 %v163_v30  ;;  %167 = vadd.xlane.f32.xlu1 %v166_v31 }
  0xc8   :  { %v123_v32 = vpop.xlane.xlu0 %122  ;;  %v129_v33 = vpop.xlane.xlu1 %128 }
  0xc9   :  { %v170_v34 = vmul.f32 0.03125, %v123_v32  ;;  %v172_v35 = vmul.f32 0.03125, %v129_v33 }
  0xcb   :  { %v6626_v36 = vsub.f32 %v102_v0, %v170_v34  ;;  %v6628_v37 = vsub.f32 %v104_v1, %v172_v35 }
  0xcc   :  { %v126_v38 = vpop.xlane.xlu0 %125  ;;  %v132_v39 = vpop.xlane.xlu1 %131 }
  0xcd   :  { %v171_v40 = vmul.f32 0.03125, %v126_v38  ;;  %v173_v41 = vmul.f32 0.03125, %v132_v39  ;;  %v202_v42 = vmul.f32 %v6626_v36, %v6626_v36  ;;  %v204_v43 = vmul.f32 %v6628_v37, %v6628_v37 }
  0xcf   :  { %v6634_v44 = vsub.f32 %v103_v2, %v171_v40  ;;  %v6636_v45 = vsub.f32 %v105_v5, %v173_v41  ;;  %v218_v46 = vsel %vm120_vm0, %v202_v42, 0.0  ;;  %v224_v49 = vsel %vm120_vm0, %v204_v43, 0.0 }
  0xd0   :  { %219 = vadd.xlane.f32.xlu0 %v218_v46  ;;  %v135_v47 = vpop.xlane.xlu0 %134  ;;  %v138_v48 = vpop.xlane.xlu1 %137 }
  0xd1   :  { %v174_v50 = vmul.f32 0.03125, %v135_v47  ;;  %v175_v51 = vmul.f32 0.03125, %v138_v48  ;;  %v203_v52 = vmul.f32 %v6634_v44, %v6634_v44  ;;  %v205_v53 = vmul.f32 %v6636_v45, %v6636_v45 }
  0xd3   :  { %v6645_v54 = vsub.f32 %v6579_v6, %v174_v50  ;;  %v6647_v55 = vsub.f32 %v107_v9, %v175_v51  ;;  %v221_v56 = vsel %vm120_vm0, %v203_v52, 0.0  ;;  %v227_v59 = vsel %vm120_vm0, %v205_v53, 0.0  ;;  %v6055_v53 = vld [vmem:[#allocation8] sm:$0xff]  }
  0xd4   :  { %225 = vadd.xlane.f32.xlu0 %v224_v49  ;;  %222 = vadd.xlane.f32.xlu1 %v221_v56  ;;  %v141_v57 = vpop.xlane.xlu0 %140  ;;  %v144_v58 = vpop.xlane.xlu1 %143 }
  0xd5   :  { %v176_v60 = vmul.f32 0.03125, %v141_v57  ;;  %v177_v61 = vmul.f32 0.03125, %v144_v58  ;;  %v206_v62 = vmul.f32 %v6645_v54, %v6645_v54  ;;  %v207_v63 = vmul.f32 %v6647_v55, %v6647_v55 }
  0xd7   :  { %v6656_v0 = vsub.f32 %v6586_v12, %v176_v60  ;;  %v6659_v1 = vsub.f32 %v6588_v13, %v177_v61  ;;  %v230_v2 = vsel %vm120_vm0, %v206_v62, 0.0  ;;  %v233_v5 = vsel %vm120_vm0, %v207_v63, 0.0 }
  0xd8   :  { %228 = vadd.xlane.f32.xlu1 %v227_v59  ;;  %231 = vadd.xlane.f32.xlu0 %v230_v2  ;;  %v147_v3 = vpop.xlane.xlu0 %146  ;;  %v150_v4 = vpop.xlane.xlu1 %149 }
  0xd9   :  { %v178_v6 = vmul.f32 0.03125, %v147_v3  ;;  %v179_v7 = vmul.f32 0.03125, %v150_v4  ;;  %v208_v8 = vmul.f32 %v6656_v0, %v6656_v0  ;;  %v209_v9 = vmul.f32 %v6659_v1, %v6659_v1 }
  0xdb   :  { %v6668_v10 = vsub.f32 %v6594_v16, %v178_v6  ;;  %v6671_v11 = vsub.f32 %v6596_v17, %v179_v7  ;;  %v236_v12 = vsel %vm120_vm0, %v208_v8, 0.0  ;;  %v239_v15 = vsel %vm120_vm0, %v209_v9, 0.0 }
  0xdc   :  { %234 = vadd.xlane.f32.xlu1 %v233_v5  ;;  %237 = vadd.xlane.f32.xlu0 %v236_v12  ;;  %v153_v13 = vpop.xlane.xlu0 %152  ;;  %v156_v14 = vpop.xlane.xlu1 %155 }
  0xdd   :  { %v180_v18 = vmul.f32 0.03125, %v153_v13  ;;  %v181_v19 = vmul.f32 0.03125, %v156_v14  ;;  %v210_v22 = vmul.f32 %v6668_v10, %v6668_v10  ;;  %v211_v16 = vmul.f32 %v6671_v11, %v6671_v11 }
  0xdf   :  { %v6680_v23 = vsub.f32 %v6602_v20, %v180_v18  ;;  %v6683_v17 = vsub.f32 %v6604_v21, %v181_v19  ;;  %v242_v26 = vsel %vm120_vm0, %v210_v22, 0.0  ;;  %v245_v31 = vsel %vm120_vm0, %v211_v16, 0.0 }
  0xe0   :  { %240 = vadd.xlane.f32.xlu1 %v239_v15  ;;  %243 = vadd.xlane.f32.xlu0 %v242_v26  ;;  %v159_v27 = vpop.xlane.xlu0 %158  ;;  %v162_v30 = vpop.xlane.xlu1 %161 }
  0xe1   :  { %v182_v32 = vmul.f32 0.03125, %v159_v27  ;;  %v183_v33 = vmul.f32 0.03125, %v162_v30  ;;  %v212_v34 = vmul.f32 %v6680_v23, %v6680_v23  ;;  %v213_v20 = vmul.f32 %v6683_v17, %v6683_v17 }
  0xe3   :  { %v6692_v35 = vsub.f32 %v6610_v24, %v182_v32  ;;  %v6695_v21 = vsub.f32 %v6612_v25, %v183_v33  ;;  %v248_v38 = vsel %vm120_vm0, %v212_v34, 0.0  ;;  %v251_v41 = vsel %vm120_vm0, %v213_v20, 0.0  ;;  %v6720_v32 = vld [vmem:[%s8448_s3] ss:$0 sm:$0xff] }
  0xe4   :  { %246 = vadd.xlane.f32.xlu1 %v245_v31  ;;  %249 = vadd.xlane.f32.xlu0 %v248_v38  ;;  %v165_v39 = vpop.xlane.xlu0 %164  ;;  %v168_v40 = vpop.xlane.xlu1 %167 }
  0xe5   :  { %v184_v42 = vmul.f32 0.03125, %v165_v39  ;;  %v185_v43 = vmul.f32 0.03125, %v168_v40  ;;  %v214_v46 = vmul.f32 %v6692_v35, %v6692_v35  ;;  %v215_v24 = vmul.f32 %v6695_v21, %v6695_v21 }
  0xe7   :  { %v6704_v47 = vsub.f32 %v6618_v28, %v184_v42  ;;  %v6707_v25 = vsub.f32 %v6620_v29, %v185_v43  ;;  %v254_v48 = vsel %vm120_vm0, %v214_v46, 0.0  ;;  %v257_v49 = vsel %vm120_vm0, %v215_v24, 0.0  ;;  %v6054_v29 = vld [vmem:[#allocation8 + $0x8] sm:$0xff]   ;;  %v6727_v24 = vld [vmem:[%s8449_s4] ss:$0 sm:$0xff] }
  0xe8   :  { %252 = vadd.xlane.f32.xlu1 %v251_v41  ;;  %255 = vadd.xlane.f32.xlu0 %v254_v48 }
  0xe9   :  { %v216_v50 = vmul.f32 %v6704_v47, %v6704_v47  ;;  %v217_v51 = vmul.f32 %v6707_v25, %v6707_v25  ;;  %5368 = vmatprep.subr.bf16.mxu0 %v6054_v29  ;;  %5792 = vmatprep.subr.bf16.mxu1 %v6054_v29 }
  0xea   :  { %5369 = vmatpush3.bf16.msra.mxu0 %v6054_v29  ;;  %5794 = vmatpush3.bf16.msra.mxu1 %v6054_v29 }
  0xeb   :  { %v260_v52 = vsel %vm120_vm0, %v216_v50, 0.0  ;;  %v263_v28 = vsel %vm120_vm0, %v217_v51, 0.0  ;;  %5370 = vmatprep.subr.bf16.mxu0 %v6055_v53  ;;  %5793 = vmatprep.subr.bf16.mxu1 %v6055_v53 }
  0xec   :  { %258 = vadd.xlane.f32.xlu1 %v257_v49  ;;  %261 = vadd.xlane.f32.xlu0 %v260_v52 }
  0xee   :  { %5371 = vmatpush3.bf16.msra.mxu0 %v6055_v53  ;;  %5795 = vmatpush3.bf16.msra.mxu1 %v6055_v53 }
  0xf0   :  { %264 = vadd.xlane.f32.xlu1 %v263_v28 }
 0x159   :  { %v220_v56 = vpop.xlane.xlu0 %219 }
 0x15a   :  { %v266_v57 = vmul.f32 0.03125, %v220_v56 }
 0x15c   :  { %v282_v58 = vadd.f32 1e-05, %v266_v57 }
 0x15d   :  { %v223_v59 = vpop.xlane.xlu1 %222  ;;  %v226_v60 = vpop.xlane.xlu0 %225 }
 0x15e   :  { %6058 = vrsqrt.f32 %v282_v58  ;;  %v267_v61 = vmul.f32 0.03125, %v223_v59  ;;  %v268_v62 = vmul.f32 0.03125, %v226_v60 }
 0x160   :  { %v283_v63 = vadd.f32 1e-05, %v267_v61  ;;  %v284_v2 = vadd.f32 1e-05, %v268_v62 }
 0x161   :  { %v229_v3 = vpop.xlane.xlu1 %228  ;;  %v232_v4 = vpop.xlane.xlu0 %231 }
 0x162   :  { %6060 = vrsqrt.f32 %v283_v63  ;;  %v269_v5 = vmul.f32 0.03125, %v229_v3  ;;  %v270_v6 = vmul.f32 0.03125, %v232_v4 }
 0x163   :  { %6062 = vrsqrt.f32 %v284_v2 }
 0x164   :  { %v285_v7 = vadd.f32 1e-05, %v269_v5  ;;  %v286_v8 = vadd.f32 1e-05, %v270_v6 }
 0x165   :  { %v235_v9 = vpop.xlane.xlu1 %234  ;;  %v238_v12 = vpop.xlane.xlu0 %237 }
 0x166   :  { %6064 = vrsqrt.f32 %v285_v7  ;;  %v271_v13 = vmul.f32 0.03125, %v235_v9  ;;  %v272_v14 = vmul.f32 0.03125, %v238_v12 }
 0x167   :  { %6066 = vrsqrt.f32 %v286_v8 }
 0x168   :  { %v287_v15 = vadd.f32 1e-05, %v271_v13  ;;  %v288_v18 = vadd.f32 1e-05, %v272_v14 }
 0x169   :  { %v241_v19 = vpop.xlane.xlu1 %240  ;;  %v244_v22 = vpop.xlane.xlu0 %243 }
 0x16a   :  { %6068 = vrsqrt.f32 %v287_v15  ;;  %v273_v16 = vmul.f32 0.03125, %v241_v19  ;;  %v274_v26 = vmul.f32 0.03125, %v244_v22 }
 0x16b   :  { %v6059_v27 = vpop.eup %6058  ;;  %6070 = vrsqrt.f32 %v288_v18 }
 0x16c   :  { %v289_v30 = vadd.f32 1e-05, %v273_v16  ;;  %v290_v31 = vadd.f32 1e-05, %v274_v26  ;;  %v314_v33 = vmul.f32 %v6059_v27, %v6626_v36 }
 0x16d   :  { %v247_v34 = vpop.xlane.xlu1 %246  ;;  %v250_v20 = vpop.xlane.xlu0 %249 }
 0x16e   :  { %6072 = vrsqrt.f32 %v289_v30  ;;  %v275_v38 = vmul.f32 0.03125, %v247_v34  ;;  %v276_v39 = vmul.f32 0.03125, %v250_v20  ;;  %v336_v41 = vmul.f32 %v6720_v32, %v314_v33 }
 0x16f   :  { %v6061_v40 = vpop.eup %6060  ;;  %6074 = vrsqrt.f32 %v290_v31 }
 0x170   :  { %v6063_v42 = vpop.eup %6062  ;;  %v291_v43 = vadd.f32 1e-05, %v275_v38  ;;  %v292_v46 = vadd.f32 1e-05, %v276_v39  ;;  %v315_v48 = vmul.f32 %v6061_v40, %v6634_v44  ;;  %v358_v53 = vadd.f32 %v6727_v24, %v336_v41 }
 0x171   :  { %v253_v36 = vpop.xlane.xlu1 %252  ;;  %v256_v49 = vpop.xlane.xlu0 %255  ;;  %v316_v50 = vmul.f32 %v6063_v42, %v6628_v37 }
 0x172   :  { %6076 = vrsqrt.f32 %v291_v43  ;;  %v277_v51 = vmul.f32 0.03125, %v253_v36  ;;  %v278_v52 = vmul.f32 0.03125, %v256_v49  ;;  %v337_v28 = vmul.f32 %v6720_v32, %v315_v48 }
 0x173   :  { %v6065_v29 = vpop.eup %6064  ;;  %6078 = vrsqrt.f32 %v292_v46  ;;  %v338_v37 = vmul.f32 %v6720_v32, %v316_v50 }
 0x174   :  { %v6067_v56 = vpop.eup %6066  ;;  %v293_v57 = vadd.f32 1e-05, %v277_v51  ;;  %v294_v58 = vadd.f32 1e-05, %v278_v52  ;;  %v359_v59 = vadd.f32 %v6727_v24, %v337_v28  ;;  %v317_v44 = vmul.f32 %v6065_v29, %v6636_v45 }
 0x175   :  { %v259_v60 = vpop.xlane.xlu1 %258  ;;  %v262_v61 = vpop.xlane.xlu0 %261  ;;  %v318_v62 = vmul.f32 %v6067_v56, %v6645_v54  ;;  %v360_v54 = vadd.f32 %v6727_v24, %v338_v37 }
 0x176   :  { %6080 = vrsqrt.f32 %v293_v57  ;;  %v279_v63 = vmul.f32 0.03125, %v259_v60  ;;  %v280_v2 = vmul.f32 0.03125, %v262_v61  ;;  %v374_v3 = vpack.c.bf16 %v359_v59, %v358_v53 }
 0x177   :  { %v6069_v4 = vpop.eup %6068  ;;  %6082 = vrsqrt.f32 %v294_v58  ;;  %v339_v5 = vmul.f32 %v6720_v32, %v317_v44  ;;  %v340_v6 = vmul.f32 %v6720_v32, %v318_v62 }
 0x178   :  { %v6071_v7 = vpop.eup %6070  ;;  %v295_v8 = vadd.f32 1e-05, %v279_v63  ;;  %v296_v9 = vadd.f32 1e-05, %v280_v2  ;;  %5372 = vmatprep.mubr.msk.bf16.mxu0 %vm120_vm0, %v374_v3  ;;  %v319_v45 = vmul.f32 %v6069_v4, %v6647_v55 }
 0x179   :  { %v265_v12 = vpop.xlane.xlu1 %264  ;;  %v361_v13 = vadd.f32 %v6727_v24, %v339_v5  ;;  %v320_v14 = vmul.f32 %v6071_v7, %v6656_v0  ;;  %v362_v16 = vadd.f32 %v6727_v24, %v340_v6  ;;  %v5134_v5 = vld [vmem:[%s8451_s6] ss:$0 sm:$0xff]  ;;  %v8455_v6 = vmov 0.0   ;;  %s6491_s6 = smov 96  }
 0x17a   :  { %6084 = vrsqrt.f32 %v295_v8  ;;  %v281_v15 = vmul.f32 0.03125, %v265_v12  ;;  %v341_v18 = vmul.f32 %v6720_v32, %v319_v45  ;;  %5388 = vmatprep.subr.bf16.mxu1 %v8455_v6  ;;  %5412 = vmatprep.subr.bf16.mxu0 %v8455_v6 }
 0x17b   :  { %v6073_v19 = vpop.eup %6072  ;;  %6086 = vrsqrt.f32 %v296_v9  ;;  %v375_v22 = vpack.c.bf16 %v361_v13, %v360_v54  ;;  %v342_v31 = vmul.f32 %v6720_v32, %v320_v14 }
 0x17c   :  { %v6075_v26 = vpop.eup %6074  ;;  %v297_v27 = vadd.f32 1e-05, %v281_v15  ;;  %v363_v55 = vadd.f32 %v6727_v24, %v341_v18  ;;  %v321_v30 = vmul.f32 %v6073_v19, %v6659_v1 }
 0x17d   :  { %5373 = vmatmul.mubr.msk.bf16.vlgmr.msra.gmra.mxu0 %vm120_vm0, %v375_v22  ;;  %v322_v0 = vmul.f32 %v6075_v26, %v6668_v10  ;;  %v364_v39 = vadd.f32 %v6727_v24, %v342_v31 }
 0x17e   :  { %6088 = vrsqrt.f32 %v297_v27  ;;  %v376_v33 = vpack.c.bf16 %v363_v55, %v362_v16  ;;  %v343_v34 = vmul.f32 %v6720_v32, %v321_v30 }
 0x17f   :  { %v6077_v20 = vpop.eup %6076  ;;  %v344_v41 = vmul.f32 %v6720_v32, %v322_v0 }
 0x180   :  { %v6079_v38 = vpop.eup %6078  ;;  %5376 = vmatprep.mubr.msk.bf16.mxu0 %vm120_vm0, %v376_v33  ;;  %v365_v40 = vadd.f32 %v6727_v24, %v343_v34  ;;  %v323_v1 = vmul.f32 %v6077_v20, %v6671_v11 }
 0x181   :  { %v324_v42 = vmul.f32 %v6079_v38, %v6680_v23  ;;  %v366_v36 = vadd.f32 %v6727_v24, %v344_v41 }
 0x182   :  { %v377_v43 = vpack.c.bf16 %v365_v40, %v364_v39  ;;  %v345_v10 = vmul.f32 %v6720_v32, %v323_v1 }
 0x183   :  { %v6081_v46 = vpop.eup %6080  ;;  %v346_v51 = vmul.f32 %v6720_v32, %v324_v42 }
 0x184   :  { %v6083_v48 = vpop.eup %6082  ;;  %v367_v49 = vadd.f32 %v6727_v24, %v345_v10  ;;  %v325_v50 = vmul.f32 %v6081_v46, %v6683_v17 }
 0x185   :  { %5377 = vmatmul.mubr.msk.bf16.gmra.mxu0 %vm120_vm0, %v377_v43  ;;  %v326_v11 = vmul.f32 %v6083_v48, %v6692_v35  ;;  %v368_v53 = vadd.f32 %v6727_v24, %v346_v51 }
 0x186   :  { %v378_v52 = vpack.c.bf16 %v367_v49, %v366_v36  ;;  %v347_v23 = vmul.f32 %v6720_v32, %v325_v50  ;;  %5414 = vmatprep.mubr.msk.bf16.mxu0 %vm6490_vm1, %v8455_v6 }
 0x187   :  { %v6085_v28 = vpop.eup %6084  ;;  %v348_v17 = vmul.f32 %v6720_v32, %v326_v11 }
 0x188   :  { %v6087_v29 = vpop.eup %6086  ;;  %5380 = vmatprep.mubr.msk.bf16.mxu1 %vm120_vm0, %v378_v52  ;;  %v369_v56 = vadd.f32 %v6727_v24, %v347_v23  ;;  %v327_v57 = vmul.f32 %v6085_v28, %v6695_v21 }
 0x189   :  { %v328_v58 = vmul.f32 %v6087_v29, %v6704_v47  ;;  %v370_v60 = vadd.f32 %v6727_v24, %v348_v17 }
 0x18a   :  { %v379_v59 = vpack.c.bf16 %v369_v56, %v368_v53  ;;  %v349_v35 = vmul.f32 %v6720_v32, %v327_v57 }
 0x18b   :  { %v6089_v44 = vpop.eup %6088  ;;  %v350_v62 = vmul.f32 %v6720_v32, %v328_v58 }
 0x18c   :  { %5381 = vmatmul.mubr.msk.bf16.vlgmr.msra.gmra.mxu1 %vm120_vm0, %v379_v59  ;;  %v371_v61 = vadd.f32 %v6727_v24, %v349_v35  ;;  %v329_v37 = vmul.f32 %v6089_v44, %v6707_v25 }
 0x18d   :  { %v372_v47 = vadd.f32 %v6727_v24, %v350_v62 }
 0x18e   :  { %v380_v63 = vpack.c.bf16 %v371_v61, %v370_v60  ;;  %v351_v21 = vmul.f32 %v6720_v32, %v329_v37 }
 0x190   :  { %5384 = vmatprep.mubr.msk.bf16.mxu1 %vm120_vm0, %v380_v63  ;;  %v373_v2 = vadd.f32 %v6727_v24, %v351_v21 }
 0x192   :  { %v381_v3 = vpack.c.bf16 %v373_v2, %v372_v47 }
 0x194   :  { %5385 = vmatmul.mubr.msk.bf16.gmra.mxu1 %vm120_vm0, %v381_v3 }
 0x195   :  { %5390 = vmatprep.mubr.msk.bf16.mxu1 %vm6490_vm1, %v8455_v6 }
 0x23d   :  { %v5374_v4 = vpop.f32.mrf.mxu0 }
 0x23e   :  { %v472_v7 = vadd.f32 %v5374_v4, %v5134_v5 }
 0x23f   :  { %v463_v25 = vpop.f32.mrf.mxu0 }
 0x240   :  { %v464_v45 = vadd.f32 %v5134_v5, %v463_v25 }
 0x241   :  { %v5375_v32 = vpop.f32.mrf.mxu0 }
 0x242   :  { %v475_v8 = vadd.f32 %v5375_v32, %v5134_v5 }
 0x243   :  { %v466_v9 = vpop.f32.mrf.mxu0 }
 0x244   :  { %v467_v24 = vadd.f32 %v5134_v5, %v466_v9  ;;  %v6788_v12 = vpack.i.bf16 %v475_v8, %v472_v7  ;;  %v6820_v49 = vpack.c.bf16 %v475_v8, %v472_v7 }
 0x245   :  { %v5378_v54 = vpop.f32.mrf.mxu0 }
 0x246   :  { %5820 = vrot.lane.b32.xlu1 %v6788_v12, %s6489_s18  ;;  %v6792_v13 = vpack.i.bf16 %v467_v24, %v464_v45  ;;  %v6800_v19 = vpack.c.bf16 %v467_v24, %v464_v45  ;;  %v488_v22 = vadd.f32 %v5378_v54, %v5134_v5 }
 0x247   :  { %v479_v14 = vpop.f32.mrf.mxu0 }
 0x248   :  { %5815 = vrot.lane.b32.xlu0 %v6792_v13, %s6489_s18  ;;  %v480_v26 = vadd.f32 %v5134_v5, %v479_v14 }
 0x249   :  { %v5379_v15 = vpop.f32.mrf.mxu0 }
 0x24a   :  { %v491_v18 = vadd.f32 %v5379_v15, %v5134_v5 }
 0x24b   :  { %v482_v16 = vpop.f32.mrf.mxu0 }
 0x24c   :  { %v483_v27 = vadd.f32 %v5134_v5, %v482_v16  ;;  %719 = vrot.lane.b32.xlu0 %v6800_v19, %s6491_s6  ;;  %v5382_v55 = vpop.f32.mrf.mxu1  ;;  %v6804_v30 = vpack.i.bf16 %v491_v18, %v488_v22  ;;  %v6837_v28 = vpack.c.bf16 %v491_v18, %v488_v22 }
 0x24d   :  { %v504_v34 = vadd.f32 %v5382_v55, %v5134_v5 }
 0x24e   :  { %v495_v31 = vpop.f32.mrf.mxu1  ;;  %v6806_v0 = vpack.i.bf16 %v483_v27, %v480_v26  ;;  %v6832_v23 = vpack.c.bf16 %v483_v27, %v480_v26 }
 0x24f   :  { %v496_v39 = vadd.f32 %v5134_v5, %v495_v31 }
 0x250   :  { %5825 = vrot.lane.b32.xlu1 %v6806_v0, %s6489_s18  ;;  %v5383_v33 = vpop.f32.mrf.mxu1 }
 0x251   :  { %v507_v20 = vadd.f32 %v5383_v33, %v5134_v5 }
 0x252   :  { %v498_v38 = vpop.f32.mrf.mxu1 }
 0x253   :  { %v499_v40 = vadd.f32 %v5134_v5, %v498_v38  ;;  %v6810_v1 = vpack.i.bf16 %v507_v20, %v504_v34  ;;  %v6846_v53 = vpack.c.bf16 %v507_v20, %v504_v34 }
 0x254   :  { %5830 = vrot.lane.b32.xlu1 %v6804_v30, %s6489_s18  ;;  %v5386_v41 = vpop.f32.mrf.mxu1 }
 0x255   :  { %5840 = vrot.lane.b32.xlu0 %v6810_v1, %s6489_s18  ;;  %v6816_v42 = vpack.i.bf16 %v499_v40, %v496_v39  ;;  %v520_v48 = vadd.f32 %v5386_v41, %v5134_v5  ;;  %v6844_v29 = vpack.c.bf16 %v499_v40, %v496_v39 }
 0x256   :  { %v511_v43 = vpop.f32.mrf.mxu1 }
 0x257   :  { %v512_v50 = vadd.f32 %v5134_v5, %v511_v43 }
 0x258   :  { %5835 = vrot.lane.b32.xlu1 %v6816_v42, %s6489_s18  ;;  %v5387_v10 = vpop.f32.mrf.mxu1 }
 0x259   :  { %v523_v46 = vadd.f32 %v5387_v10, %v5134_v5 }
 0x25a   :  { %v514_v36 = vpop.f32.mrf.mxu1 }
 0x25b   :  { %v515_v51 = vadd.f32 %v5134_v5, %v514_v36  ;;  %v6824_v11 = vpack.i.bf16 %v523_v46, %v520_v48  ;;  %v6856_v57 = vpack.c.bf16 %v523_v46, %v520_v48 }
 0x25c   :  { %770 = vrot.lane.b32.xlu1 %v6820_v49, %s6491_s6 }
 0x25d   :  { %v6826_v52 = vpack.i.bf16 %v515_v51, %v512_v50  ;;  %v6854_v56 = vpack.c.bf16 %v515_v51, %v512_v50 }
 0x25f   :  { %5845 = vrot.lane.b32.xlu0 %v6826_v52, %s6489_s18 }
 0x260   :  { %5850 = vrot.lane.b32.xlu1 %v6824_v11, %s6489_s18 }
 0x263   :  { %820 = vrot.lane.b32.xlu0 %v6832_v23, %s6491_s6 }
 0x264   :  { %5855 = vrot.lane.b32.xlu1 %v6792_v13, %s6492_s20 }
 0x267   :  { %5860 = vrot.lane.b32.xlu0 %v6788_v12, %s6492_s20 }
 0x268   :  { %870 = vrot.lane.b32.xlu1 %v6837_v28, %s6491_s6 }
 0x26b   :  { %5865 = vrot.lane.b32.xlu0 %v6806_v0, %s6492_s20 }
 0x26c   :  { %5870 = vrot.lane.b32.xlu1 %v6804_v30, %s6492_s20 }
 0x26f   :  { %920 = vrot.lane.b32.xlu0 %v6844_v29, %s6491_s6 }
 0x270   :  { %970 = vrot.lane.b32.xlu1 %v6846_v53, %s6491_s6 }
 0x273   :  { %5875 = vrot.lane.b32.xlu0 %v6816_v42, %s6492_s20 }
 0x274   :  { %5880 = vrot.lane.b32.xlu1 %v6810_v1, %s6492_s20 }
 0x277   :  { %1020 = vrot.lane.b32.xlu0 %v6854_v56, %s6491_s6 }
 0x278   :  { %1070 = vrot.lane.b32.xlu1 %v6856_v57, %s6491_s6 }
 0x27b   :  { %5885 = vrot.lane.b32.xlu0 %v6826_v52, %s6492_s20 }
 0x27c   :  { %5890 = vrot.lane.b32.xlu1 %v6824_v11, %s6492_s20 }
 0x2b8   :  { %v5821_v17 = vpop.permute.xlu1 %5820 }
 0x2b9   :  { %v5823_v58 = vunpack.i.h.bf16 %v5821_v17  ;;  %v5822_v59 = vunpack.i.l.bf16 %v5821_v17 }
 0x2ba   :  { %v5816_v35 = vpop.permute.xlu0 %5815 }
 0x2bb   :  { %v5818_v44 = vunpack.i.h.bf16 %v5816_v35  ;;  %v5817_v60 = vunpack.i.l.bf16 %v5816_v35  ;;  %v6864_v61 = vpack.c.bf16 %v5823_v58, %v5822_v59 }
 0x2bd   :  { %1170 = vrot.lane.b32.xlu1 %v6864_v61, %s6491_s6  ;;  %v6868_v37 = vpack.c.bf16 %v5818_v44, %v5817_v60 }
 0x2be   :  { %v720_v62 = vpop.permute.xlu0 %719 }
 0x2bf   :  { %v726_v63 = vsel %vm721_vm2, %v720_v62, 0  ;;  %1120 = vrot.lane.b32.xlu0 %v6868_v37, %s6491_s6 }
 0x2c0   :  { %5389 = vmatpush3.bf16.xpose.msra.mxu1 %v726_v63 }
 0x2c1   :  { %5900 = vrot.lane.b32.xlu1 %v6788_v12, %s6493_s21  ;;  %5394 = vmatprep.subr.bf16.mxu1 %v8455_v6 }
 0x2c2   :  { %v5826_v21 = vpop.permute.xlu1 %5825 }
 0x2c3   :  { %v5828_v47 = vunpack.i.h.bf16 %v5826_v21  ;;  %v5827_v2 = vunpack.i.l.bf16 %v5826_v21  ;;  %5895 = vrot.lane.b32.xlu0 %v6792_v13, %s6493_s21 }
 0x2c5   :  { %v6878_v3 = vpack.c.bf16 %v5828_v47, %v5827_v2 }
 0x2c6   :  { %v5831_v4 = vpop.permute.xlu1 %5830 }
 0x2c7   :  { %v5833_v5 = vunpack.i.h.bf16 %v5831_v4  ;;  %v5832_v25 = vunpack.i.l.bf16 %v5831_v4  ;;  %5391 = vmatmul.mubr.msk.bf16.vlgmr.msra.gmra.mxu1 %vm721_vm2, %v6800_v19  ;;  %1220 = vrot.lane.b32.xlu0 %v6878_v3, %s6491_s6  ;;  %v5841_v7 = vpop.permute.xlu0 %5840 }
 0x2c8   :  { %5396 = vmatprep.mubr.msk.bf16.mxu1 %vm6490_vm1, %v8455_v6  ;;  %v5843_v24 = vunpack.i.h.bf16 %v5841_v7  ;;  %v5842_v12 = vunpack.i.l.bf16 %v5841_v7 }
 0x2c9   :  { %v6886_v32 = vpack.c.bf16 %v5833_v5, %v5832_v25 }
 0x2ca   :  { %v5836_v8 = vpop.permute.xlu1 %5835  ;;  %v6899_v18 = vpack.c.bf16 %v5843_v24, %v5842_v12 }
 0x2cb   :  { %v5838_v9 = vunpack.i.h.bf16 %v5836_v8  ;;  %v5837_v45 = vunpack.i.l.bf16 %v5836_v8  ;;  %1270 = vrot.lane.b32.xlu1 %v6886_v32, %s6491_s6  ;;  %5905 = vrot.lane.b32.xlu0 %v6806_v0, %s6493_s21 }
 0x2cd   :  { %v6892_v54 = vpack.c.bf16 %v5838_v9, %v5837_v45 }
 0x2ce   :  { %v771_v13 = vpop.permute.xlu1 %770 }
 0x2cf   :  { %v776_v14 = vsel %vm721_vm2, %v771_v13, 0  ;;  %5910 = vrot.lane.b32.xlu1 %v6804_v30, %s6493_s21  ;;  %1320 = vrot.lane.b32.xlu0 %v6892_v54, %s6491_s6 }
 0x2d0   :  { %5395 = vmatpush3.bf16.xpose.msra.mxu1 %v776_v14 }
 0x2d1   :  { %v5846_v15 = vpop.permute.xlu0 %5845  ;;  %5400 = vmatprep.subr.bf16.mxu1 %v8455_v6 }
 0x2d2   :  { %v5851_v22 = vpop.permute.xlu1 %5850  ;;  %v5848_v16 = vunpack.i.h.bf16 %v5846_v15  ;;  %v5847_v26 = vunpack.i.l.bf16 %v5846_v15 }
 0x2d3   :  { %1370 = vrot.lane.b32.xlu1 %v6899_v18, %s6491_s6  ;;  %5915 = vrot.lane.b32.xlu0 %v6816_v42, %s6493_s21  ;;  %v5853_v55 = vunpack.i.h.bf16 %v5851_v22  ;;  %v5852_v30 = vunpack.i.l.bf16 %v5851_v22 }
 0x2d4   :  { %v6906_v27 = vpack.c.bf16 %v5848_v16, %v5847_v26 }
 0x2d5   :  { %v821_v31 = vpop.permute.xlu0 %820  ;;  %v6915_v20 = vpack.c.bf16 %v5853_v55, %v5852_v30 }
 0x2d6   :  { %v5856_v0 = vpop.permute.xlu1 %5855  ;;  %v826_v33 = vsel %vm721_vm2, %v821_v31, 0 }
 0x2d7   :  { %5397 = vmatmul.mubr.msk.bf16.vlgmr.msra.gmra.mxu1 %vm721_vm2, %v6820_v49  ;;  %5920 = vrot.lane.b32.xlu1 %v6810_v1, %s6493_s21  ;;  %v5858_v38 = vunpack.i.h.bf16 %v5856_v0  ;;  %v5857_v39 = vunpack.i.l.bf16 %v5856_v0 }
 0x2d8   :  { %1420 = vrot.lane.b32.xlu0 %v6906_v27, %s6491_s6  ;;  %5401 = vmatpush3.bf16.xpose.msra.mxu1 %v826_v33 }
 0x2d9   :  { %v5861_v34 = vpop.permute.xlu0 %5860  ;;  %5402 = vmatprep.mubr.msk.bf16.mxu1 %vm6490_vm1, %v8455_v6  ;;  %5406 = vmatprep.subr.bf16.mxu1 %v8455_v6  ;;  %v6924_v48 = vpack.c.bf16 %v5858_v38, %v5857_v39 }
 0x2da   :  { %v871_v40 = vpop.permute.xlu1 %870  ;;  %v5863_v1 = vunpack.i.h.bf16 %v5861_v34  ;;  %v5862_v41 = vunpack.i.l.bf16 %v5861_v34 }
 0x2db   :  { %1470 = vrot.lane.b32.xlu1 %v6915_v20, %s6491_s6  ;;  %v876_v36 = vsel %vm721_vm2, %v871_v40, 0 }
 0x2dc   :  { %5925 = vrot.lane.b32.xlu0 %v6826_v52, %s6493_s21  ;;  %v6935_v58 = vpack.c.bf16 %v5863_v1, %v5862_v41 }
 0x2dd   :  { %v5866_v42 = vpop.permute.xlu0 %5865 }
 0x2de   :  { %v5871_v43 = vpop.permute.xlu1 %5870  ;;  %v5868_v10 = vunpack.i.h.bf16 %v5866_v42  ;;  %v5867_v46 = vunpack.i.l.bf16 %v5866_v42 }
 0x2df   :  { %5403 = vmatmul.mubr.msk.bf16.vlgmr.msra.gmra.mxu1 %vm721_vm2, %v6832_v23  ;;  %5930 = vrot.lane.b32.xlu1 %v6824_v11, %s6493_s21  ;;  %v5873_v51 = vunpack.i.h.bf16 %v5871_v43  ;;  %v5872_v52 = vunpack.i.l.bf16 %v5871_v43 }
 0x2e0   :  { %1520 = vrot.lane.b32.xlu0 %v6924_v48, %s6491_s6  ;;  %5407 = vmatpush3.bf16.xpose.msra.mxu1 %v876_v36  ;;  %v6933_v50 = vpack.c.bf16 %v5868_v10, %v5867_v46 }
 0x2e1   :  { %v921_v17 = vpop.permute.xlu0 %920  ;;  %5408 = vmatprep.mubr.msk.bf16.mxu1 %vm6490_vm1, %v8455_v6  ;;  %5418 = vmatprep.subr.bf16.mxu1 %v8455_v6  ;;  %v6946_v44 = vpack.c.bf16 %v5873_v51, %v5872_v52 }
 0x2e2   :  { %v971_v59 = vpop.permute.xlu1 %970  ;;  %v926_v35 = vsel %vm721_vm2, %v921_v17, 0 }
 0x2e3   :  { %1570 = vrot.lane.b32.xlu1 %v6935_v58, %s6491_s6  ;;  %5413 = vmatpush3.bf16.xpose.msra.mxu0 %v926_v35  ;;  %v976_v21 = vsel %vm721_vm2, %v971_v59, 0 }
 0x2e4   :  { %1620 = vrot.lane.b32.xlu0 %v6933_v50, %s6491_s6  ;;  %5424 = vmatprep.subr.bf16.mxu0 %v8455_v6 }
 0x2e5   :  { %v5876_v11 = vpop.permute.xlu0 %5875 }
 0x2e6   :  { %v5881_v60 = vpop.permute.xlu1 %5880  ;;  %v5878_v62 = vunpack.i.h.bf16 %v5876_v11  ;;  %v5877_v63 = vunpack.i.l.bf16 %v5876_v11 }
 0x2e7   :  { %v5883_v47 = vunpack.i.h.bf16 %v5881_v60  ;;  %v5882_v2 = vunpack.i.l.bf16 %v5881_v60  ;;  %5409 = vmatmul.mubr.msk.bf16.vlgmr.msra.gmra.mxu1 %vm721_vm2, %v6837_v28  ;;  %1670 = vrot.lane.b32.xlu1 %v6946_v44, %s6491_s6 }
 0x2e8   :  { %5419 = vmatpush3.bf16.xpose.msra.mxu1 %v976_v21  ;;  %v6953_v4 = vpack.c.bf16 %v5878_v62, %v5877_v63  ;;  %5420 = vmatprep.mubr.msk.bf16.mxu1 %vm6490_vm1, %v8455_v6 }
 0x2e9   :  { %v1021_v5 = vpop.permute.xlu0 %1020  ;;  %v6957_v25 = vpack.c.bf16 %v5883_v47, %v5882_v2  ;;  %5430 = vmatprep.subr.bf16.mxu1 %v8455_v6 }
 0x2ea   :  { %v1071_v7 = vpop.permute.xlu1 %1070  ;;  %v1026_v8 = vsel %vm721_vm2, %v1021_v5, 0  ;;  %5415 = vmatmul.mubr.msk.bf16.vlgmr.msra.gmra.mxu0 %vm721_vm2, %v6844_v29  ;;  %1720 = vrot.lane.b32.xlu0 %v6953_v4, %s6491_s6 }
 0x2eb   :  { %1770 = vrot.lane.b32.xlu1 %v6957_v25, %s6491_s6  ;;  %5425 = vmatpush3.bf16.xpose.msra.mxu0 %v1026_v8  ;;  %v1076_v13 = vsel %vm721_vm2, %v1071_v7, 0 }
 0x2ec   :  { %5426 = vmatprep.mubr.msk.bf16.mxu0 %vm6490_vm1, %v8455_v6  ;;  %5436 = vmatprep.subr.bf16.mxu0 %v8455_v6 }
 0x2ed   :  { %v5886_v9 = vpop.permute.xlu0 %5885 }
 0x2ee   :  { %v5891_v45 = vpop.permute.xlu1 %5890  ;;  %v5888_v24 = vunpack.i.h.bf16 %v5886_v9  ;;  %v5887_v12 = vunpack.i.l.bf16 %v5886_v9 }
 0x2ef   :  { %v5893_v14 = vunpack.i.h.bf16 %v5891_v45  ;;  %v5892_v15 = vunpack.i.l.bf16 %v5891_v45  ;;  %5421 = vmatmul.mubr.msk.bf16.vlgmr.msra.gmra.mxu1 %vm721_vm2, %v6846_v53 }
 0x2f0   :  { %5431 = vmatpush3.bf16.xpose.msra.mxu1 %v1076_v13  ;;  %v6973_v22 = vpack.c.bf16 %v5888_v24, %v5887_v12  ;;  %5432 = vmatprep.mubr.msk.bf16.mxu1 %vm6490_vm1, %v8455_v6 }
 0x2f1   :  { %v6977_v16 = vpack.c.bf16 %v5893_v14, %v5892_v15  ;;  %5442 = vmatprep.subr.bf16.mxu1 %v8455_v6 }
 0x2f2   :  { %5427 = vmatmul.mubr.msk.bf16.vlgmr.msra.gmra.mxu0 %vm721_vm2, %v6854_v56  ;;  %1820 = vrot.lane.b32.xlu0 %v6973_v22, %s6491_s6 }
 0x2f3   :  { %1870 = vrot.lane.b32.xlu1 %v6977_v16, %s6491_s6  ;;  %5438 = vmatprep.mubr.msk.bf16.mxu0 %vm6490_vm1, %v8455_v6 }
 0x2f7   :  { %5433 = vmatmul.mubr.msk.bf16.vlgmr.msra.gmra.mxu1 %vm721_vm2, %v6856_v57 }
 0x2f8   :  { %5444 = vmatprep.mubr.msk.bf16.mxu1 %vm6490_vm1, %v8455_v6 }
 0x32f   :  { %v1171_v26 = vpop.permute.xlu1 %1170 }
 0x330   :  { %v1176_v55 = vsel %vm721_vm2, %v1171_v26, 0 }
 0x331   :  { %5443 = vmatpush3.bf16.xpose.msra.mxu1 %v1176_v55  ;;  %v1121_v30 = vpop.permute.xlu0 %1120 }
 0x332   :  { %v1126_v31 = vsel %vm721_vm2, %v1121_v30, 0  ;;  %5454 = vmatprep.subr.bf16.mxu1 %v8455_v6 }
 0x333   :  { %v5901_v0 = vpop.permute.xlu1 %5900  ;;  %5437 = vmatpush3.bf16.xpose.msra.mxu0 %v1126_v31 }
 0x334   :  { %v5903_v33 = vunpack.i.h.bf16 %v5901_v0  ;;  %v5902_v34 = vunpack.i.l.bf16 %v5901_v0  ;;  %5448 = vmatprep.subr.bf16.mxu0 %v8455_v6 }
 0x335   :  { %v5896_v38 = vpop.permute.xlu0 %5895 }
 0x336   :  { %v5898_v39 = vunpack.i.h.bf16 %v5896_v38  ;;  %v5897_v40 = vunpack.i.l.bf16 %v5896_v38  ;;  %v6996_v1 = vpack.c.bf16 %v5903_v33, %v5902_v34 }
 0x338   :  { %5445 = vmatmul.mubr.msk.bf16.vlgmr.msra.gmra.mxu1 %vm721_vm2, %v6864_v61  ;;  %1970 = vrot.lane.b32.xlu1 %v6996_v1, %s6491_s6  ;;  %v7002_v41 = vpack.c.bf16 %v5898_v39, %v5897_v40 }
 0x339   :  { %v1221_v42 = vpop.permute.xlu0 %1220  ;;  %5456 = vmatprep.mubr.msk.bf16.mxu1 %vm6490_vm1, %v8455_v6 }
 0x33a   :  { %v1226_v43 = vsel %vm721_vm2, %v1221_v42, 0  ;;  %5439 = vmatmul.mubr.msk.bf16.vlgmr.msra.gmra.mxu0 %vm721_vm2, %v6868_v37  ;;  %1920 = vrot.lane.b32.xlu0 %v7002_v41, %s6491_s6 }
 0x33b   :  { %5449 = vmatpush3.bf16.xpose.msra.mxu0 %v1226_v43  ;;  %5450 = vmatprep.mubr.msk.bf16.mxu0 %vm6490_vm1, %v8455_v6 }
 0x33c   :  { %5460 = vmatprep.subr.bf16.mxu0 %v8455_v6 }
 0x33d   :  { %v1271_v10 = vpop.permute.xlu1 %1270  ;;  %v5906_v46 = vpop.permute.xlu0 %5905 }
 0x33e   :  { %v1276_v36 = vsel %vm721_vm2, %v1271_v10, 0  ;;  %v5908_v51 = vunpack.i.h.bf16 %v5906_v46  ;;  %v5907_v52 = vunpack.i.l.bf16 %v5906_v46 }
 0x33f   :  { %5455 = vmatpush3.bf16.xpose.msra.mxu1 %v1276_v36 }
 0x340   :  { %v7015_v17 = vpack.c.bf16 %v5908_v51, %v5907_v52  ;;  %5466 = vmatprep.subr.bf16.mxu1 %v8455_v6 }
 0x341   :  { %v5911_v59 = vpop.permute.xlu1 %5910  ;;  %v1321_v35 = vpop.permute.xlu0 %1320 }
 0x342   :  { %v5913_v11 = vunpack.i.h.bf16 %v5911_v59  ;;  %v5912_v60 = vunpack.i.l.bf16 %v5911_v59  ;;  %v1326_v62 = vsel %vm721_vm2, %v1321_v35, 0  ;;  %5451 = vmatmul.mubr.msk.bf16.vlgmr.msra.gmra.mxu0 %vm721_vm2, %v6878_v3  ;;  %2020 = vrot.lane.b32.xlu0 %v7015_v17, %s6491_s6 }
 0x343   :  { %5461 = vmatpush3.bf16.xpose.msra.mxu0 %v1326_v62  ;;  %5462 = vmatprep.mubr.msk.bf16.mxu0 %vm6490_vm1, %v8455_v6 }
 0x344   :  { %v7025_v63 = vpack.c.bf16 %v5913_v11, %v5912_v60  ;;  %5472 = vmatprep.subr.bf16.mxu0 %v8455_v6 }
 0x345   :  { %v1371_v21 = vpop.permute.xlu1 %1370  ;;  %v5916_v47 = vpop.permute.xlu0 %5915 }
 0x346   :  { %v1376_v2 = vsel %vm721_vm2, %v1371_v21, 0  ;;  %v5918_v5 = vunpack.i.h.bf16 %v5916_v47  ;;  %v5917_v7 = vunpack.i.l.bf16 %v5916_v47  ;;  %5457 = vmatmul.mubr.msk.bf16.vlgmr.msra.gmra.mxu1 %vm721_vm2, %v6886_v32  ;;  %2070 = vrot.lane.b32.xlu1 %v7025_v63, %s6491_s6 }
 0x347   :  { %5467 = vmatpush3.bf16.xpose.msra.mxu1 %v1376_v2  ;;  %5468 = vmatprep.mubr.msk.bf16.mxu1 %vm6490_vm1, %v8455_v6 }
 0x348   :  { %v7035_v8 = vpack.c.bf16 %v5918_v5, %v5917_v7  ;;  %5478 = vmatprep.subr.bf16.mxu1 %v8455_v6  ;;  %v7199_v7 = vld [vmem:[#allocation7 + $0x10] sm:$0xff] }
 0x349   :  { %v5921_v9 = vpop.permute.xlu1 %5920 }
 0x34a   :  { %v5923_v45 = vunpack.i.h.bf16 %v5921_v9  ;;  %v5922_v24 = vunpack.i.l.bf16 %v5921_v9  ;;  %v1421_v12 = vpop.permute.xlu0 %1420  ;;  %5463 = vmatmul.mubr.msk.bf16.vlgmr.msra.gmra.mxu0 %vm721_vm2, %v6892_v54  ;;  %2120 = vrot.lane.b32.xlu0 %v7035_v8, %s6491_s6 }
 0x34b   :  { %v1426_v13 = vsel %vm721_vm2, %v1421_v12, 0  ;;  %5474 = vmatprep.mubr.msk.bf16.mxu0 %vm6490_vm1, %v8455_v6 }
 0x34c   :  { %5473 = vmatpush3.bf16.xpose.msra.mxu0 %v1426_v13  ;;  %v7045_v14 = vpack.c.bf16 %v5923_v45, %v5922_v24 }
 0x34d   :  { %v1471_v15 = vpop.permute.xlu1 %1470  ;;  %5484 = vmatprep.subr.bf16.mxu0 %v8455_v6 }
 0x34e   :  { %v1476_v26 = vsel %vm721_vm2, %v1471_v15, 0  ;;  %v5926_v55 = vpop.permute.xlu0 %5925  ;;  %5469 = vmatmul.mubr.msk.bf16.vlgmr.msra.gmra.mxu1 %vm721_vm2, %v6899_v18  ;;  %2170 = vrot.lane.b32.xlu1 %v7045_v14, %s6491_s6  ;;  %v7206_v15 = vld [vmem:[#allocation5 + $0x8] sm:$0xff] }
 0x34f   :  { %v5928_v30 = vunpack.i.h.bf16 %v5926_v55  ;;  %v5927_v31 = vunpack.i.l.bf16 %v5926_v55  ;;  %5479 = vmatpush3.bf16.xpose.msra.mxu1 %v1476_v26  ;;  %5480 = vmatprep.mubr.msk.bf16.mxu1 %vm6490_vm1, %v8455_v6 }
 0x350   :  { %5490 = vmatprep.subr.bf16.mxu1 %v8455_v6 }
 0x351   :  { %v5931_v0 = vpop.permute.xlu1 %5930  ;;  %v7056_v33 = vpack.c.bf16 %v5928_v30, %v5927_v31 }
 0x352   :  { %v5933_v34 = vunpack.i.h.bf16 %v5931_v0  ;;  %v5932_v38 = vunpack.i.l.bf16 %v5931_v0  ;;  %v1521_v39 = vpop.permute.xlu0 %1520 }
 0x353   :  { %8481 = vst [vmem:[#allocation16_spill] sm:$0xff] %v7056_v33  ;;  %v1526_v40 = vsel %vm721_vm2, %v1521_v39, 0  ;;  %5475 = vmatmul.mubr.msk.bf16.vlgmr.msra.gmra.mxu0 %vm721_vm2, %v6906_v27  ;;  %2220 = vrot.lane.b32.xlu0 %v7056_v33, %s6491_s6  ;;  %v7215_v39 = vld [vmem:[#allocation7 + $0x8] sm:$0xff] }
 0x354   :  { %5485 = vmatpush3.bf16.xpose.msra.mxu0 %v1526_v40  ;;  %v7063_v42 = vpack.c.bf16 %v5933_v34, %v5932_v38  ;;  %5486 = vmatprep.mubr.msk.bf16.mxu0 %vm6490_vm1, %v8455_v6 }
 0x355   :  { %v1571_v43 = vpop.permute.xlu1 %1570  ;;  %5496 = vmatprep.subr.bf16.mxu0 %v8455_v6 }
 0x356   :  { %8482 = vst [vmem:[#allocation17_spill] sm:$0xff] %v7063_v42  ;;  %v1576_v10 = vsel %vm721_vm2, %v1571_v43, 0  ;;  %5481 = vmatmul.mubr.msk.bf16.vlgmr.msra.gmra.mxu1 %vm721_vm2, %v6915_v20  ;;  %2270 = vrot.lane.b32.xlu1 %v7063_v42, %s6491_s6  ;;  %v1621_v46 = vpop.permute.xlu0 %1620 }
 0x357   :  { %3200 = vrot.lane.b32.xlu0 %v6800_v19, %s6483_s19  ;;  %5491 = vmatpush3.bf16.xpose.msra.mxu1 %v1576_v10  ;;  %v1626_v36 = vsel %vm721_vm2, %v1621_v46, 0 }
 0x358   :  { %5492 = vmatprep.mubr.msk.bf16.mxu1 %vm6490_vm1, %v8455_v6  ;;  %5502 = vmatprep.subr.bf16.mxu1 %v8455_v6 }
 0x359   :  { %v1671_v51 = vpop.permute.xlu1 %1670 }
 0x35a   :  { %3247 = vrot.lane.b32.xlu1 %v6820_v49, %s6483_s19  ;;  %v1676_v19 = vsel %vm721_vm2, %v1671_v51, 0  ;;  %v7225_v51 = vld [vmem:[#allocation7 + $0x18] sm:$0xff] }
 0x35b   :  { %5487 = vmatmul.mubr.msk.bf16.vlgmr.msra.gmra.mxu0 %vm721_vm2, %v6924_v48  ;;  %3294 = vrot.lane.b32.xlu0 %v6832_v23, %s6483_s19 }
 0x35c   :  { %5497 = vmatpush3.bf16.xpose.msra.mxu0 %v1626_v36  ;;  %5498 = vmatprep.mubr.msk.bf16.mxu0 %vm6490_vm1, %v8455_v6  ;;  %v1721_v49 = vpop.permute.xlu0 %1720 }
 0x35d   :  { %5508 = vmatprep.subr.bf16.mxu0 %v8455_v6  ;;  %v1771_v23 = vpop.permute.xlu1 %1770  ;;  %v1726_v52 = vsel %vm721_vm2, %v1721_v49, 0 }
 0x35e   :  { %5493 = vmatmul.mubr.msk.bf16.vlgmr.msra.gmra.mxu1 %vm721_vm2, %v6935_v58  ;;  %3341 = vrot.lane.b32.xlu1 %v6837_v28, %s6483_s19  ;;  %v1776_v28 = vsel %vm721_vm2, %v1771_v23, 0 }
 0x35f   :  { %3388 = vrot.lane.b32.xlu0 %v6844_v29, %s6483_s19  ;;  %5503 = vmatpush3.bf16.xpose.msra.mxu1 %v1676_v19  ;;  %v7227_v19 = vld [vmem:[#allocation7 + $0x20] sm:$0xff] }
 0x360   :  { %5504 = vmatprep.mubr.msk.bf16.mxu1 %vm6490_vm1, %v8455_v6  ;;  %5514 = vmatprep.subr.bf16.mxu1 %v8455_v6 }
 0x362   :  { %3435 = vrot.lane.b32.xlu1 %v6846_v53, %s6483_s19 }
 0x363   :  { %5499 = vmatmul.mubr.msk.bf16.vlgmr.msra.gmra.mxu0 %vm721_vm2, %v6933_v50  ;;  %3482 = vrot.lane.b32.xlu0 %v6854_v56, %s6483_s19 }
 0x364   :  { %5509 = vmatpush3.bf16.xpose.msra.mxu0 %v1726_v52  ;;  %5510 = vmatprep.mubr.msk.bf16.mxu0 %vm6490_vm1, %v8455_v6  ;;  %v1821_v29 = vpop.permute.xlu0 %1820 }
 0x365   :  { %5520 = vmatprep.subr.bf16.mxu0 %v8455_v6  ;;  %v1871_v53 = vpop.permute.xlu1 %1870  ;;  %v1826_v56 = vsel %vm721_vm2, %v1821_v29, 0 }
 0x366   :  { %5505 = vmatmul.mubr.msk.bf16.vlgmr.msra.gmra.mxu1 %vm721_vm2, %v6946_v44  ;;  %3529 = vrot.lane.b32.xlu1 %v6856_v57, %s6483_s19  ;;  %v1876_v57 = vsel %vm721_vm2, %v1871_v53, 0 }
 0x367   :  { %3576 = vrot.lane.b32.xlu0 %v6868_v37, %s6483_s19  ;;  %5515 = vmatpush3.bf16.xpose.msra.mxu1 %v1776_v28 }
 0x368   :  { %5516 = vmatprep.mubr.msk.bf16.mxu1 %vm6490_vm1, %v8455_v6  ;;  %5526 = vmatprep.subr.bf16.mxu1 %v8455_v6 }
 0x36a   :  { %3623 = vrot.lane.b32.xlu1 %v6864_v61, %s6483_s19 }
 0x36b   :  { %5511 = vmatmul.mubr.msk.bf16.vlgmr.msra.gmra.mxu0 %vm721_vm2, %v6953_v4  ;;  %3764 = vrot.lane.b32.xlu0 %v6892_v54, %s6483_s19 }
 0x36c   :  { %5521 = vmatpush3.bf16.xpose.msra.mxu0 %v1826_v56  ;;  %5522 = vmatprep.mubr.msk.bf16.mxu0 %vm6490_vm1, %v8455_v6 }
 0x36d   :  { %5532 = vmatprep.subr.bf16.mxu0 %v8455_v6 }
 0x36e   :  { %5517 = vmatmul.mubr.msk.bf16.vlgmr.msra.gmra.mxu1 %vm721_vm2, %v6957_v25  ;;  %3717 = vrot.lane.b32.xlu1 %v6886_v32, %s6483_s19 }
 0x36f   :  { %3952 = vrot.lane.b32.xlu0 %v6924_v48, %s6483_s19  ;;  %5527 = vmatpush3.bf16.xpose.msra.mxu1 %v1876_v57  ;;  %v7180_v48 = vld [vmem:[#allocation5] sm:$0xff] }
 0x370   :  { %5528 = vmatprep.mubr.msk.bf16.mxu1 %vm6490_vm1, %v8455_v6  ;;  %5538 = vmatprep.subr.bf16.mxu1 %v8455_v6 }
 0x372   :  { %3811 = vrot.lane.b32.xlu1 %v6899_v18, %s6483_s19 }
 0x373   :  { %5523 = vmatmul.mubr.msk.bf16.vlgmr.msra.gmra.mxu0 %vm721_vm2, %v6973_v22  ;;  %4140 = vrot.lane.b32.xlu0 %v6953_v4, %s6483_s19  ;;  %v7183_v4 = vld [vmem:[#allocation7] sm:$0xff] }
 0x374   :  { %5534 = vmatprep.mubr.msk.bf16.mxu0 %vm6490_vm1, %v8455_v6 }
 0x376   :  { %5529 = vmatmul.mubr.msk.bf16.vlgmr.msra.gmra.mxu1 %vm721_vm2, %v6977_v16  ;;  %3905 = vrot.lane.b32.xlu1 %v6915_v20, %s6483_s19 }
 0x377   :  { %4328 = vrot.lane.b32.xlu0 %v7002_v41, %s6483_s19  ;;  %5540 = vmatprep.mubr.msk.bf16.mxu1 %vm6490_vm1, %v8455_v6 }
 0x37a   :  { %3999 = vrot.lane.b32.xlu1 %v6935_v58, %s6483_s19 }
 0x37b   :  { %4516 = vrot.lane.b32.xlu0 %v7035_v8, %s6483_s19 }
 0x37e   :  { %4093 = vrot.lane.b32.xlu1 %v6946_v44, %s6483_s19 }
 0x37f   :  { %3670 = vrot.lane.b32.xlu0 %v6878_v3, %s6483_s19 }
 0x382   :  { %4187 = vrot.lane.b32.xlu1 %v6957_v25, %s6483_s19 }
 0x383   :  { %3858 = vrot.lane.b32.xlu0 %v6906_v27, %s6483_s19 }
 0x386   :  { %4281 = vrot.lane.b32.xlu1 %v6977_v16, %s6483_s19 }
 0x387   :  { %4046 = vrot.lane.b32.xlu0 %v6933_v50, %s6483_s19  ;;  %v762_v61 = vpop.f32.mrf.mxu1 }
 0x388   :  { %v2327_v58 = vadd.f32 %v7180_v48, %v762_v61 }
 0x389   :  { %v5392_v37 = vpop.f32.mrf.mxu1 }
 0x38a   :  { %4375 = vrot.lane.b32.xlu1 %v6996_v1, %s6483_s19 }
 0x38b   :  { %4234 = vrot.lane.b32.xlu0 %v6973_v22, %s6483_s19  ;;  %v765_v3 = vpop.f32.mrf.mxu1  ;;  %v7188_v22 = vadd.f32 %v7183_v4, %v2327_v58 }
 0x38c   :  { %v2328_v34 = vadd.f32 %v7206_v15, %v765_v3 }
 0x38d   :  { %v5393_v32 = vpop.f32.mrf.mxu1  ;;  %v2464_v11 = vsel %vm2463_vm3, %v7188_v22, -inf }
 0x38e   :  { %4469 = vrot.lane.b32.xlu1 %v7025_v63, %s6483_s19  ;;  %v7232_v52 = vadd.f32 %v7215_v39, %v2328_v34 }
 0x392   :  { %4563 = vrot.lane.b32.xlu1 %v7045_v14, %s6483_s19 }
 0x396   :  { %4422 = vrot.lane.b32.xlu1 %v7015_v17, %s6483_s19 }
 0x397   :  { %v812_v54 = vpop.f32.mrf.mxu1 }
 0x398   :  { %v2329_v21 = vadd.f32 %v7180_v48, %v812_v54 }
 0x399   :  { %v5398_v18 = vpop.f32.mrf.mxu1 }
 0x39a   :  { %v7209_v55 = vadd.f32 %v7199_v7, %v2329_v21 }
 0x39b   :  { %v815_v27 = vpop.f32.mrf.mxu1 }
 0x39c   :  { %v2330_v43 = vadd.f32 %v7206_v15, %v815_v27  ;;  %v2470_v36 = vsel %vm2463_vm3, %v7209_v55, -inf }
 0x39d   :  { %v5399_v20 = vpop.f32.mrf.mxu1 }
 0x39e   :  { %v7244_v57 = vadd.f32 %v7225_v51, %v2330_v43 }
 0x39f   :  { %v862_v50 = vpop.f32.mrf.mxu1 }
 0x3a0   :  { %v2331_v61 = vadd.f32 %v7180_v48, %v862_v50  ;;  %v2467_v50 = vsel %vm2463_vm3, %v7232_v52, -inf }
 0x3a1   :  { %v5404_v44 = vpop.f32.mrf.mxu1 }
 0x3a2   :  { %v7258_v58 = vadd.f32 %v7227_v19, %v2331_v61 }
 0x3a3   :  { %v7185_v25 = vpop.f32.mrf.mxu1 }
 0x3a4   :  { %v2332_v21 = vadd.f32 %v7206_v15, %v7185_v25  ;;  %v2476_v25 = vsel %vm2463_vm3, %v7258_v58, -inf }
 0x3a5   :  { %v5405_v16 = vpop.f32.mrf.mxu1 }
 0x3a7   :  { %v7190_v59 = vpop.f32.mrf.mxu1 }
 0x3a8   :  { %v2333_v44 = vadd.f32 %v7180_v48, %v7190_v59 }
 0x3a9   :  { %v5410_v35 = vpop.f32.mrf.mxu1 }
 0x3aa   :  { %2465 = vmax.xlane.f32.xlu0 %v2464_v11  ;;  %v1971_v60 = vpop.permute.xlu1 %1970  ;;  %v962_v62 = vpop.f32.mrf.mxu0  ;;  %v2473_v35 = vsel %vm2463_vm3, %v7244_v57, -inf  ;;  %v7265_v11 = vld [vmem:[#allocation7 + $0x28] sm:$0xff] }
 0x3ab   :  { %v1976_v47 = vsel %vm721_vm2, %v1971_v60, 0  ;;  %v7196_v2 = vpop.f32.mrf.mxu1  ;;  %v2335_v5 = vadd.f32 %v7180_v48, %v962_v62  ;;  %v7267_v60 = vld [vmem:[#allocation7 + $0x30] sm:$0xff] }
 0x3ac   :  { %5539 = vmatpush3.bf16.xpose.msra.mxu1 %v1976_v47  ;;  %v1921_v9 = vpop.permute.xlu0 %1920  ;;  %v5416_v45 = vpop.f32.mrf.mxu0 }
 0x3ad   :  { %v7202_v24 = vadd.f32 %v7183_v4, %v2335_v5  ;;  %v1926_v12 = vsel %vm721_vm2, %v1921_v9, 0  ;;  %v5411_v13 = vpop.f32.mrf.mxu1  ;;  %5550 = vmatprep.subr.bf16.mxu1 %v8455_v6  ;;  %v7280_v45 = vadd.f32 %v7267_v60, %v2333_v44 }
 0x3ae   :  { %5533 = vmatpush3.bf16.xpose.msra.mxu0 %v1926_v12  ;;  %v965_v26 = vpop.f32.mrf.mxu0 }
 0x3af   :  { %v1012_v30 = vpop.f32.mrf.mxu1  ;;  %v2488_v31 = vsel %vm2463_vm3, %v7202_v24, -inf  ;;  %5544 = vmatprep.subr.bf16.mxu0 %v8455_v6  ;;  %v2336_v28 = vadd.f32 %v7206_v15, %v965_v26  ;;  %v2334_v26 = vadd.f32 %v7206_v15, %v7196_v2  ;;  %v2482_v2 = vsel %vm2463_vm3, %v7280_v45, -inf }
 0x3b0   :  { %v5417_v0 = vpop.f32.mrf.mxu0  ;;  %2489 = vmax.xlane.f32.xlu0 %v2488_v31  ;;  %v2337_v12 = vadd.f32 %v7180_v48, %v1012_v30 }
 0x3b1   :  { %v5422_v38 = vpop.f32.mrf.mxu1  ;;  %v7298_v0 = vld [vmem:[#allocation7 + $0x38] sm:$0xff] }
 0x3b2   :  { %v1062_v40 = vpop.f32.mrf.mxu0  ;;  %v7301_v34 = vadd.f32 %v7199_v7, %v2337_v12 }
 0x3b3   :  { %v7218_v10 = vpop.f32.mrf.mxu1  ;;  %v2339_v46 = vadd.f32 %v7180_v48, %v1062_v40  ;;  %5541 = vmatmul.mubr.msk.bf16.vlgmr.msra.gmra.mxu1 %vm721_vm2, %v6996_v1 }
 0x3b4   :  { %v2021_v49 = vpop.permute.xlu0 %2020  ;;  %v5428_v23 = vpop.f32.mrf.mxu0  ;;  %2471 = vmax.xlane.f32.xlu0 %v2470_v36  ;;  %5552 = vmatprep.mubr.msk.bf16.mxu1 %vm6490_vm1, %v8455_v6  ;;  %v2338_v40 = vadd.f32 %v7206_v15, %v7218_v10  ;;  %v2494_v10 = vsel %vm2463_vm3, %v7301_v34, -inf }
 0x3b5   :  { %v7236_v1 = vadd.f32 %v7227_v19, %v2339_v46  ;;  %v2026_v29 = vsel %vm721_vm2, %v2021_v49, 0  ;;  %v5423_v53 = vpop.f32.mrf.mxu1  ;;  %5535 = vmatmul.mubr.msk.bf16.vlgmr.msra.gmra.mxu0 %vm721_vm2, %v7002_v41  ;;  %v7251_v41 = vadd.f32 %v7215_v39, %v2336_v28 }
 0x3b6   :  { %5545 = vmatpush3.bf16.xpose.msra.mxu0 %v2026_v29  ;;  %v1065_v56 = vpop.f32.mrf.mxu0  ;;  %5546 = vmatprep.mubr.msk.bf16.mxu0 %vm6490_vm1, %v8455_v6 }
 0x3b7   :  { %v1112_v37 = vpop.f32.mrf.mxu1  ;;  %v2500_v3 = vsel %vm2463_vm3, %v7236_v1, -inf  ;;  %5556 = vmatprep.subr.bf16.mxu0 %v8455_v6  ;;  %v2340_v18 = vadd.f32 %v7206_v15, %v1065_v56  ;;  %v2491_v9 = vsel %vm2463_vm3, %v7251_v41, -inf }
 0x3b8   :  { %v2071_v32 = vpop.permute.xlu1 %2070  ;;  %v5429_v54 = vpop.f32.mrf.mxu0  ;;  %2501 = vmax.xlane.f32.xlu0 %v2500_v3  ;;  %v2341_v38 = vadd.f32 %v7180_v48, %v1112_v37 }
 0x3b9   :  { %v2076_v27 = vsel %vm721_vm2, %v2071_v32, 0  ;;  %v5434_v20 = vpop.f32.mrf.mxu1  ;;  %v7272_v47 = vadd.f32 %v7265_v11, %v2340_v18 }
 0x3ba   :  { %5551 = vmatpush3.bf16.xpose.msra.mxu1 %v2076_v27  ;;  %2468 = vmax.xlane.f32.xlu1 %v2467_v50  ;;  %v7322_v36 = vadd.f32 %v7267_v60, %v2341_v38  ;;  %v7370_v50 = vld [vmem:[#allocation5 + $0x10] sm:$0xff] }
 0x3bb   :  { %v1115_v16 = vpop.f32.mrf.mxu1  ;;  %5562 = vmatprep.subr.bf16.mxu1 %v8455_v6  ;;  %v2503_v30 = vsel %vm2463_vm3, %v7272_v47, -inf }
 0x3bc   :  { %v2121_v62 = vpop.permute.xlu0 %2120  ;;  %2474 = vmax.xlane.f32.xlu0 %v2473_v35  ;;  %v2342_v23 = vadd.f32 %v7206_v15, %v1115_v16  ;;  %v2506_v53 = vsel %vm2463_vm3, %v7322_v36, -inf }
 0x3bd   :  { %v2126_v59 = vsel %vm721_vm2, %v2121_v62, 0  ;;  %v5435_v5 = vpop.f32.mrf.mxu1  ;;  %5547 = vmatmul.mubr.msk.bf16.vlgmr.msra.gmra.mxu0 %vm721_vm2, %v7015_v17  ;;  %v7289_v17 = vadd.f32 %v7265_v11, %v2332_v21 }
 0x3be   :  { %2492 = vmax.xlane.f32.xlu1 %v2491_v9  ;;  %5557 = vmatpush3.bf16.xpose.msra.mxu0 %v2126_v59  ;;  %v7342_v15 = vadd.f32 %v7298_v0, %v2342_v23  ;;  %v7375_v59 = vld [vmem:[#allocation5 + $0x18] sm:$0xff] }
 0x3bf   :  { %5558 = vmatprep.mubr.msk.bf16.mxu0 %vm6490_vm1, %v8455_v6  ;;  %5568 = vmatprep.subr.bf16.mxu0 %v8455_v6  ;;  %v2479_v48 = vsel %vm2463_vm3, %v7289_v17, -inf }
 0x3c0   :  { %v2171_v13 = vpop.permute.xlu1 %2170  ;;  %2477 = vmax.xlane.f32.xlu0 %v2476_v25  ;;  %v2509_v37 = vsel %vm2463_vm3, %v7342_v15, -inf }
 0x3c1   :  { %v2176_v31 = vsel %vm721_vm2, %v2171_v13, 0  ;;  %5553 = vmatmul.mubr.msk.bf16.vlgmr.msra.gmra.mxu1 %vm721_vm2, %v7025_v63  ;;  %v7310_v63 = vadd.f32 %v7298_v0, %v2334_v26 }
 0x3c2   :  { %5563 = vmatpush3.bf16.xpose.msra.mxu1 %v2176_v31  ;;  %2504 = vmax.xlane.f32.xlu1 %v2503_v30 }
 0x3c3   :  { %5564 = vmatprep.mubr.msk.bf16.mxu1 %vm6490_vm1, %v8455_v6  ;;  %5574 = vmatprep.subr.bf16.mxu1 %v8455_v6  ;;  %v2485_v29 = vsel %vm2463_vm3, %v7310_v63, -inf }
 0x3c4   :  { %2483 = vmax.xlane.f32.xlu0 %v2482_v2 }
 0x3c5   :  { %v2221_v43 = vpop.permute.xlu0 %2220  ;;  %5559 = vmatmul.mubr.msk.bf16.vlgmr.msra.gmra.mxu0 %vm721_vm2, %v7035_v8  ;;  %v7328_v8 = vadd.f32 %v7225_v51, %v2338_v40 }
 0x3c6   :  { %v2226_v46 = vsel %vm721_vm2, %v2221_v43, 0  ;;  %2480 = vmax.xlane.f32.xlu1 %v2479_v48  ;;  %5570 = vmatprep.mubr.msk.bf16.mxu0 %vm6490_vm1, %v8455_v6 }
 0x3c7   :  { %5569 = vmatpush3.bf16.xpose.msra.mxu0 %v2226_v46 }
 0x3c8   :  { %v2271_v49 = vpop.permute.xlu1 %2270  ;;  %2495 = vmax.xlane.f32.xlu0 %v2494_v10  ;;  %5580 = vmatprep.subr.bf16.mxu0 %v8455_v6 }
 0x3c9   :  { %v2276_v28 = vsel %vm721_vm2, %v2271_v49, 0  ;;  %5565 = vmatmul.mubr.msk.bf16.vlgmr.msra.gmra.mxu1 %vm721_vm2, %v7045_v14  ;;  %v2497_v14 = vsel %vm2463_vm3, %v7328_v8, -inf  ;;  %v3201_v56 = vpop.permute.xlu0 %3200 }
 0x3ca   :  { %5575 = vmatpush3.bf16.xpose.msra.mxu1 %v2276_v28  ;;  %2486 = vmax.xlane.f32.xlu1 %v2485_v29 }
 0x3cb   :  { %5576 = vmatprep.mubr.msk.bf16.mxu1 %vm6490_vm1, %v8455_v6  ;;  %5586 = vmatprep.subr.bf16.mxu1 %v8455_v6 }
 0x3cc   :  { %2507 = vmax.xlane.f32.xlu0 %v2506_v53  ;;  %v3248_v61 = vpop.permute.xlu1 %3247 }
 0x3cd   :  { %v7358_v3 = vpop.permute.xlu0 %3294 }
 0x3ce   :  { %5571 = vmatmul.mubr.msk.bf16.vlgmr.msra.gmra.mxu0 %vm721_vm2, %v7056_v33  ;;  %2498 = vmax.xlane.f32.xlu1 %v2497_v14  ;;  %8483 = vst [vmem:[#allocation18_spill] sm:$0xff] %v7358_v3 }
 0x3cf   :  { %5581 = vmatpush3.bf16.msra.mxu0 %v3201_v56  ;;  %5582 = vmatprep.mubr.msk.bf16.mxu0 %vm6490_vm1, %v8455_v6 }
 0x3d0   :  { %5592 = vmatprep.subr.bf16.mxu0 %v8455_v6  ;;  %v7360_v32 = vpop.permute.xlu1 %3341 }
 0x3d1   :  { %5577 = vmatmul.mubr.msk.bf16.vlgmr.msra.gmra.mxu1 %vm721_vm2, %v7063_v42  ;;  %8484 = vst [vmem:[#allocation19_spill] sm:$0xff] %v7360_v32  ;;  %v7362_v54 = vpop.permute.xlu0 %3388 }
 0x3d2   :  { %5587 = vmatpush3.bf16.msra.mxu1 %v3248_v61  ;;  %2510 = vmax.xlane.f32.xlu1 %v2509_v37  ;;  %8485 = vst [vmem:[#allocation20_spill] sm:$0xff] %v7362_v54 }
 0x3d3   :  { %5588 = vmatprep.mubr.msk.bf16.mxu1 %vm6490_vm1, %v8455_v6  ;;  %5598 = vmatprep.subr.bf16.mxu1 %v8455_v6 }
 0x3d4   :  { %v7364_v18 = vpop.permute.xlu1 %3435 }
 0x3d5   :  { %8486 = vst [vmem:[#allocation21_spill] sm:$0xff] %v7364_v18  ;;  %v7366_v27 = vpop.permute.xlu0 %3482 }
 0x3d6   :  { %8487 = vst [vmem:[#allocation22_spill] sm:$0xff] %v7366_v27 }
 0x3d8   :  { %v7368_v20 = vpop.permute.xlu1 %3529 }
 0x3d9   :  { %8488 = vst [vmem:[#allocation23_spill] sm:$0xff] %v7368_v20  ;;  %v7372_v16 = vpop.permute.xlu0 %3576 }
 0x3da   :  { %8489 = vst [vmem:[#allocation24_spill] sm:$0xff] %v7372_v16 }
 0x3dc   :  { %v7381_v12 = vpop.permute.xlu1 %3623 }
 0x3dd   :  { %8490 = vst [vmem:[#allocation25_spill] sm:$0xff] %v7381_v12  ;;  %v7389_v2 = vpop.permute.xlu0 %3764 }
 0x3de   :  { %8491 = vst [vmem:[#allocation26_spill] sm:$0xff] %v7389_v2 }
 0x3e0   :  { %v7399_v23 = vpop.permute.xlu1 %3717 }
 0x3e1   :  { %8492 = vst [vmem:[#allocation27_spill] sm:$0xff] %v7399_v23  ;;  %v7404_v53 = vpop.permute.xlu0 %3952 }
 0x3e2   :  { %8493 = vst [vmem:[#allocation28_spill] sm:$0xff] %v7404_v53 }
 0x3f8   :  { %v1212_v44 = vpop.f32.mrf.mxu1 }
 0x3f9   :  { %v2345_v35 = vadd.f32 %v7370_v50, %v1212_v44 }
 0x3fa   :  { %v1162_v62 = vpop.f32.mrf.mxu0  ;;  %v5446_v21 = vpop.f32.mrf.mxu1 }
 0x3fb   :  { %v7378_v5 = vadd.f32 %v7199_v7, %v2345_v35  ;;  %v2343_v9 = vadd.f32 %v7370_v50, %v1162_v62  ;;  %v7410_v62 = vpop.permute.xlu1 %3811 }
 0x3fc   :  { %v1215_v25 = vpop.f32.mrf.mxu1  ;;  %v5440_v31 = vpop.f32.mrf.mxu0  ;;  %8494 = vst [vmem:[#allocation29_spill] sm:$0xff] %v7410_v62  ;;  %v7495_v62 = vld [vmem:[#allocation5 + $0x28] sm:$0xff] }
 0x3fd   :  { %v7384_v13 = vadd.f32 %v7183_v4, %v2343_v9  ;;  %v2346_v26 = vadd.f32 %v7375_v59, %v1215_v25  ;;  %v2518_v30 = vsel %vm2463_vm3, %v7378_v5, -inf }
 0x3fe   :  { %v5447_v38 = vpop.f32.mrf.mxu1  ;;  %2519 = vmax.xlane.f32.xlu0 %v2518_v30  ;;  %v1165_v43 = vpop.f32.mrf.mxu0 }
 0x3ff   :  { %v7392_v40 = vadd.f32 %v7225_v51, %v2346_v26  ;;  %v2344_v48 = vadd.f32 %v7375_v59, %v1165_v43  ;;  %v2512_v49 = vsel %vm2463_vm3, %v7384_v13, -inf  ;;  %v7416_v30 = vpop.permute.xlu0 %4140 }
 0x400   :  { %v5441_v46 = vpop.f32.mrf.mxu0  ;;  %8495 = vst [vmem:[#allocation30_spill] sm:$0xff] %v7416_v30 }
 0x401   :  { %v2521_v10 = vsel %vm2463_vm3, %v7392_v40, -inf  ;;  %v7402_v28 = vadd.f32 %v7215_v39, %v2344_v48 }
 0x402   :  { %2522 = vmax.xlane.f32.xlu1 %v2521_v10  ;;  %2513 = vmax.xlane.f32.xlu0 %v2512_v49  ;;  %v1262_v29 = vpop.f32.mrf.mxu0 }
 0x403   :  { %v2515_v56 = vsel %vm2463_vm3, %v7402_v28, -inf  ;;  %v2347_v37 = vadd.f32 %v7370_v50, %v1262_v29 }
 0x404   :  { %v5452_v14 = vpop.f32.mrf.mxu0 }
 0x405   :  { %v7419_v38 = vadd.f32 %v7227_v19, %v2347_v37  ;;  %v7427_v14 = vpop.permute.xlu1 %3905 }
 0x406   :  { %v1312_v61 = vpop.f32.mrf.mxu1  ;;  %2516 = vmax.xlane.f32.xlu1 %v2515_v56  ;;  %v1265_v44 = vpop.f32.mrf.mxu0  ;;  %8496 = vst [vmem:[#allocation31_spill] sm:$0xff] %v7427_v14 }
 0x407   :  { %v2349_v35 = vadd.f32 %v7370_v50, %v1312_v61  ;;  %v2348_v26 = vadd.f32 %v7375_v59, %v1265_v44 }
 0x408   :  { %v5458_v21 = vpop.f32.mrf.mxu1  ;;  %v5453_v25 = vpop.f32.mrf.mxu0 }
 0x409   :  { %v7413_v9 = vadd.f32 %v7267_v60, %v2349_v35  ;;  %v7430_v56 = vadd.f32 %v7265_v11, %v2348_v26  ;;  %v2524_v25 = vsel %vm2463_vm3, %v7419_v38, -inf }
 0x40a   :  { %v1315_v31 = vpop.f32.mrf.mxu1  ;;  %v1362_v48 = vpop.f32.mrf.mxu0 }
 0x40b   :  { %v2350_v43 = vadd.f32 %v7375_v59, %v1315_v31  ;;  %v2530_v46 = vsel %vm2463_vm3, %v7413_v9, -inf  ;;  %v2351_v37 = vadd.f32 %v7370_v50, %v1362_v48  ;;  %v2527_v48 = vsel %vm2463_vm3, %v7430_v56, -inf }
 0x40c   :  { %v5459_v10 = vpop.f32.mrf.mxu1  ;;  %2531 = vmax.xlane.f32.xlu0 %v2530_v46  ;;  %v5464_v29 = vpop.f32.mrf.mxu0 }
 0x40d   :  { %v7425_v49 = vadd.f32 %v7298_v0, %v2350_v43  ;;  %v7438_v43 = vpop.permute.xlu0 %4328  ;;  %v7446_v29 = vadd.f32 %v7183_v4, %v2351_v37 }
 0x40e   :  { %v1412_v61 = vpop.f32.mrf.mxu1  ;;  %v1365_v44 = vpop.f32.mrf.mxu0  ;;  %8497 = vst [vmem:[#allocation32_spill] sm:$0xff] %v7438_v43 }
 0x40f   :  { %v2353_v35 = vadd.f32 %v7370_v50, %v1412_v61  ;;  %v2533_v21 = vsel %vm2463_vm3, %v7425_v49, -inf  ;;  %v2352_v61 = vadd.f32 %v7375_v59, %v1365_v44 }
 0x410   :  { %v5470_v31 = vpop.f32.mrf.mxu1  ;;  %2534 = vmax.xlane.f32.xlu1 %v2533_v21  ;;  %2525 = vmax.xlane.f32.xlu0 %v2524_v25  ;;  %v5465_v46 = vpop.f32.mrf.mxu0 }
 0x411   :  { %v7441_v26 = vadd.f32 %v7199_v7, %v2353_v35  ;;  %v7452_v25 = vpop.permute.xlu1 %3999  ;;  %v7458_v53 = vpop.permute.xlu0 %4516  ;;  %v7461_v44 = vadd.f32 %v7215_v39, %v2352_v61 }
 0x412   :  { %v1415_v10 = vpop.f32.mrf.mxu1  ;;  %8498 = vst [vmem:[#allocation33_spill] sm:$0xff] %v7452_v25  ;;  %8499 = vst [vmem:[#allocation34_spill] sm:$0xff] %v7458_v53 }
 0x413   :  { %v2354_v6 = vadd.f32 %v7375_v59, %v1415_v10  ;;  %v1462_v31 = vpop.f32.mrf.mxu0  ;;  %v2542_v21 = vsel %vm2463_vm3, %v7441_v26, -inf }
 0x414   :  { %v5471_v35 = vpop.f32.mrf.mxu1  ;;  %2528 = vmax.xlane.f32.xlu1 %v2527_v48  ;;  %2543 = vmax.xlane.f32.xlu0 %v2542_v21  ;;  %v2355_v37 = vadd.f32 %v7370_v50, %v1462_v31  ;;  %v2536_v48 = vsel %vm2463_vm3, %v7446_v29, -inf }
 0x415   :  { %v7455_v46 = vadd.f32 %v7225_v51, %v2354_v6  ;;  %v5476_v43 = vpop.f32.mrf.mxu0  ;;  %v7471_v21 = vpop.permute.xlu1 %4093 }
 0x416   :  { %v1512_v30 = vpop.f32.mrf.mxu1  ;;  %8500 = vst [vmem:[#allocation35_spill] sm:$0xff] %v7471_v21  ;;  %v7474_v61 = vadd.f32 %v7227_v19, %v2355_v37 }
 0x417   :  { %v1465_v10 = vpop.f32.mrf.mxu0  ;;  %v2357_v14 = vadd.f32 %v7370_v50, %v1512_v30  ;;  %v2545_v35 = vsel %vm2463_vm3, %v7455_v46, -inf }
 0x418   :  { %v5482_v6 = vpop.f32.mrf.mxu1  ;;  %2546 = vmax.xlane.f32.xlu1 %v2545_v35  ;;  %2537 = vmax.xlane.f32.xlu0 %v2536_v48  ;;  %v2356_v50 = vadd.f32 %v7375_v59, %v1465_v10 }
 0x419   :  { %v7469_v43 = vadd.f32 %v7267_v60, %v2357_v14  ;;  %v5477_v31 = vpop.f32.mrf.mxu0  ;;  %v2539_v6 = vsel %vm2463_vm3, %v7461_v44, -inf  ;;  %v7482_v14 = vld [vmem:[#allocation5 + $0x20] sm:$0xff] }
 0x41a   :  { %v1515_v53 = vpop.f32.mrf.mxu1  ;;  %v7484_v31 = vpop.permute.xlu0 %3670 }
 0x41b   :  { %v2358_v30 = vadd.f32 %v7375_v59, %v1515_v53  ;;  %v1562_v25 = vpop.f32.mrf.mxu0  ;;  %v2554_v35 = vsel %vm2463_vm3, %v7469_v43, -inf  ;;  %8501 = vst [vmem:[#allocation36_spill] sm:$0xff] %v7484_v31  ;;  %v2548_v59 = vsel %vm2463_vm3, %v7474_v61, -inf  ;;  %v7492_v53 = vadd.f32 %v7265_v11, %v2356_v50 }
 0x41c   :  { %v5483_v48 = vpop.f32.mrf.mxu1  ;;  %2540 = vmax.xlane.f32.xlu1 %v2539_v6  ;;  %2555 = vmax.xlane.f32.xlu0 %v2554_v35  ;;  %v2359_v33 = vadd.f32 %v7482_v14, %v1562_v25 }
 0x41d   :  { %v7487_v37 = vadd.f32 %v7298_v0, %v2358_v30  ;;  %v5488_v10 = vpop.f32.mrf.mxu0  ;;  %v7500_v30 = vpop.permute.xlu1 %4187 }
 0x41e   :  { %v1612_v21 = vpop.f32.mrf.mxu1  ;;  %8502 = vst [vmem:[#allocation37_spill] sm:$0xff] %v7500_v30  ;;  %v7506_v31 = vpop.permute.xlu0 %3858  ;;  %v7509_v23 = vadd.f32 %v7183_v4, %v2359_v33 }
 0x41f   :  { %v1565_v42 = vpop.f32.mrf.mxu0  ;;  %v2361_v6 = vadd.f32 %v7482_v14, %v1612_v21  ;;  %v2557_v35 = vsel %vm2463_vm3, %v7487_v37, -inf  ;;  %8503 = vst [vmem:[#allocation38_spill] sm:$0xff] %v7506_v31 }
 0x420   :  { %v5494_v48 = vpop.f32.mrf.mxu1  ;;  %2558 = vmax.xlane.f32.xlu1 %v2557_v35  ;;  %2549 = vmax.xlane.f32.xlu0 %v2548_v59  ;;  %v2360_v2 = vadd.f32 %v7495_v62, %v1565_v42  ;;  %8504 = vst [vmem:[#allocation39_spill] sm:$0xff] %v7509_v23 }
 0x421   :  { %v7503_v10 = vadd.f32 %v7199_v7, %v2361_v6  ;;  %v5489_v50 = vpop.f32.mrf.mxu0  ;;  %v2551_v48 = vsel %vm2463_vm3, %v7492_v53, -inf }
 0x422   :  { %v1615_v25 = vpop.f32.mrf.mxu1  ;;  %v7519_v50 = vpop.permute.xlu1 %4281  ;;  %v7522_v33 = vadd.f32 %v7215_v39, %v2360_v2 }
 0x423   :  { %v2362_v21 = vadd.f32 %v7495_v62, %v1615_v25  ;;  %v1662_v12 = vpop.f32.mrf.mxu0  ;;  %v2566_v59 = vsel %vm2463_vm3, %v7503_v10, -inf  ;;  %8506 = vst [vmem:[#allocation41_spill] sm:$0xff] %v7519_v50 }
 0x424   :  { %v5495_v6 = vpop.f32.mrf.mxu1  ;;  %2552 = vmax.xlane.f32.xlu1 %v2551_v48  ;;  %2567 = vmax.xlane.f32.xlu0 %v2566_v59  ;;  %8507 = vst [vmem:[#allocation42_spill] sm:$0xff] %v7522_v33  ;;  %v2363_v30 = vadd.f32 %v7482_v14, %v1662_v12  ;;  %v2560_v48 = vsel %vm2463_vm3, %v7509_v23, -inf  ;;  %v7530_v59 = vpop.permute.xlu0 %4046  ;;  %v2563_v12 = vsel %vm2463_vm3, %v7522_v33, -inf }
 0x425   :  { %v7517_v42 = vadd.f32 %v7225_v51, %v2362_v21  ;;  %v5500_v35 = vpop.f32.mrf.mxu0  ;;  %8508 = vst [vmem:[#allocation43_spill] sm:$0xff] %v7530_v59 }
 0x426   :  { %v1712_v25 = vpop.f32.mrf.mxu1 }
 0x427   :  { %8505 = vst [vmem:[#allocation40_spill] sm:$0xff] %v7517_v42  ;;  %v1665_v31 = vpop.f32.mrf.mxu0  ;;  %v2365_v20 = vadd.f32 %v7482_v14, %v1712_v25  ;;  %v2569_v6 = vsel %vm2463_vm3, %v7517_v42, -inf  ;;  %v7538_v25 = vadd.f32 %v7227_v19, %v2363_v30 }
 0x428   :  { %v5506_v21 = vpop.f32.mrf.mxu1  ;;  %2570 = vmax.xlane.f32.xlu1 %v2569_v6  ;;  %2561 = vmax.xlane.f32.xlu0 %v2560_v48  ;;  %v2364_v16 = vadd.f32 %v7495_v62, %v1665_v31  ;;  %v7544_v48 = vpop.permute.xlu1 %4375 }
 0x429   :  { %v7533_v2 = vadd.f32 %v7267_v60, %v2365_v20  ;;  %v5501_v35 = vpop.f32.mrf.mxu0  ;;  %8510 = vst [vmem:[#allocation45_spill] sm:$0xff] %v7538_v25  ;;  %8511 = vst [vmem:[#allocation46_spill] sm:$0xff] %v7544_v48  ;;  %v7549_v30 = vpop.permute.xlu0 %4234 }
 0x42a   :  { %v1715_v50 = vpop.f32.mrf.mxu1  ;;  %8513 = vst [vmem:[#allocation48_spill] sm:$0xff] %v7549_v30  ;;  %v7552_v31 = vadd.f32 %v7265_v11, %v2364_v16 }
 0x42b   :  { %8509 = vst [vmem:[#allocation44_spill] sm:$0xff] %v7533_v2  ;;  %v2366_v18 = vadd.f32 %v7495_v62, %v1715_v50  ;;  %v1762_v21 = vpop.f32.mrf.mxu0  ;;  %v2578_v6 = vsel %vm2463_vm3, %v7533_v2, -inf }
 0x42c   :  { %v5507_v20 = vpop.f32.mrf.mxu1  ;;  %2564 = vmax.xlane.f32.xlu1 %v2563_v12  ;;  %2579 = vmax.xlane.f32.xlu0 %v2578_v6  ;;  %8514 = vst [vmem:[#allocation49_spill] sm:$0xff] %v7552_v31  ;;  %v7560_v6 = vpop.permute.xlu1 %4469  ;;  %v2575_v16 = vsel %vm2463_vm3, %v7552_v31, -inf }
 0x42d   :  { %v7547_v35 = vadd.f32 %v7298_v0, %v2366_v18  ;;  %v5512_v59 = vpop.f32.mrf.mxu0  ;;  %v2572_v20 = vsel %vm2463_vm3, %v7538_v25, -inf  ;;  %8515 = vst [vmem:[#allocation50_spill] sm:$0xff] %v7560_v6 }
 0x42e   :  { %v1812_v27 = vpop.f32.mrf.mxu1 }
 0x42f   :  { %8512 = vst [vmem:[#allocation47_spill] sm:$0xff] %v7547_v35  ;;  %v7554_v50 = vpop.f32.mrf.mxu0  ;;  %v2581_v54 = vsel %vm2463_vm3, %v7547_v35, -inf }
 0x430   :  { %v5518_v12 = vpop.f32.mrf.mxu1  ;;  %2582 = vmax.xlane.f32.xlu1 %v2581_v54  ;;  %2573 = vmax.xlane.f32.xlu0 %v2572_v20  ;;  %v7569_v54 = vpop.permute.xlu1 %4563 }
 0x431   :  { %v5513_v18 = vpop.f32.mrf.mxu0  ;;  %8516 = vst [vmem:[#allocation51_spill] sm:$0xff] %v7569_v54 }
 0x432   :  { %v1815_v59 = vpop.f32.mrf.mxu1 }
 0x433   :  { %v7562_v48 = vpop.f32.mrf.mxu0  ;;  %v2466_v30 = vpop.xlane.xlu0 %2465 }
 0x434   :  { %v2656_v32 = vsub.f32 %v7188_v22, %v2466_v30  ;;  %v5519_v3 = vpop.f32.mrf.mxu1  ;;  %2576 = vmax.xlane.f32.xlu1 %v2575_v16 }
 0x435   :  { %v5524_v35 = vpop.f32.mrf.mxu0  ;;  %v7574_v3 = vpop.permute.xlu1 %4422 }
 0x436   :  { %v2720_v2 = vmul.f32 1.442695, %v2656_v32  ;;  %v1912_v25 = vpop.f32.mrf.mxu1  ;;  %8517 = vst [vmem:[#allocation52_spill] sm:$0xff] %v7574_v3 }
 0x437   :  { %v7567_v12 = vpop.f32.mrf.mxu0 }
 0x438   :  { %6090 = vpow2.f32 %v2720_v2  ;;  %v5530_v20 = vpop.f32.mrf.mxu1 }
 0x439   :  { %v5525_v18 = vpop.f32.mrf.mxu0  ;;  %v2490_v6 = vpop.xlane.xlu0 %2489 }
 0x43a   :  { %v7571_v33 = vpop.f32.mrf.mxu1  ;;  %v2664_v42 = vsub.f32 %v7202_v24, %v2490_v6 }
 0x43c   :  { %v2736_v31 = vmul.f32 1.442695, %v2664_v42  ;;  %v5531_v23 = vpop.f32.mrf.mxu1 }
 0x43d   :  { %v2472_v22 = vpop.xlane.xlu0 %2471 }
 0x43e   :  { %6092 = vpow2.f32 %v2736_v31  ;;  %v2658_v32 = vsub.f32 %v7209_v55, %v2472_v22  ;;  %v2369_v55 = vadd.f32 %v7482_v14, %v1812_v27 }
 0x440   :  { %v2724_v30 = vmul.f32 1.442695, %v2658_v32  ;;  %v7589_v32 = vadd.f32 %v7199_v7, %v2369_v55 }
 0x441   :  { %v2502_v35 = vpop.xlane.xlu0 %2501 }
 0x442   :  { %v2668_v16 = vsub.f32 %v7236_v1, %v2502_v35  ;;  %6094 = vpow2.f32 %v2724_v30 }
 0x443   :  { %v2469_v2 = vpop.xlane.xlu1 %2468 }
 0x444   :  { %v2657_v20 = vsub.f32 %v7232_v52, %v2469_v2  ;;  %v2744_v23 = vmul.f32 1.442695, %v2668_v16  ;;  %v2367_v52 = vadd.f32 %v7482_v14, %v1762_v21  ;;  %v2590_v21 = vsel %vm2463_vm3, %v7589_v32, -inf }
 0x445   :  { %v7579_v18 = vpop.eup %6090  ;;  %v2475_v42 = vpop.xlane.xlu0 %2474 }
 0x446   :  { %v2722_v54 = vmul.f32 1.442695, %v2657_v20  ;;  %v2848_v24 = vsel %vm2463_vm3, %v7579_v18, 0.0  ;;  %v2659_v27 = vsub.f32 %v7244_v57, %v2475_v42  ;;  %v2370_v42 = vadd.f32 %v7495_v62, %v1815_v59 }
 0x447   :  { %2849 = vadd.xlane.f32.xlu0 %v2848_v24  ;;  %v2493_v31 = vpop.xlane.xlu1 %2492  ;;  %v2368_v59 = vadd.f32 %v7495_v62, %v7554_v50 }
 0x448   :  { %6096 = vpow2.f32 %v2722_v54  ;;  %v2665_v6 = vsub.f32 %v7251_v41, %v2493_v31  ;;  %v7595_v41 = vadd.f32 %v7183_v4, %v2367_v52  ;;  %v2726_v2 = vmul.f32 1.442695, %v2659_v27 }
 0x449   :  { %6098 = vpow2.f32 %v2744_v23  ;;  %v2478_v30 = vpop.xlane.xlu0 %2477  ;;  %v7632_v50 = vadd.f32 %v7215_v39, %v2368_v59 }
 0x44a   :  { %v2738_v1 = vmul.f32 1.442695, %v2665_v6  ;;  %v2660_v16 = vsub.f32 %v7258_v58, %v2478_v30  ;;  %v2584_v31 = vsel %vm2463_vm3, %v7595_v41, -inf }
 0x44b   :  { %v7585_v22 = vpop.eup %6092  ;;  %v2505_v54 = vpop.xlane.xlu1 %2504 }
 0x44c   :  { %8518 = vst [vmem:[#allocation53_spill] sm:$0xff] %v7585_v22  ;;  %6100 = vpow2.f32 %v2738_v1  ;;  %v2872_v35 = vsel %vm2463_vm3, %v7585_v22, 0.0  ;;  %v2669_v20 = vsub.f32 %v7272_v47, %v2505_v54  ;;  %v2728_v23 = vmul.f32 1.442695, %v2660_v16 }
 0x44d   :  { %2873 = vadd.xlane.f32.xlu0 %v2872_v35  ;;  %6102 = vpow2.f32 %v2726_v2  ;;  %v2373_v47 = vadd.f32 %v7482_v14, %v1912_v25  ;;  %v7620_v35 = vadd.f32 %v7225_v51, %v2370_v42  ;;  %v2371_v25 = vadd.f32 %v7482_v14, %v7562_v48 }
 0x44e   :  { %v2746_v58 = vmul.f32 1.442695, %v2669_v20  ;;  %6104 = vpow2.f32 %v2728_v23  ;;  %v2587_v23 = vsel %vm2463_vm3, %v7632_v50, -inf }
 0x44f   :  { %v7601_v24 = vpop.eup %6094  ;;  %v2481_v27 = vpop.xlane.xlu1 %2480  ;;  %v7627_v54 = vadd.f32 %v7267_v60, %v2373_v47  ;;  %v2593_v2 = vsel %vm2463_vm3, %v7620_v35, -inf  ;;  %v7638_v20 = vadd.f32 %v7227_v19, %v2371_v25  ;;  %v2372_v25 = vadd.f32 %v7495_v62, %v7567_v12 }
 0x450   :  { %v2854_v1 = vsel %vm2463_vm3, %v7601_v24, 0.0  ;;  %6106 = vpow2.f32 %v2746_v58  ;;  %v2484_v58 = vpop.xlane.xlu0 %2483 }
 0x451   :  { %2591 = vmax.xlane.f32.xlu0 %v2590_v21  ;;  %v2661_v21 = vsub.f32 %v7289_v17, %v2481_v27  ;;  %v2602_v14 = vsel %vm2463_vm3, %v7627_v54, -inf  ;;  %v2596_v17 = vsel %vm2463_vm3, %v7638_v20, -inf  ;;  %v2662_v59 = vsub.f32 %v7280_v45, %v2484_v58 }
 0x452   :  { %v7668_v45 = vadd.f32 %v7265_v11, %v2372_v25 }
 0x453   :  { %v2730_v48 = vmul.f32 1.442695, %v2661_v21  ;;  %v2487_v27 = vpop.xlane.xlu1 %2486  ;;  %v2732_v21 = vmul.f32 1.442695, %v2662_v59  ;;  %v7679_v59 = vld [vmem:[#allocation5 + $0x38] sm:$0xff] }
 0x454   :  { %v2599_v12 = vsel %vm2463_vm3, %v7668_v45, -inf }
 0x455   :  { %v7605_v57 = vpop.eup %6096  ;;  %2585 = vmax.xlane.f32.xlu0 %v2584_v31  ;;  %6108 = vpow2.f32 %v2730_v48 }
 0x456   :  { %v2851_v55 = vsel %vm2463_vm3, %v7605_v57, 0.0  ;;  %v7610_v6 = vpop.eup %6098  ;;  %6110 = vpow2.f32 %v2732_v21 }
 0x457   :  { %2852 = vadd.xlane.f32.xlu1 %v2851_v55  ;;  %8519 = vst [vmem:[#allocation54_spill] sm:$0xff] %v7610_v6  ;;  %v2884_v16 = vsel %vm2463_vm3, %v7610_v6, 0.0  ;;  %v2374_v55 = vadd.f32 %v7495_v62, %v7571_v33  ;;  %v7672_v62 = vld [vmem:[#allocation5 + $0x30] sm:$0xff] }
 0x459   :  { %v7615_v52 = vpop.eup %6100  ;;  %2855 = vadd.xlane.f32.xlu0 %v2854_v1 }
 0x45a   :  { %8520 = vst [vmem:[#allocation55_spill] sm:$0xff] %v7615_v52  ;;  %v2875_v30 = vsel %vm2463_vm3, %v7615_v52, 0.0  ;;  %v7644_v31 = vpop.eup %6102 }
 0x45b   :  { %2876 = vadd.xlane.f32.xlu1 %v2875_v30  ;;  %v7648_v42 = vpop.eup %6104  ;;  %v2857_v47 = vsel %vm2463_vm3, %v7644_v31, 0.0 }
 0x45c   :  { %v2860_v30 = vsel %vm2463_vm3, %v7648_v42, 0.0 }
 0x45d   :  { %2885 = vadd.xlane.f32.xlu0 %v2884_v16  ;;  %v7654_v1 = vpop.eup %6106  ;;  %v7662_v16 = vadd.f32 %v7298_v0, %v2374_v55 }
 0x45e   :  { %8521 = vst [vmem:[#allocation56_spill] sm:$0xff] %v7654_v1  ;;  %v2887_v33 = vsel %vm2463_vm3, %v7654_v1, 0.0 }
 0x45f   :  { %2594 = vmax.xlane.f32.xlu1 %v2593_v2  ;;  %v2663_v2 = vsub.f32 %v7310_v63, %v2487_v27  ;;  %v2499_v27 = vpop.xlane.xlu1 %2498 }
 0x461   :  { %2603 = vmax.xlane.f32.xlu0 %v2602_v14  ;;  %v2605_v14 = vsel %vm2463_vm3, %v7662_v16, -inf  ;;  %v2734_v48 = vmul.f32 1.442695, %v2663_v2 }
 0x463   :  { %2588 = vmax.xlane.f32.xlu1 %v2587_v23  ;;  %v7676_v23 = vpop.eup %6108  ;;  %6112 = vpow2.f32 %v2734_v48 }
 0x464   :  { %v2863_v21 = vsel %vm2463_vm3, %v7676_v23, 0.0 }
 0x465   :  { %2597 = vmax.xlane.f32.xlu0 %v2596_v17  ;;  %v2496_v17 = vpop.xlane.xlu0 %2495 }
 0x467   :  { %2858 = vadd.xlane.f32.xlu1 %v2857_v47 }
 0x469   :  { %2861 = vadd.xlane.f32.xlu0 %v2860_v30  ;;  %v2666_v30 = vsub.f32 %v7301_v34, %v2496_v17 }
 0x46b   :  { %2888 = vadd.xlane.f32.xlu1 %v2887_v33 }
 0x46f   :  { %2606 = vmax.xlane.f32.xlu1 %v2605_v14 }
 0x473   :  { %v2012_v58 = vpop.f32.mrf.mxu1  ;;  %2600 = vmax.xlane.f32.xlu1 %v2599_v12 }
 0x474   :  { %v2377_v63 = vadd.f32 %v7672_v62, %v2012_v58 }
 0x475   :  { %v1962_v55 = vpop.f32.mrf.mxu0  ;;  %v5542_v47 = vpop.f32.mrf.mxu1 }
 0x476   :  { %v7683_v25 = vadd.f32 %v7199_v7, %v2377_v63  ;;  %v2375_v33 = vadd.f32 %v7672_v62, %v1962_v55  ;;  %v2740_v7 = vmul.f32 1.442695, %v2666_v30  ;;  %v2667_v63 = vsub.f32 %v7328_v8, %v2499_v27  ;;  %v2508_v8 = vpop.xlane.xlu0 %2507 }
 0x477   :  { %v5536_v2 = vpop.f32.mrf.mxu0  ;;  %v2015_v14 = vpop.f32.mrf.mxu1  ;;  %2864 = vadd.xlane.f32.xlu1 %v2863_v21 }
 0x478   :  { %v7689_v48 = vadd.f32 %v7183_v4, %v2375_v33  ;;  %v2378_v12 = vadd.f32 %v7679_v59, %v2015_v14  ;;  %v2614_v34 = vsel %vm2463_vm3, %v7683_v25, -inf  ;;  %v7706_v14 = vpop.eup %6110  ;;  %6114 = vpow2.f32 %v2740_v7 }
 0x479   :  { %v1965_v17 = vpop.f32.mrf.mxu0  ;;  %v5543_v58 = vpop.f32.mrf.mxu1  ;;  %2615 = vmax.xlane.f32.xlu0 %v2614_v34  ;;  %8522 = vst [vmem:[#allocation57_spill] sm:$0xff] %v7706_v14  ;;  %v2742_v27 = vmul.f32 1.442695, %v2667_v63 }
 0x47a   :  { %v7696_v55 = vadd.f32 %v7225_v51, %v2378_v12  ;;  %v2376_v47 = vadd.f32 %v7679_v59, %v1965_v17  ;;  %v2608_v2 = vsel %vm2463_vm3, %v7689_v48, -inf  ;;  %v2511_v34 = vpop.xlane.xlu1 %2510  ;;  %v2866_v17 = vsel %vm2463_vm3, %v7706_v14, 0.0  ;;  %v7712_v58 = vpop.eup %6112 }
 0x47b   :  { %v5537_v21 = vpop.f32.mrf.mxu0  ;;  %8523 = vst [vmem:[#allocation58_spill] sm:$0xff] %v7712_v58  ;;  %6116 = vpow2.f32 %v2742_v27  ;;  %v2869_v14 = vsel %vm2463_vm3, %v7712_v58, 0.0 }
 0x47c   :  { %v7700_v4 = vadd.f32 %v7215_v39, %v2376_v47  ;;  %v2617_v33 = vsel %vm2463_vm3, %v7696_v55, -inf  ;;  %v2670_v47 = vsub.f32 %v7322_v36, %v2508_v8 }
 0x47d   :  { %v2062_v30 = vpop.f32.mrf.mxu0  ;;  %2618 = vmax.xlane.f32.xlu1 %v2617_v33  ;;  %2609 = vmax.xlane.f32.xlu0 %v2608_v2 }
 0x47e   :  { %v2611_v39 = vsel %vm2463_vm3, %v7700_v4, -inf  ;;  %v2379_v7 = vadd.f32 %v7672_v62, %v2062_v30  ;;  %v2748_v36 = vmul.f32 1.442695, %v2670_v47 }
 0x47f   :  { %v5548_v12 = vpop.f32.mrf.mxu0 }
 0x480   :  { %v2671_v12 = vsub.f32 %v7342_v15, %v2511_v34  ;;  %v7724_v27 = vadd.f32 %v7227_v19, %v2379_v7  ;;  %6118 = vpow2.f32 %v2748_v36 }
 0x481   :  { %v2065_v21 = vpop.f32.mrf.mxu0  ;;  %v2112_v3 = vpop.f32.mrf.mxu1  ;;  %2612 = vmax.xlane.f32.xlu1 %v2611_v39  ;;  %2867 = vadd.xlane.f32.xlu0 %v2866_v17 }
 0x482   :  { %v2381_v63 = vadd.f32 %v7672_v62, %v2112_v3  ;;  %8524 = vst [vmem:[#allocation59_spill] sm:$0xff] %v7724_v27  ;;  %v2380_v30 = vadd.f32 %v7679_v59, %v2065_v21  ;;  %v2750_v17 = vmul.f32 1.442695, %v2671_v12 }
 0x483   :  { %v5549_v33 = vpop.f32.mrf.mxu0  ;;  %v5554_v2 = vpop.f32.mrf.mxu1 }
 0x484   :  { %v7719_v6 = vadd.f32 %v7267_v60, %v2381_v63  ;;  %v7734_v19 = vadd.f32 %v7265_v11, %v2380_v30  ;;  %v2620_v2 = vsel %vm2463_vm3, %v7724_v27, -inf  ;;  %6120 = vpow2.f32 %v2750_v17 }
 0x485   :  { %v2115_v8 = vpop.f32.mrf.mxu1  ;;  %v2162_v1 = vpop.f32.mrf.mxu0  ;;  %2870 = vadd.xlane.f32.xlu1 %v2869_v14 }
 0x486   :  { %v2382_v3 = vadd.f32 %v7679_v59, %v2115_v8  ;;  %v2626_v15 = vsel %vm2463_vm3, %v7719_v6, -inf  ;;  %8525 = vst [vmem:[#allocation60_spill] sm:$0xff] %v7734_v19  ;;  %v7741_v8 = vpop.eup %6114  ;;  %v2623_v22 = vsel %vm2463_vm3, %v7734_v19, -inf }
 0x487   :  { %v5555_v34 = vpop.f32.mrf.mxu1  ;;  %v5560_v39 = vpop.f32.mrf.mxu0  ;;  %2627 = vmax.xlane.f32.xlu0 %v2626_v15  ;;  %8526 = vst [vmem:[#allocation61_spill] sm:$0xff] %v7741_v8  ;;  %v2383_v15 = vadd.f32 %v7672_v62, %v2162_v1  ;;  %v6347_v1 = vld [vmem:[#allocation7] sm:$0xff] }
 0x488   :  { %v7731_v63 = vadd.f32 %v7298_v0, %v2382_v3  ;;  %v2520_v47 = vpop.xlane.xlu0 %2519  ;;  %v6346_v34 = vld [vmem:[#allocation7 + $0x10] sm:$0xff] }
 0x489   :  { %v2165_v14 = vpop.f32.mrf.mxu0  ;;  %v2212_v33 = vpop.f32.mrf.mxu1  ;;  %v2674_v11 = vsub.f32 %v7378_v5, %v2520_v47  ;;  %v7754_v47 = vadd.f32 %v6347_v1, %v2383_v15 }
 0x48a   :  { %v2385_v21 = vadd.f32 %v7672_v62, %v2212_v33  ;;  %v2629_v7 = vsel %vm2463_vm3, %v7731_v63, -inf }
 0x48b   :  { %v5566_v12 = vpop.f32.mrf.mxu1  ;;  %v2523_v3 = vpop.xlane.xlu1 %2522  ;;  %2630 = vmax.xlane.f32.xlu1 %v2629_v7  ;;  %2621 = vmax.xlane.f32.xlu0 %v2620_v2  ;;  %v2878_v7 = vsel %vm2463_vm3, %v7741_v8, 0.0 }
 0x48c   :  { %v5561_v36 = vpop.f32.mrf.mxu0  ;;  %v7745_v39 = vadd.f32 %v6346_v34, %v2385_v21  ;;  %v7752_v2 = vpop.eup %6116  ;;  %v2756_v21 = vmul.f32 1.442695, %v2674_v11 }
 0x48d   :  { %v2215_v30 = vpop.f32.mrf.mxu1  ;;  %v2514_v17 = vpop.xlane.xlu0 %2513  ;;  %v2384_v36 = vadd.f32 %v7679_v59, %v2165_v14 }
 0x48e   :  { %v2386_v33 = vadd.f32 %v7679_v59, %v2215_v30  ;;  %v2262_v58 = vpop.f32.mrf.mxu0  ;;  %v2675_v30 = vsub.f32 %v7392_v40, %v2523_v3  ;;  %v2672_v52 = vsub.f32 %v7384_v13, %v2514_v17  ;;  %v2638_v15 = vsel %vm2463_vm3, %v7745_v39, -inf  ;;  %v6348_v3 = vld [vmem:[#allocation7 + $0x8] sm:$0xff] }
 0x48f   :  { %v5567_v12 = vpop.f32.mrf.mxu1  ;;  %2624 = vmax.xlane.f32.xlu1 %v2623_v22  ;;  %2879 = vadd.xlane.f32.xlu0 %v2878_v7  ;;  %v2517_v34 = vpop.xlane.xlu1 %2516  ;;  %v2881_v22 = vsel %vm2463_vm3, %v7752_v2, 0.0  ;;  %6122 = vpow2.f32 %v2756_v21  ;;  %v7767_v11 = vadd.f32 %v6348_v3, %v2384_v36  ;;  %v2632_v17 = vsel %vm2463_vm3, %v7754_v47, -inf }
 0x490   :  { %v5572_v5 = vpop.f32.mrf.mxu0  ;;  %v7760_v8 = vadd.f32 %v7225_v51, %v2386_v33  ;;  %v2673_v14 = vsub.f32 %v7402_v28, %v2517_v34  ;;  %v2758_v13 = vmul.f32 1.442695, %v2675_v30  ;;  %v7771_v12 = vpop.eup %6118  ;;  %v2387_v36 = vadd.f32 %v7672_v62, %v2262_v58  ;;  %v6349_v58 = vld [vmem:[#allocation7 + $0x20] sm:$0xff] }
 0x491   :  { %v2312_v19 = vpop.f32.mrf.mxu1  ;;  %v2752_v5 = vmul.f32 1.442695, %v2672_v52  ;;  %v7778_v34 = vpop.eup %6120 }
 0x492   :  { %v2265_v27 = vpop.f32.mrf.mxu0  ;;  %v2389_v1 = vadd.f32 %v7672_v62, %v2312_v19  ;;  %v2641_v28 = vsel %vm2463_vm3, %v7760_v8, -inf  ;;  %v2754_v30 = vmul.f32 1.442695, %v2673_v14  ;;  %6124 = vpow2.f32 %v2758_v13  ;;  %v6350_v13 = vld [vmem:[#allocation7 + $0x28] sm:$0xff] }
 0x493   :  { %v5578_v7 = vpop.f32.mrf.mxu1  ;;  %2882 = vadd.xlane.f32.xlu1 %v2881_v22  ;;  %2639 = vmax.xlane.f32.xlu0 %v2638_v15  ;;  %v2388_v15 = vadd.f32 %v7679_v59, %v2265_v27  ;;  %v2635_v19 = vsel %vm2463_vm3, %v7767_v11, -inf  ;;  %6126 = vpow2.f32 %v2752_v5  ;;  %v7789_v14 = vadd.f32 %v6349_v58, %v2387_v36 }
 0x494   :  { %v5573_v40 = vpop.f32.mrf.mxu0  ;;  %6128 = vpow2.f32 %v2754_v30  ;;  %v2893_v27 = vsel %vm2463_vm3, %v7778_v34, 0.0 }
 0x495   :  { %v2315_v51 = vpop.f32.mrf.mxu1  ;;  %v2532_v33 = vpop.xlane.xlu0 %2531  ;;  %v7786_v40 = vadd.f32 %v7267_v60, %v2389_v1 }
 0x496   :  { %v2678_v22 = vsub.f32 %v7413_v9, %v2532_v33  ;;  %v2890_v9 = vsel %vm2463_vm3, %v7771_v12, 0.0  ;;  %v7793_v33 = vadd.f32 %v6350_v13, %v2388_v15  ;;  %v2644_v15 = vsel %vm2463_vm3, %v7789_v14, -inf }
 0x497   :  { %v5579_v21 = vpop.f32.mrf.mxu1  ;;  %2642 = vmax.xlane.f32.xlu1 %v2641_v28  ;;  %2633 = vmax.xlane.f32.xlu0 %v2632_v17  ;;  %v2390_v17 = vadd.f32 %v7679_v59, %v2315_v51 }
 0x498   :  { %v2764_v3 = vmul.f32 1.442695, %v2678_v22  ;;  %v2650_v21 = vsel %vm2463_vm3, %v7786_v40, -inf }
 0x499   :  { %v2535_v7 = vpop.xlane.xlu1 %2534  ;;  %v2526_v52 = vpop.xlane.xlu0 %2525  ;;  %v7802_v30 = vadd.f32 %v7298_v0, %v2390_v17 }
 0x49a   :  { %v2676_v62 = vsub.f32 %v7419_v38, %v2526_v52  ;;  %v2679_v60 = vsub.f32 %v7425_v49, %v2535_v7  ;;  %6130 = vpow2.f32 %v2764_v3  ;;  %v2647_v52 = vsel %vm2463_vm3, %v7793_v33, -inf }
 0x49b   :  { %2636 = vmax.xlane.f32.xlu1 %v2635_v19  ;;  %2891 = vadd.xlane.f32.xlu0 %v2890_v9 }
 0x49c   :  { %v2760_v5 = vmul.f32 1.442695, %v2676_v62  ;;  %v2766_v59 = vmul.f32 1.442695, %v2679_v60  ;;  %v7806_v7 = vpop.eup %6122  ;;  %v2653_v62 = vsel %vm2463_vm3, %v7802_v30, -inf }
 0x49d   :  { %v2529_v1 = vpop.xlane.xlu1 %2528  ;;  %v2544_v22 = vpop.xlane.xlu0 %2543  ;;  %v2902_v13 = vsel %vm2463_vm3, %v7806_v7, 0.0 }
 0x49e   :  { %v2677_v38 = vsub.f32 %v7430_v56, %v2529_v1  ;;  %v2682_v28 = vsub.f32 %v7441_v26, %v2544_v22  ;;  %6132 = vpow2.f32 %v2760_v5 }
 0x49f   :  { %2894 = vadd.xlane.f32.xlu1 %v2893_v27  ;;  %2651 = vmax.xlane.f32.xlu0 %v2650_v21  ;;  %v7814_v58 = vpop.eup %6124 }
 0x4a0   :  { %v2762_v36 = vmul.f32 1.442695, %v2677_v38  ;;  %v2772_v56 = vmul.f32 1.442695, %v2682_v28  ;;  %v7820_v17 = vpop.eup %6126  ;;  %v2905_v38 = vsel %vm2463_vm3, %v7814_v58, 0.0 }
 0x4a1   :  { %v2547_v49 = vpop.xlane.xlu1 %2546  ;;  %v2538_v51 = vpop.xlane.xlu0 %2537  ;;  %v2896_v28 = vsel %vm2463_vm3, %v7820_v17, 0.0 }
 0x4a2   :  { %6134 = vpow2.f32 %v2762_v36  ;;  %v2680_v26 = vsub.f32 %v7446_v29, %v2538_v51  ;;  %v2683_v0 = vsub.f32 %v7455_v46, %v2547_v49  ;;  %v7822_v60 = vpop.eup %6128 }
 0x4a3   :  { %2645 = vmax.xlane.f32.xlu1 %v2644_v15  ;;  %2648 = vmax.xlane.f32.xlu0 %v2647_v52  ;;  %6136 = vpow2.f32 %v2766_v59  ;;  %v2899_v15 = vsel %vm2463_vm3, %v7822_v60, 0.0 }
 0x4a4   :  { %v2768_v19 = vmul.f32 1.442695, %v2680_v26  ;;  %6138 = vpow2.f32 %v2772_v56  ;;  %v2774_v5 = vmul.f32 1.442695, %v2683_v0 }
 0x4a5   :  { %v2541_v9 = vpop.xlane.xlu1 %2540  ;;  %v2556_v3 = vpop.xlane.xlu0 %2555 }
 0x4a6   :  { %v2681_v27 = vsub.f32 %v7461_v44, %v2541_v9  ;;  %v2686_v29 = vsub.f32 %v7469_v43, %v2556_v3  ;;  %6140 = vpow2.f32 %v2768_v19 }
 0x4a7   :  { %2654 = vmax.xlane.f32.xlu1 %v2653_v62  ;;  %2903 = vadd.xlane.f32.xlu0 %v2902_v13  ;;  %v7829_v21 = vpop.eup %6130 }
 0x4a8   :  { %v2770_v46 = vmul.f32 1.442695, %v2681_v27  ;;  %v2780_v44 = vmul.f32 1.442695, %v2686_v29  ;;  %v2914_v52 = vsel %vm2463_vm3, %v7829_v21, 0.0 }
 0x4a9   :  { %v2559_v1 = vpop.xlane.xlu1 %2558  ;;  %v2550_v22 = vpop.xlane.xlu0 %2549 }
 0x4aa   :  { %6142 = vpow2.f32 %v2770_v46  ;;  %v2684_v43 = vsub.f32 %v7474_v61, %v2550_v22  ;;  %v2687_v36 = vsub.f32 %v7487_v37, %v2559_v1 }
 0x4ab   :  { %2906 = vadd.xlane.f32.xlu1 %v2905_v38  ;;  %2897 = vadd.xlane.f32.xlu0 %v2896_v28  ;;  %6144 = vpow2.f32 %v2774_v5  ;;  %v7834_v56 = vpop.eup %6132  ;;  %v8528_v5 = vld [vmem:[#allocation40_spill] sm:$0xff] }
 0x4ac   :  { %v2776_v59 = vmul.f32 1.442695, %v2684_v43  ;;  %6146 = vpow2.f32 %v2780_v44  ;;  %v2782_v19 = vmul.f32 1.442695, %v2687_v36  ;;  %v2908_v62 = vsel %vm2463_vm3, %v7834_v56, 0.0  ;;  %v8529_v36 = vld [vmem:[#allocation42_spill] sm:$0xff] }
 0x4ad   :  { %v2553_v49 = vpop.xlane.xlu1 %2552  ;;  %v2568_v51 = vpop.xlane.xlu0 %2567 }
 0x4ae   :  { %v2685_v61 = vsub.f32 %v7492_v53, %v2553_v49  ;;  %v2690_v26 = vsub.f32 %v7503_v10, %v2568_v51  ;;  %6148 = vpow2.f32 %v2776_v59  ;;  %v8527_v10 = vld [vmem:[#allocation39_spill] sm:$0xff]  ;;  %v8530_v49 = vld [vmem:[#allocation44_spill] sm:$0xff] }
 0x4af   :  { %v7840_v0 = vpop.eup %6134  ;;  %2900 = vadd.xlane.f32.xlu1 %v2899_v15  ;;  %2915 = vadd.xlane.f32.xlu0 %v2914_v52 }
 0x4b0   :  { %v2778_v37 = vmul.f32 1.442695, %v2685_v61  ;;  %v7844_v27 = vpop.eup %6136  ;;  %v2788_v53 = vmul.f32 1.442695, %v2690_v26  ;;  %v2911_v13 = vsel %vm2463_vm3, %v7840_v0, 0.0 }
 0x4b1   :  { %v2571_v9 = vpop.xlane.xlu1 %2570  ;;  %v2562_v3 = vpop.xlane.xlu0 %2561  ;;  %v2917_v43 = vsel %vm2463_vm3, %v7844_v27, 0.0 }
 0x4b2   :  { %6150 = vpow2.f32 %v2778_v37  ;;  %v2688_v29 = vsub.f32 %v8527_v10, %v2562_v3  ;;  %v7849_v46 = vpop.eup %6138  ;;  %v2691_v1 = vsub.f32 %v8528_v5, %v2571_v9 }
 0x4b3   :  { %2912 = vadd.xlane.f32.xlu0 %v2911_v13  ;;  %2909 = vadd.xlane.f32.xlu1 %v2908_v62  ;;  %6152 = vpow2.f32 %v2782_v19  ;;  %v7854_v28 = vpop.eup %6140  ;;  %v2926_v15 = vsel %vm2463_vm3, %v7849_v46, 0.0 }
 0x4b4   :  { %v2784_v22 = vmul.f32 1.442695, %v2688_v29  ;;  %6154 = vpow2.f32 %v2788_v53  ;;  %v2790_v52 = vmul.f32 1.442695, %v2691_v1  ;;  %v2920_v9 = vsel %vm2463_vm3, %v7854_v28, 0.0  ;;  %v8531_v53 = vld [vmem:[#allocation45_spill] sm:$0xff] }
 0x4b5   :  { %v2565_v38 = vpop.xlane.xlu1 %2564  ;;  %v2580_v44 = vpop.xlane.xlu0 %2579 }
 0x4b6   :  { %v2689_v59 = vsub.f32 %v8529_v36, %v2565_v38  ;;  %v2694_v51 = vsub.f32 %v8530_v49, %v2580_v44  ;;  %6156 = vpow2.f32 %v2784_v22  ;;  %v8532_v44 = vld [vmem:[#allocation47_spill] sm:$0xff]  ;;  %v8533_v36 = vld [vmem:[#allocation49_spill] sm:$0xff] }
 0x4b7   :  { %v7860_v61 = vpop.eup %6142  ;;  %2918 = vadd.xlane.f32.xlu1 %v2917_v43  ;;  %2927 = vadd.xlane.f32.xlu0 %v2926_v15 }
 0x4b8   :  { %v2786_v26 = vmul.f32 1.442695, %v2689_v59  ;;  %v7864_v3 = vpop.eup %6144  ;;  %v2796_v62 = vmul.f32 1.442695, %v2694_v51  ;;  %v2923_v29 = vsel %vm2463_vm3, %v7860_v61, 0.0 }
 0x4b9   :  { %v2583_v37 = vpop.xlane.xlu1 %2582  ;;  %v2574_v19 = vpop.xlane.xlu0 %2573  ;;  %v2929_v22 = vsel %vm2463_vm3, %v7864_v3, 0.0 }
 0x4ba   :  { %6158 = vpow2.f32 %v2786_v26  ;;  %v2692_v10 = vsub.f32 %v8531_v53, %v2574_v19  ;;  %v7869_v13 = vpop.eup %6146  ;;  %v2695_v43 = vsub.f32 %v8532_v44, %v2583_v37 }
 0x4bb   :  { %2924 = vadd.xlane.f32.xlu0 %v2923_v29  ;;  %2921 = vadd.xlane.f32.xlu1 %v2920_v9  ;;  %6160 = vpow2.f32 %v2790_v52  ;;  %v7873_v38 = vpop.eup %6148  ;;  %v2938_v49 = vsel %vm2463_vm3, %v7869_v13, 0.0 }
 0x4bc   :  { %v2792_v5 = vmul.f32 1.442695, %v2692_v10  ;;  %6162 = vpow2.f32 %v2796_v62  ;;  %v2798_v52 = vmul.f32 1.442695, %v2695_v43  ;;  %v2932_v37 = vsel %vm2463_vm3, %v7873_v38, 0.0 }
 0x4bd   :  { %v2577_v1 = vpop.xlane.xlu1 %2576 }
 0x4be   :  { %v2693_v59 = vsub.f32 %v8533_v36, %v2577_v1  ;;  %6164 = vpow2.f32 %v2792_v5 }
 0x4bf   :  { %v7879_v51 = vpop.eup %6150  ;;  %2930 = vadd.xlane.f32.xlu1 %v2929_v22  ;;  %2939 = vadd.xlane.f32.xlu0 %v2938_v49 }
 0x4c0   :  { %v2794_v15 = vmul.f32 1.442695, %v2693_v59  ;;  %v7881_v26 = vpop.eup %6152  ;;  %v2935_v19 = vsel %vm2463_vm3, %v7879_v51, 0.0 }
 0x4c1   :  { %v7887_v9 = vpop.eup %6154  ;;  %v2941_v53 = vsel %vm2463_vm3, %v7881_v26, 0.0 }
 0x4c2   :  { %6166 = vpow2.f32 %v2794_v15  ;;  %8534 = vst [vmem:[#allocation39_spill] sm:$0xff] %v7887_v9  ;;  %v2950_v10 = vsel %vm2463_vm3, %v7887_v9, 0.0 }
 0x4c3   :  { %2936 = vadd.xlane.f32.xlu0 %v2935_v19  ;;  %2933 = vadd.xlane.f32.xlu1 %v2932_v37  ;;  %v7889_v62 = vpop.eup %6156  ;;  %6168 = vpow2.f32 %v2798_v52 }
 0x4c4   :  { %v2944_v22 = vsel %vm2463_vm3, %v7889_v62, 0.0 }
 0x4c7   :  { %v7895_v29 = vpop.eup %6158  ;;  %2942 = vadd.xlane.f32.xlu1 %v2941_v53  ;;  %2951 = vadd.xlane.f32.xlu0 %v2950_v10 }
 0x4c8   :  { %v7897_v5 = vpop.eup %6160  ;;  %v2947_v1 = vsel %vm2463_vm3, %v7895_v29, 0.0 }
 0x4c9   :  { %8535 = vst [vmem:[#allocation40_spill] sm:$0xff] %v7897_v5  ;;  %v7903_v44 = vpop.eup %6162  ;;  %v2953_v36 = vsel %vm2463_vm3, %v7897_v5, 0.0 }
 0x4ca   :  { %8536 = vst [vmem:[#allocation42_spill] sm:$0xff] %v7903_v44  ;;  %v2962_v59 = vsel %vm2463_vm3, %v7903_v44, 0.0 }
 0x4cb   :  { %2948 = vadd.xlane.f32.xlu0 %v2947_v1  ;;  %2945 = vadd.xlane.f32.xlu1 %v2944_v22  ;;  %v7905_v43 = vpop.eup %6164 }
 0x4cc   :  { %8537 = vst [vmem:[#allocation44_spill] sm:$0xff] %v7905_v43  ;;  %v2956_v19 = vsel %vm2463_vm3, %v7905_v43, 0.0 }
 0x4cf   :  { %v7911_v49 = vpop.eup %6166  ;;  %2954 = vadd.xlane.f32.xlu1 %v2953_v36  ;;  %2963 = vadd.xlane.f32.xlu0 %v2962_v59 }
 0x4d0   :  { %8538 = vst [vmem:[#allocation45_spill] sm:$0xff] %v7911_v49  ;;  %v2850_v15 = vpop.xlane.xlu0 %2849  ;;  %v2959_v52 = vsel %vm2463_vm3, %v7911_v49, 0.0  ;;  %v7917_v37 = vpop.eup %6168 }
 0x4d1   :  { %8539 = vst [vmem:[#allocation47_spill] sm:$0xff] %v7917_v37  ;;  %v2965_v53 = vsel %vm2463_vm3, %v7917_v37, 0.0  ;;  %6170 = vrcp.f32 %v2850_v15 }
 0x4d3   :  { %2960 = vadd.xlane.f32.xlu0 %v2959_v52  ;;  %2957 = vadd.xlane.f32.xlu1 %v2956_v19 }
 0x4d6   :  { %v7921_v10 = vpop.xlane.xlu0 %2873 }
 0x4d7   :  { %2966 = vadd.xlane.f32.xlu1 %v2965_v53 }
 0x4da   :  { %v2592_v1 = vpop.xlane.xlu0 %2591 }
 0x4db   :  { %v2698_v22 = vsub.f32 %v7589_v32, %v2592_v1 }
 0x4dd   :  { %v2804_v36 = vmul.f32 1.442695, %v2698_v22 }
 0x4de   :  { %v2586_v59 = vpop.xlane.xlu0 %2585  ;;  %v6171_v32 = vpop.eup %6170 }
 0x4df   :  { %6172 = vpow2.f32 %v2804_v36  ;;  %v2696_v44 = vsub.f32 %v7595_v41, %v2586_v59 }
 0x4e0   :  { %v2853_v49 = vpop.xlane.xlu1 %2852 }
 0x4e1   :  { %v2800_v43 = vmul.f32 1.442695, %v2696_v44  ;;  %6174 = vrcp.f32 %v2853_v49 }
 0x4e2   :  { %v2856_v52 = vpop.xlane.xlu0 %2855 }
 0x4e3   :  { %6176 = vpow2.f32 %v2800_v43 }
 0x4e4   :  { %v7925_v19 = vpop.xlane.xlu1 %2876 }
 0x4e6   :  { %v7927_v37 = vpop.xlane.xlu0 %2885 }
 0x4e8   :  { %v2595_v5 = vpop.xlane.xlu1 %2594 }
 0x4e9   :  { %v2699_v53 = vsub.f32 %v7620_v35, %v2595_v5  ;;  %v3104_v35 = vmul.f32 %v6171_v32, %v7579_v18  ;;  %v8540_v18 = vld [vmem:[#allocation18_spill] sm:$0xff] }
 0x4ea   :  { %v2604_v9 = vpop.xlane.xlu0 %2603 }
 0x4eb   :  { %v2806_v1 = vmul.f32 1.442695, %v2699_v53  ;;  %v2702_v15 = vsub.f32 %v7627_v54, %v2604_v9 }
 0x4ec   :  { %v7931_v22 = vpop.eup %6172  ;;  %v2589_v41 = vpop.xlane.xlu1 %2588 }
 0x4ed   :  { %6178 = vpow2.f32 %v2806_v1  ;;  %v2812_v44 = vmul.f32 1.442695, %v2702_v15  ;;  %v2697_v49 = vsub.f32 %v7632_v50, %v2589_v41  ;;  %v2974_v43 = vsel %vm2463_vm3, %v7931_v22, 0.0 }
 0x4ee   :  { %v6175_v36 = vpop.eup %6174  ;;  %2975 = vadd.xlane.f32.xlu0 %v2974_v43  ;;  %v2598_v59 = vpop.xlane.xlu0 %2597  ;;  %6180 = vrcp.f32 %v2856_v52  ;;  %v8541_v52 = vmov 0.0  }
 0x4ef   :  { %v2802_v5 = vmul.f32 1.442695, %v2697_v49  ;;  %v2700_v53 = vsub.f32 %v7638_v20, %v2598_v59  ;;  %v3105_v54 = vmul.f32 %v6175_v36, %v7605_v57  ;;  %6182 = vpow2.f32 %v2812_v44 }
 0x4f0   :  { %v7939_v9 = vpop.eup %6176  ;;  %v2859_v1 = vpop.xlane.xlu1 %2858 }
 0x4f1   :  { %6184 = vpow2.f32 %v2802_v5  ;;  %v2808_v50 = vmul.f32 1.442695, %v2700_v53  ;;  %v3168_v15 = vpack.c.bf16 %v3105_v54, %v3104_v35  ;;  %v2968_v41 = vsel %vm2463_vm3, %v7939_v9, 0.0 }
 0x4f2   :  { %6186 = vrcp.f32 %v2859_v1  ;;  %2969 = vadd.xlane.f32.xlu1 %v2968_v41  ;;  %v2862_v5 = vpop.xlane.xlu0 %2861 }
 0x4f3   :  { %6188 = vpow2.f32 %v2808_v50  ;;  %5583 = vmatmul.mubr.msk.bf16.vlgmr.msra.gmra.mxu0 %vm2463_vm3, %v3168_v15 }
 0x4f4   :  { %5593 = vmatpush3.bf16.msra.mxu0 %v8540_v18  ;;  %v2889_v20 = vpop.xlane.xlu1 %2888  ;;  %5594 = vmatprep.mubr.msk.bf16.mxu0 %vm6490_vm1, %v8541_v52 }
 0x4f5   :  { %5604 = vmatprep.subr.bf16.mxu0 %v8541_v52 }
 0x4f8   :  { %v2607_v57 = vpop.xlane.xlu1 %2606 }
 0x4f9   :  { %v2703_v32 = vsub.f32 %v7662_v16, %v2607_v57 }
 0x4fa   :  { %v7949_v44 = vpop.eup %6178 }
 0x4fb   :  { %v2814_v49 = vmul.f32 1.442695, %v2703_v32  ;;  %v2977_v43 = vsel %vm2463_vm3, %v7949_v44, 0.0  ;;  %v6181_v36 = vpop.eup %6180 }
 0x4fc   :  { %v2601_v59 = vpop.xlane.xlu1 %2600  ;;  %2978 = vadd.xlane.f32.xlu1 %v2977_v43  ;;  %v7953_v35 = vpop.eup %6182  ;;  %v3106_v18 = vmul.f32 %v6181_v36, %v7601_v24  ;;  %v8542_v24 = vld [vmem:[#allocation19_spill] sm:$0xff] }
 0x4fd   :  { %6190 = vpow2.f32 %v2814_v49  ;;  %v2701_v53 = vsub.f32 %v7668_v45, %v2601_v59  ;;  %v2986_v59 = vsel %vm2463_vm3, %v7953_v35, 0.0 }
 0x4fe   :  { %v7956_v54 = vpop.eup %6184  ;;  %6192 = vrcp.f32 %v2862_v5 }
 0x4ff   :  { %v6187_v1 = vpop.eup %6186  ;;  %v2810_v50 = vmul.f32 1.442695, %v2701_v53  ;;  %v2971_v16 = vsel %vm2463_vm3, %v7956_v54, 0.0 }
 0x500   :  { %v7960_v15 = vpop.eup %6188  ;;  %v2865_v41 = vpop.xlane.xlu1 %2864  ;;  %2972 = vadd.xlane.f32.xlu0 %v2971_v16  ;;  %v3107_v57 = vmul.f32 %v6187_v1, %v7644_v31 }
 0x501   :  { %6194 = vpow2.f32 %v2810_v50  ;;  %v2980_v45 = vsel %vm2463_vm3, %v7960_v15, 0.0 }
 0x502   :  { %6196 = vrcp.f32 %v2865_v41  ;;  %v2616_v32 = vpop.xlane.xlu0 %2615  ;;  %v3169_v49 = vpack.c.bf16 %v3107_v57, %v3106_v18  ;;  %2981 = vadd.xlane.f32.xlu1 %v2980_v45 }
 0x503   :  { %v2706_v43 = vsub.f32 %v7683_v25, %v2616_v32  ;;  %6198 = vrcp.f32 %v7925_v19 }
 0x504   :  { %5589 = vmatmul.mubr.msk.bf16.vlgmr.msra.gmra.mxu1 %vm2463_vm3, %v3169_v49  ;;  %2987 = vadd.xlane.f32.xlu0 %v2986_v59 }
 0x505   :  { %v2820_v5 = vmul.f32 1.442695, %v2706_v43  ;;  %5599 = vmatpush3.bf16.msra.mxu1 %v8542_v24  ;;  %5600 = vmatprep.mubr.msk.bf16.mxu1 %vm6490_vm1, %v8541_v52 }
 0x506   :  { %v2619_v31 = vpop.xlane.xlu1 %2618  ;;  %v2610_v36 = vpop.xlane.xlu0 %2609  ;;  %5610 = vmatprep.subr.bf16.mxu1 %v8541_v52 }
 0x507   :  { %6200 = vpow2.f32 %v2820_v5  ;;  %v2707_v25 = vsub.f32 %v7696_v55, %v2619_v31  ;;  %v2704_v53 = vsub.f32 %v7689_v48, %v2610_v36 }
 0x508   :  { %6202 = vrcp.f32 %v7921_v10 }
 0x509   :  { %v2822_v1 = vmul.f32 1.442695, %v2707_v25  ;;  %v2816_v50 = vmul.f32 1.442695, %v2704_v53  ;;  %6204 = vrcp.f32 %v7927_v37 }
 0x50a   :  { %v7978_v16 = vpop.eup %6190  ;;  %v2613_v41 = vpop.xlane.xlu1 %2612  ;;  %6206 = vrcp.f32 %v2889_v20 }
 0x50b   :  { %v2705_v19 = vsub.f32 %v7700_v4, %v2613_v41  ;;  %v2868_v18 = vpop.xlane.xlu0 %2867  ;;  %v2989_v57 = vsel %vm2463_vm3, %v7978_v16, 0.0  ;;  %6208 = vpow2.f32 %v2816_v50  ;;  %v6193_v55 = vpop.eup %6192 }
 0x50c   :  { %2990 = vadd.xlane.f32.xlu1 %v2989_v57  ;;  %6210 = vpow2.f32 %v2822_v1  ;;  %v3108_v20 = vmul.f32 %v6193_v55, %v7648_v42  ;;  %v8543_v1 = vld [vmem:[#allocation20_spill] sm:$0xff]  ;;  %v8544_v42 = vld [vmem:[#allocation59_spill] sm:$0xff] }
 0x50d   :  { %v2818_v48 = vmul.f32 1.442695, %v2705_v19  ;;  %6212 = vrcp.f32 %v2868_v18 }
 0x50e   :  { %v7984_v10 = vpop.eup %6194  ;;  %v2871_v45 = vpop.xlane.xlu1 %2870 }
 0x50f   :  { %v6197_v32 = vpop.eup %6196  ;;  %6214 = vpow2.f32 %v2818_v48  ;;  %v2983_v37 = vsel %vm2463_vm3, %v7984_v10, 0.0 }
 0x510   :  { %6216 = vrcp.f32 %v2871_v45  ;;  %2984 = vadd.xlane.f32.xlu0 %v2983_v37  ;;  %v2628_v4 = vpop.xlane.xlu0 %2627  ;;  %v3109_v49 = vmul.f32 %v6197_v32, %v7676_v23  ;;  %v6199_v5 = vpop.eup %6198  ;;  %v8545_v23 = vld [vmem:[#allocation55_spill] sm:$0xff] }
 0x511   :  { %v2710_v43 = vsub.f32 %v7719_v6, %v2628_v4  ;;  %v3113_v19 = vmul.f32 %v6199_v5, %v8545_v23  ;;  %v8549_v23 = vld [vmem:[#allocation56_spill] sm:$0xff] }
 0x512   :  { %v3170_v59 = vpack.c.bf16 %v3109_v49, %v3108_v20  ;;  %v8547_v20 = vld [vmem:[#allocation60_spill] sm:$0xff] }
 0x513   :  { %v2828_v24 = vmul.f32 1.442695, %v2710_v43 }
 0x514   :  { %v7991_v31 = vpop.eup %6200  ;;  %5595 = vmatmul.mubr.msk.bf16.vlgmr.msra.gmra.mxu0 %vm2463_vm3, %v3170_v59  ;;  %v2631_v36 = vpop.xlane.xlu1 %2630 }
 0x515   :  { %v2622_v25 = vpop.xlane.xlu0 %2621  ;;  %v6203_v53 = vpop.eup %6202  ;;  %6218 = vpow2.f32 %v2828_v24  ;;  %5605 = vmatpush3.bf16.msra.mxu0 %v8543_v1  ;;  %v2711_v50 = vsub.f32 %v7731_v63, %v2631_v36  ;;  %v2998_v6 = vsel %vm2463_vm3, %v7991_v31, 0.0  ;;  %5606 = vmatprep.mubr.msk.bf16.mxu0 %vm6490_vm1, %v8541_v52  ;;  %v8546_v63 = vld [vmem:[#allocation53_spill] sm:$0xff] }
 0x516   :  { %v2708_v41 = vsub.f32 %v8544_v42, %v2622_v25  ;;  %2999 = vadd.xlane.f32.xlu0 %v2998_v6  ;;  %5616 = vmatprep.subr.bf16.mxu0 %v8541_v52  ;;  %v6205_v18 = vpop.eup %6204  ;;  %v3112_v37 = vmul.f32 %v6203_v53, %v8546_v63  ;;  %v8548_v42 = vld [vmem:[#allocation22_spill] sm:$0xff] }
 0x517   :  { %v2830_v57 = vmul.f32 1.442695, %v2711_v50  ;;  %v6207_v48 = vpop.eup %6206 }
 0x518   :  { %v2824_v55 = vmul.f32 1.442695, %v2708_v41  ;;  %v2625_v45 = vpop.xlane.xlu1 %2624  ;;  %v8004_v4 = vpop.eup %6208  ;;  %v3172_v24 = vpack.c.bf16 %v3113_v19, %v3112_v37  ;;  %v3117_v19 = vmul.f32 %v6207_v48, %v8549_v23 }
 0x519   :  { %v2880_v32 = vpop.xlane.xlu0 %2879  ;;  %v2709_v49 = vsub.f32 %v8547_v20, %v2625_v45  ;;  %v8007_v43 = vpop.eup %6210  ;;  %v2992_v59 = vsel %vm2463_vm3, %v8004_v4, 0.0 }
 0x51a   :  { %6220 = vpow2.f32 %v2824_v55  ;;  %v6213_v5 = vpop.eup %6212  ;;  %2993 = vadd.xlane.f32.xlu1 %v2992_v59  ;;  %v8550_v55 = vld [vmem:[#allocation57_spill] sm:$0xff]  ;;  %v8552_v59 = vld [vmem:[#allocation54_spill] sm:$0xff] }
 0x51b   :  { %6222 = vpow2.f32 %v2830_v57  ;;  %v2826_v36 = vmul.f32 1.442695, %v2709_v49  ;;  %v3001_v57 = vsel %vm2463_vm3, %v8007_v43, 0.0  ;;  %v3110_v45 = vmul.f32 %v6213_v5, %v8550_v55 }
 0x51c   :  { %v8011_v25 = vpop.eup %6214  ;;  %6224 = vrcp.f32 %v2880_v32  ;;  %5607 = vmatmul.mubr.msk.bf16.vlgmr.msra.gmra.mxu0 %vm2463_vm3, %v3172_v24  ;;  %v2883_v53 = vpop.xlane.xlu1 %2882  ;;  %v8551_v32 = vld [vmem:[#allocation58_spill] sm:$0xff]  ;;  %v3116_v24 = vmul.f32 %v6205_v18, %v8552_v59  ;;  %v8554_v18 = vld [vmem:[#allocation24_spill] sm:$0xff] }
 0x51d   :  { %v2640_v1 = vpop.xlane.xlu0 %2639  ;;  %v6217_v50 = vpop.eup %6216  ;;  %6226 = vpow2.f32 %v2826_v36  ;;  %5617 = vmatpush3.bf16.msra.mxu0 %v8548_v42  ;;  %v2995_v6 = vsel %vm2463_vm3, %v8011_v25, 0.0  ;;  %5618 = vmatprep.mubr.msk.bf16.mxu0 %vm6490_vm1, %v8541_v52  ;;  %v8553_v42 = vld [vmem:[#allocation21_spill] sm:$0xff] }
 0x51e   :  { %v2714_v41 = vsub.f32 %v7745_v39, %v2640_v1  ;;  %6228 = vrcp.f32 %v2883_v53  ;;  %2996 = vadd.xlane.f32.xlu0 %v2995_v6  ;;  %v3111_v63 = vmul.f32 %v6217_v50, %v8551_v32  ;;  %5628 = vmatprep.subr.bf16.mxu0 %v8541_v52  ;;  %v3174_v5 = vpack.c.bf16 %v3117_v19, %v3116_v24 }
 0x51f   :  { %3002 = vadd.xlane.f32.xlu1 %v3001_v57 }
 0x520   :  { %v2836_v39 = vmul.f32 1.442695, %v2714_v41  ;;  %v2643_v37 = vpop.xlane.xlu1 %2642  ;;  %v3171_v49 = vpack.c.bf16 %v3111_v63, %v3110_v45 }
 0x521   :  { %v2634_v20 = vpop.xlane.xlu0 %2633  ;;  %v2715_v48 = vsub.f32 %v7760_v8, %v2643_v37 }
 0x522   :  { %6230 = vpow2.f32 %v2836_v39  ;;  %v2712_v36 = vsub.f32 %v7754_v47, %v2634_v20  ;;  %v8029_v53 = vpop.eup %6218  ;;  %5601 = vmatmul.mubr.msk.bf16.vlgmr.msra.gmra.mxu1 %vm2463_vm3, %v3171_v49 }
 0x523   :  { %v2838_v1 = vmul.f32 1.442695, %v2715_v48  ;;  %5611 = vmatpush3.bf16.msra.mxu1 %v8553_v42  ;;  %v3010_v41 = vsel %vm2463_vm3, %v8029_v53, 0.0  ;;  %5612 = vmatprep.mubr.msk.bf16.mxu1 %vm6490_vm1, %v8541_v52 }
 0x524   :  { %v2832_v50 = vmul.f32 1.442695, %v2712_v36  ;;  %5619 = vmatmul.mubr.msk.bf16.vlgmr.msra.gmra.mxu0 %vm2463_vm3, %v3174_v5  ;;  %v2637_v8 = vpop.xlane.xlu1 %2636  ;;  %3011 = vadd.xlane.f32.xlu0 %v3010_v41  ;;  %v8555_v36 = vld [vmem:[#allocation61_spill] sm:$0xff] }
 0x525   :  { %v2892_v47 = vpop.xlane.xlu0 %2891  ;;  %5629 = vmatpush3.bf16.msra.mxu0 %v8554_v18  ;;  %v2713_v6 = vsub.f32 %v7767_v11, %v2637_v8  ;;  %5622 = vmatprep.subr.bf16.mxu1 %v8541_v52 }
 0x526   :  { %6232 = vpow2.f32 %v2832_v50  ;;  %5630 = vmatprep.mubr.msk.bf16.mxu0 %vm6490_vm1, %v8541_v52  ;;  %5640 = vmatprep.subr.bf16.mxu0 %v8541_v52 }
 0x527   :  { %v8044_v23 = vpop.eup %6220  ;;  %6234 = vpow2.f32 %v2838_v1  ;;  %v2834_v19 = vmul.f32 1.442695, %v2713_v6 }
 0x528   :  { %v8046_v57 = vpop.eup %6222  ;;  %6236 = vrcp.f32 %v2892_v47  ;;  %v2895_v55 = vpop.xlane.xlu1 %2894  ;;  %v3004_v45 = vsel %vm2463_vm3, %v8044_v23, 0.0 }
 0x529   :  { %v2652_v11 = vpop.xlane.xlu0 %2651  ;;  %v6225_v32 = vpop.eup %6224  ;;  %6238 = vpow2.f32 %v2834_v19  ;;  %3005 = vadd.xlane.f32.xlu1 %v3004_v45  ;;  %v3013_v24 = vsel %vm2463_vm3, %v8046_v57, 0.0 }
 0x52a   :  { %v2718_v63 = vsub.f32 %v7786_v40, %v2652_v11  ;;  %v8051_v39 = vpop.eup %6226  ;;  %6240 = vrcp.f32 %v2895_v55  ;;  %v3114_v5 = vmul.f32 %v6225_v32, %v8555_v36 }
 0x52b   :  { %v6229_v37 = vpop.eup %6228  ;;  %v3007_v49 = vsel %vm2463_vm3, %v8051_v39, 0.0 }
 0x52c   :  { %v2844_v20 = vmul.f32 1.442695, %v2718_v63  ;;  %v2646_v59 = vpop.xlane.xlu1 %2645  ;;  %3008 = vadd.xlane.f32.xlu0 %v3007_v49  ;;  %v3115_v1 = vmul.f32 %v6229_v37, %v7752_v2  ;;  %v8556_v2 = vld [vmem:[#allocation23_spill] sm:$0xff] }
 0x52d   :  { %v2649_v48 = vpop.xlane.xlu0 %2648  ;;  %v2716_v40 = vsub.f32 %v7789_v14, %v2646_v59  ;;  %3014 = vadd.xlane.f32.xlu1 %v3013_v24 }
 0x52e   :  { %6242 = vpow2.f32 %v2844_v20  ;;  %v2717_v50 = vsub.f32 %v7793_v33, %v2649_v48  ;;  %v3173_v41 = vpack.c.bf16 %v3115_v1, %v3114_v5 }
 0x52f   :  { %v8061_v42 = vpop.eup %6230  ;;  %v2840_v8 = vmul.f32 1.442695, %v2716_v40 }
 0x530   :  { %v2842_v47 = vmul.f32 1.442695, %v2717_v50  ;;  %v3022_v18 = vsel %vm2463_vm3, %v8061_v42, 0.0  ;;  %5613 = vmatmul.mubr.msk.bf16.vlgmr.msra.gmra.mxu1 %vm2463_vm3, %v3173_v41  ;;  %v2655_v6 = vpop.xlane.xlu1 %2654 }
 0x531   :  { %3023 = vadd.xlane.f32.xlu0 %v3022_v18  ;;  %v2904_v19 = vpop.xlane.xlu0 %2903  ;;  %6244 = vpow2.f32 %v2840_v8  ;;  %5623 = vmatpush3.bf16.msra.mxu1 %v8556_v2  ;;  %v2719_v14 = vsub.f32 %v7802_v30, %v2655_v6 }
 0x532   :  { %5624 = vmatprep.mubr.msk.bf16.mxu1 %vm6490_vm1, %v8541_v52  ;;  %6246 = vpow2.f32 %v2842_v47  ;;  %5634 = vmatprep.subr.bf16.mxu1 %v8541_v52  ;;  %v8557_v47 = vld [vmem:[#allocation25_spill] sm:$0xff] }
 0x533   :  { %v8071_v33 = vpop.eup %6232  ;;  %v2846_v55 = vmul.f32 1.442695, %v2719_v14  ;;  %6248 = vrcp.f32 %v2904_v19 }
 0x534   :  { %v8073_v45 = vpop.eup %6234  ;;  %v2907_v11 = vpop.xlane.xlu1 %2906  ;;  %v3016_v32 = vsel %vm2463_vm3, %v8071_v33, 0.0 }
 0x535   :  { %v2898_v63 = vpop.xlane.xlu0 %2897  ;;  %v6237_v37 = vpop.eup %6236  ;;  %6250 = vpow2.f32 %v2846_v55  ;;  %3017 = vadd.xlane.f32.xlu1 %v3016_v32  ;;  %v3025_v24 = vsel %vm2463_vm3, %v8073_v45, 0.0 }
 0x536   :  { %v8077_v30 = vpop.eup %6238  ;;  %6252 = vrcp.f32 %v2907_v11  ;;  %v3118_v36 = vmul.f32 %v6237_v37, %v7771_v12 }
 0x537   :  { %v6241_v20 = vpop.eup %6240  ;;  %6254 = vrcp.f32 %v2898_v63  ;;  %v3019_v49 = vsel %vm2463_vm3, %v8077_v30, 0.0 }
 0x538   :  { %v2901_v59 = vpop.xlane.xlu1 %2900  ;;  %3020 = vadd.xlane.f32.xlu0 %v3019_v49  ;;  %v3119_v5 = vmul.f32 %v6241_v20, %v7778_v34 }
 0x539   :  { %v2916_v48 = vpop.xlane.xlu0 %2915  ;;  %6256 = vrcp.f32 %v2901_v59  ;;  %3026 = vadd.xlane.f32.xlu1 %v3025_v24 }
 0x53a   :  { %v3175_v40 = vpack.c.bf16 %v3119_v5, %v3118_v36 }
 0x53b   :  { %v8085_v1 = vpop.eup %6242 }
 0x53c   :  { %v3034_v50 = vsel %vm2463_vm3, %v8085_v1, 0.0  ;;  %5625 = vmatmul.mubr.msk.bf16.vlgmr.msra.gmra.mxu1 %vm2463_vm3, %v3175_v40  ;;  %v2910_v41 = vpop.xlane.xlu1 %2909 }
 0x53d   :  { %3035 = vadd.xlane.f32.xlu0 %v3034_v50  ;;  %v2913_v8 = vpop.xlane.xlu0 %2912  ;;  %5635 = vmatpush3.bf16.msra.mxu1 %v8557_v47  ;;  %6258 = vrcp.f32 %v2910_v41  ;;  %v8558_v41 = vld [vmem:[#allocation27_spill] sm:$0xff]  ;;  %v8559_v47 = vld [vmem:[#allocation36_spill] sm:$0xff] }
 0x53e   :  { %5636 = vmatprep.mubr.msk.bf16.mxu1 %vm6490_vm1, %v8541_v52  ;;  %v8093_v12 = vpop.eup %6244  ;;  %6260 = vrcp.f32 %v2913_v8  ;;  %5646 = vmatprep.subr.bf16.mxu1 %v8541_v52 }
 0x53f   :  { %v8096_v34 = vpop.eup %6246  ;;  %6262 = vrcp.f32 %v2916_v48  ;;  %v3028_v18 = vsel %vm2463_vm3, %v8093_v12, 0.0 }
 0x540   :  { %v2919_v6 = vpop.xlane.xlu1 %2918  ;;  %3029 = vadd.xlane.f32.xlu1 %v3028_v18  ;;  %v3031_v19 = vsel %vm2463_vm3, %v8096_v34, 0.0  ;;  %v6249_v14 = vpop.eup %6248 }
 0x541   :  { %v2928_v2 = vpop.xlane.xlu0 %2927  ;;  %6264 = vrcp.f32 %v2919_v6  ;;  %3032 = vadd.xlane.f32.xlu0 %v3031_v19  ;;  %v3122_v49 = vmul.f32 %v6249_v14, %v7806_v7 }
 0x542   :  { %v8102_v55 = vpop.eup %6250 }
 0x543   :  { %v6253_v11 = vpop.eup %6252  ;;  %v3037_v32 = vsel %vm2463_vm3, %v8102_v55, 0.0 }
 0x544   :  { %v6255_v63 = vpop.eup %6254  ;;  %v2922_v37 = vpop.xlane.xlu1 %2921  ;;  %3038 = vadd.xlane.f32.xlu1 %v3037_v32  ;;  %v3123_v59 = vmul.f32 %v6253_v11, %v7814_v58 }
 0x545   :  { %v2925_v20 = vpop.xlane.xlu0 %2924  ;;  %6266 = vrcp.f32 %v2922_v37  ;;  %v3120_v36 = vmul.f32 %v6255_v63, %v7820_v17 }
 0x546   :  { %v6257_v24 = vpop.eup %6256  ;;  %6268 = vrcp.f32 %v2925_v20  ;;  %v3177_v48 = vpack.c.bf16 %v3123_v59, %v3122_v49 }
 0x547   :  { %6270 = vrcp.f32 %v2928_v2  ;;  %v3121_v5 = vmul.f32 %v6257_v24, %v7822_v60  ;;  %v8561_v24 = vld [vmem:[#allocation29_spill] sm:$0xff] }
 0x548   :  { %5637 = vmatmul.mubr.msk.bf16.vlgmr.msra.gmra.mxu1 %vm2463_vm3, %v3177_v48  ;;  %v2931_v40 = vpop.xlane.xlu1 %2930 }
 0x549   :  { %v2940_v50 = vpop.xlane.xlu0 %2939  ;;  %5647 = vmatpush3.bf16.msra.mxu1 %v8558_v41  ;;  %6272 = vrcp.f32 %v2931_v40  ;;  %v3176_v8 = vpack.c.bf16 %v3121_v5, %v3120_v36  ;;  %5648 = vmatprep.mubr.msk.bf16.mxu1 %vm6490_vm1, %v8541_v52 }
 0x54a   :  { %v6259_v7 = vpop.eup %6258  ;;  %5658 = vmatprep.subr.bf16.mxu1 %v8541_v52 }
 0x54b   :  { %v6261_v58 = vpop.eup %6260  ;;  %5631 = vmatmul.mubr.msk.bf16.vlgmr.msra.gmra.mxu0 %vm2463_vm3, %v3176_v8  ;;  %v3124_v6 = vmul.f32 %v6259_v7, %v7834_v56 }
 0x54c   :  { %v6263_v17 = vpop.eup %6262  ;;  %5641 = vmatpush3.bf16.msra.mxu0 %v8559_v47  ;;  %v2934_v60 = vpop.xlane.xlu1 %2933  ;;  %5642 = vmatprep.mubr.msk.bf16.mxu0 %vm6490_vm1, %v8541_v52  ;;  %v3125_v19 = vmul.f32 %v6261_v58, %v7840_v0  ;;  %v8560_v0 = vld [vmem:[#allocation26_spill] sm:$0xff] }
 0x54d   :  { %v2937_v18 = vpop.xlane.xlu0 %2936  ;;  %6274 = vrcp.f32 %v2934_v60  ;;  %5652 = vmatprep.subr.bf16.mxu0 %v8541_v52  ;;  %v3126_v14 = vmul.f32 %v6263_v17, %v7829_v21 }
 0x54e   :  { %v6265_v2 = vpop.eup %6264  ;;  %6276 = vrcp.f32 %v2937_v18  ;;  %v3178_v37 = vpack.c.bf16 %v3125_v19, %v3124_v6  ;;  %v8564_v18 = vld [vmem:[#allocation38_spill] sm:$0xff]  ;;  %v8565_v6 = vld [vmem:[#allocation31_spill] sm:$0xff] }
 0x54f   :  { %6278 = vrcp.f32 %v2940_v50  ;;  %v3127_v11 = vmul.f32 %v6265_v2, %v7844_v27  ;;  %v8562_v27 = vld [vmem:[#allocation17_spill] sm:$0xff]  ;;  %v8563_v50 = vld [vmem:[#allocation16_spill] sm:$0xff] }
 0x550   :  { %v2943_v32 = vpop.xlane.xlu1 %2942 }
 0x551   :  { %v2952_v63 = vpop.xlane.xlu0 %2951  ;;  %6280 = vrcp.f32 %v2943_v32  ;;  %v3179_v20 = vpack.c.bf16 %v3127_v11, %v3126_v14 }
 0x552   :  { %v6267_v49 = vpop.eup %6266 }
 0x553   :  { %v6269_v59 = vpop.eup %6268  ;;  %5643 = vmatmul.mubr.msk.bf16.vlgmr.msra.gmra.mxu0 %vm2463_vm3, %v3178_v37  ;;  %5649 = vmatmul.mubr.msk.bf16.vlgmr.msra.gmra.mxu1 %vm2463_vm3, %v3179_v20  ;;  %v3128_v36 = vmul.f32 %v6267_v49, %v7854_v28 }
 0x554   :  { %v6271_v56 = vpop.eup %6270  ;;  %5653 = vmatpush3.bf16.msra.mxu0 %v8560_v0  ;;  %5659 = vmatpush3.bf16.msra.mxu1 %v8561_v24  ;;  %v2946_v48 = vpop.xlane.xlu1 %2945  ;;  %v3129_v5 = vmul.f32 %v6269_v59, %v7860_v61  ;;  %v8568_v24 = vld [vmem:[#allocation39_spill] sm:$0xff] }
 0x555   :  { %v2949_v21 = vpop.xlane.xlu0 %2948  ;;  %6282 = vrcp.f32 %v2946_v48  ;;  %4657 = vrot.lane.b32.xlu1 %v8562_v27, %s6483_s19  ;;  %5654 = vmatprep.mubr.msk.bf16.mxu0 %vm6490_vm1, %v8541_v52  ;;  %v3130_v41 = vmul.f32 %v6271_v56, %v7849_v46  ;;  %v8567_v56 = vld [vmem:[#allocation33_spill] sm:$0xff] }
 0x556   :  { %v6273_v40 = vpop.eup %6272  ;;  %6284 = vrcp.f32 %v2949_v21  ;;  %5660 = vmatprep.mubr.msk.bf16.mxu1 %vm6490_vm1, %v8541_v52  ;;  %5664 = vmatprep.subr.bf16.mxu0 %v8541_v52  ;;  %v3180_v61 = vpack.c.bf16 %v3129_v5, %v3128_v36  ;;  %v8569_v21 = vld [vmem:[#allocation40_spill] sm:$0xff] }
 0x557   :  { %6286 = vrcp.f32 %v2952_v63  ;;  %4610 = vrot.lane.b32.xlu0 %v8563_v50, %s6483_s19  ;;  %5670 = vmatprep.subr.bf16.mxu1 %v8541_v52  ;;  %v3131_v8 = vmul.f32 %v6273_v40, %v7864_v3  ;;  %s6494_s19 = smov 16  }
 0x558   :  { %v2955_v28 = vpop.xlane.xlu1 %2954 }
 0x559   :  { %v2964_v7 = vpop.xlane.xlu0 %2963  ;;  %6288 = vrcp.f32 %v2955_v28  ;;  %v3181_v58 = vpack.c.bf16 %v3131_v8, %v3130_v41  ;;  %v8570_v41 = vld [vmem:[#allocation43_spill] sm:$0xff]  ;;  %v8572_v8 = vld [vmem:[#allocation44_spill] sm:$0xff] }
 0x55a   :  { %v6275_v17 = vpop.eup %6274 }
 0x55b   :  { %v6277_v47 = vpop.eup %6276  ;;  %5655 = vmatmul.mubr.msk.bf16.vlgmr.msra.gmra.mxu0 %vm2463_vm3, %v3180_v61  ;;  %5661 = vmatmul.mubr.msk.bf16.vlgmr.msra.gmra.mxu1 %vm2463_vm3, %v3181_v58  ;;  %v3132_v3 = vmul.f32 %v6275_v17, %v7873_v38  ;;  %v8574_v17 = vld [vmem:[#allocation42_spill] sm:$0xff] }
 0x55c   :  { %v6279_v60 = vpop.eup %6278  ;;  %5665 = vmatpush3.bf16.msra.mxu0 %v8564_v18  ;;  %5671 = vmatpush3.bf16.msra.mxu1 %v8565_v6  ;;  %v2958_v19 = vpop.xlane.xlu1 %2957  ;;  %v3133_v2 = vmul.f32 %v6277_v47, %v7879_v51  ;;  %v8566_v51 = vld [vmem:[#allocation28_spill] sm:$0xff] }
 0x55d   :  { %v2961_v46 = vpop.xlane.xlu0 %2960  ;;  %6290 = vrcp.f32 %v2958_v19  ;;  %5666 = vmatprep.mubr.msk.bf16.mxu0 %vm6490_vm1, %v8541_v52  ;;  %5672 = vmatprep.mubr.msk.bf16.mxu1 %vm6490_vm1, %v8541_v52  ;;  %v3134_v11 = vmul.f32 %v6279_v60, %v7869_v13  ;;  %v8575_v60 = vld [vmem:[#allocation47_spill] sm:$0xff] }
 0x55e   :  { %v6281_v14 = vpop.eup %6280  ;;  %6292 = vrcp.f32 %v2961_v46  ;;  %5676 = vmatprep.subr.bf16.mxu0 %v8541_v52  ;;  %5682 = vmatprep.subr.bf16.mxu1 %v8541_v52  ;;  %v3182_v37 = vpack.c.bf16 %v3133_v2, %v3132_v3  ;;  %v8576_v46 = vld [vmem:[#allocation30_spill] sm:$0xff]  ;;  %v8577_v3 = vld [vmem:[#allocation37_spill] sm:$0xff] }
 0x55f   :  { %6294 = vrcp.f32 %v2964_v7  ;;  %v3135_v32 = vmul.f32 %v6281_v14, %v7881_v26  ;;  %v8573_v7 = vld [vmem:[#allocation45_spill] sm:$0xff] }
 0x560   :  { %v2967_v63 = vpop.xlane.xlu1 %2966 }
 0x561   :  { %6296 = vrcp.f32 %v2967_v63  ;;  %v3183_v20 = vpack.c.bf16 %v3135_v32, %v3134_v11 }
 0x562   :  { %v6283_v49 = vpop.eup %6282 }
 0x563   :  { %v6285_v59 = vpop.eup %6284  ;;  %5667 = vmatmul.mubr.msk.bf16.vlgmr.msra.gmra.mxu0 %vm2463_vm3, %v3182_v37  ;;  %5673 = vmatmul.mubr.msk.bf16.vlgmr.msra.gmra.mxu1 %vm2463_vm3, %v3183_v20  ;;  %v3136_v13 = vmul.f32 %v6283_v49, %v7889_v62 }
 0x564   :  { %v6287_v38 = vpop.eup %6286  ;;  %5677 = vmatpush3.bf16.msra.mxu0 %v8566_v51  ;;  %5683 = vmatpush3.bf16.msra.mxu1 %v8567_v56  ;;  %v3137_v26 = vmul.f32 %v6285_v59, %v7895_v29  ;;  %v8571_v29 = vld [vmem:[#allocation35_spill] sm:$0xff] }
 0x565   :  { %5678 = vmatprep.mubr.msk.bf16.mxu0 %vm6490_vm1, %v8541_v52  ;;  %5684 = vmatprep.mubr.msk.bf16.mxu1 %vm6490_vm1, %v8541_v52  ;;  %v3138_v48 = vmul.f32 %v6287_v38, %v8568_v24 }
 0x566   :  { %v6289_v0 = vpop.eup %6288  ;;  %5688 = vmatprep.subr.bf16.mxu0 %v8541_v52  ;;  %5694 = vmatprep.subr.bf16.mxu1 %v8541_v52  ;;  %v3184_v5 = vpack.c.bf16 %v3137_v26, %v3136_v13 }
 0x567   :  { %v3139_v27 = vmul.f32 %v6289_v0, %v8569_v21 }
 0x569   :  { %v3185_v36 = vpack.c.bf16 %v3139_v27, %v3138_v48  ;;  %v8578_v48 = vld [vmem:[#allocation41_spill] sm:$0xff] }
 0x56a   :  { %v6291_v40 = vpop.eup %6290 }
 0x56b   :  { %v6293_v50 = vpop.eup %6292  ;;  %5679 = vmatmul.mubr.msk.bf16.vlgmr.msra.gmra.mxu0 %vm2463_vm3, %v3184_v5  ;;  %5685 = vmatmul.mubr.msk.bf16.vlgmr.msra.gmra.mxu1 %vm2463_vm3, %v3185_v36  ;;  %v3140_v28 = vmul.f32 %v6291_v40, %v8572_v8 }
 0x56c   :  { %v6295_v62 = vpop.eup %6294  ;;  %5689 = vmatpush3.bf16.msra.mxu0 %v8570_v41  ;;  %5695 = vmatpush3.bf16.msra.mxu1 %v8571_v29  ;;  %v3141_v61 = vmul.f32 %v6293_v50, %v8573_v7 }
 0x56d   :  { %5690 = vmatprep.mubr.msk.bf16.mxu0 %vm6490_vm1, %v8541_v52  ;;  %5696 = vmatprep.mubr.msk.bf16.mxu1 %vm6490_vm1, %v8541_v52  ;;  %v3142_v47 = vmul.f32 %v6295_v62, %v8574_v17 }
 0x56e   :  { %v6297_v58 = vpop.eup %6296  ;;  %5700 = vmatprep.subr.bf16.mxu0 %v8541_v52  ;;  %5706 = vmatprep.subr.bf16.mxu1 %v8541_v52  ;;  %v3186_v19 = vpack.c.bf16 %v3141_v61, %v3140_v28  ;;  %v8580_v61 = vld [vmem:[#allocation46_spill] sm:$0xff] }
 0x56f   :  { %v3143_v18 = vmul.f32 %v6297_v58, %v8575_v60 }
 0x571   :  { %v3187_v6 = vpack.c.bf16 %v3143_v18, %v3142_v47 }
 0x573   :  { %5691 = vmatmul.mubr.msk.bf16.vlgmr.msra.gmra.mxu0 %vm2463_vm3, %v3186_v19  ;;  %5697 = vmatmul.mubr.msk.bf16.vlgmr.msra.gmra.mxu1 %vm2463_vm3, %v3187_v6 }
 0x574   :  { %5701 = vmatpush3.bf16.msra.mxu0 %v8576_v46  ;;  %5707 = vmatpush3.bf16.msra.mxu1 %v8577_v3 }
 0x575   :  { %5708 = vmatprep.mubr.msk.bf16.mxu1 %vm6490_vm1, %v8541_v52  ;;  %5718 = vmatprep.subr.bf16.mxu1 %v8541_v52 }
 0x576   :  { %5702 = vmatprep.mubr.msk.bf16.mxu0 %vm6490_vm1, %v8541_v52  ;;  %5712 = vmatprep.subr.bf16.mxu0 %v8541_v52 }
 0x577   :  { %v2976_v2 = vpop.xlane.xlu0 %2975 }
 0x578   :  { %6298 = vrcp.f32 %v2976_v2 }
 0x57b   :  { %v2970_v14 = vpop.xlane.xlu1 %2969 }
 0x585   :  { %v2979_v11 = vpop.xlane.xlu1 %2978  ;;  %v6299_v63 = vpop.eup %6298 }
 0x586   :  { %6300 = vrcp.f32 %v2979_v11  ;;  %v3146_v59 = vmul.f32 %v6299_v63, %v7931_v22 }
 0x587   :  { %6302 = vrcp.f32 %v2970_v14 }
 0x589   :  { %v2973_v32 = vpop.xlane.xlu0 %2972 }
 0x58a   :  { %6304 = vrcp.f32 %v2973_v32 }
 0x58b   :  { %v2982_v37 = vpop.xlane.xlu1 %2981 }
 0x58d   :  { %v2988_v20 = vpop.xlane.xlu0 %2987 }
 0x58e   :  { %6306 = vrcp.f32 %v2988_v20 }
 0x593   :  { %v6301_v49 = vpop.eup %6300 }
 0x594   :  { %v3147_v38 = vmul.f32 %v6301_v49, %v7949_v44  ;;  %v6303_v51 = vpop.eup %6302  ;;  %v8579_v44 = vld [vmem:[#allocation48_spill] sm:$0xff] }
 0x595   :  { %v2991_v56 = vpop.xlane.xlu1 %2990  ;;  %v3144_v0 = vmul.f32 %v6303_v51, %v7939_v9  ;;  %v8582_v49 = vld [vmem:[#allocation52_spill] sm:$0xff] }
 0x596   :  { %v3189_v13 = vpack.c.bf16 %v3147_v38, %v3146_v59  ;;  %6308 = vrcp.f32 %v2991_v56 }
 0x597   :  { %v6305_v26 = vpop.eup %6304  ;;  %6310 = vrcp.f32 %v2982_v37 }
 0x598   :  { %5709 = vmatmul.mubr.msk.bf16.vlgmr.msra.gmra.mxu1 %vm2463_vm3, %v3189_v13  ;;  %v3145_v24 = vmul.f32 %v6305_v26, %v7956_v54 }
 0x599   :  { %5719 = vmatpush3.bf16.msra.mxu1 %v8578_v48  ;;  %v2985_v21 = vpop.xlane.xlu0 %2984  ;;  %5720 = vmatprep.mubr.msk.bf16.mxu1 %vm6490_vm1, %v8541_v52 }
 0x59a   :  { %6312 = vrcp.f32 %v2985_v21  ;;  %v3188_v22 = vpack.c.bf16 %v3145_v24, %v3144_v0  ;;  %5730 = vmatprep.subr.bf16.mxu1 %v8541_v52 }
 0x59b   :  { %v6307_v9 = vpop.eup %6306 }
 0x59c   :  { %5703 = vmatmul.mubr.msk.bf16.vlgmr.msra.gmra.mxu0 %vm2463_vm3, %v3188_v22  ;;  %v3150_v36 = vmul.f32 %v6307_v9, %v7953_v35 }
 0x59d   :  { %5713 = vmatpush3.bf16.msra.mxu0 %v8579_v44  ;;  %5714 = vmatprep.mubr.msk.bf16.mxu0 %vm6490_vm1, %v8541_v52 }
 0x59e   :  { %5724 = vmatprep.subr.bf16.mxu0 %v8541_v52 }
 0x59f   :  { %v3000_v27 = vpop.xlane.xlu0 %2999 }
 0x5a3   :  { %v6309_v54 = vpop.eup %6308  ;;  %v2994_v40 = vpop.xlane.xlu1 %2993 }
 0x5a4   :  { %v3151_v5 = vmul.f32 %v6309_v54, %v7978_v16  ;;  %v6311_v50 = vpop.eup %6310  ;;  %6314 = vrcp.f32 %v2994_v40  ;;  %v8581_v16 = vld [vmem:[#allocation32_spill] sm:$0xff] }
 0x5a5   :  { %6316 = vrcp.f32 %v3000_v27  ;;  %v3148_v28 = vmul.f32 %v6311_v50, %v7960_v15 }
 0x5a6   :  { %v3191_v62 = vpack.c.bf16 %v3151_v5, %v3150_v36  ;;  %v8584_v36 = vld [vmem:[#allocation34_spill] sm:$0xff] }
 0x5a7   :  { %v6313_v41 = vpop.eup %6312  ;;  %v2997_v29 = vpop.xlane.xlu0 %2996 }
 0x5a8   :  { %v3003_v8 = vpop.xlane.xlu1 %3002  ;;  %6318 = vrcp.f32 %v2997_v29  ;;  %5721 = vmatmul.mubr.msk.bf16.vlgmr.msra.gmra.mxu1 %vm2463_vm3, %v3191_v62  ;;  %v3149_v7 = vmul.f32 %v6313_v41, %v7984_v10 }
 0x5a9   :  { %6320 = vrcp.f32 %v3003_v8  ;;  %5731 = vmatpush3.bf16.msra.mxu1 %v8580_v61  ;;  %5732 = vmatprep.mubr.msk.bf16.mxu1 %vm6490_vm1, %v8541_v52 }
 0x5aa   :  { %v3190_v35 = vpack.c.bf16 %v3149_v7, %v3148_v28  ;;  %5742 = vmatprep.subr.bf16.mxu1 %v8541_v52 }
 0x5ac   :  { %5715 = vmatmul.mubr.msk.bf16.vlgmr.msra.gmra.mxu0 %vm2463_vm3, %v3190_v35 }
 0x5ad   :  { %5725 = vmatpush3.bf16.msra.mxu0 %v8581_v16  ;;  %5726 = vmatprep.mubr.msk.bf16.mxu0 %vm6490_vm1, %v8541_v52  ;;  %v3012_v15 = vpop.xlane.xlu0 %3011 }
 0x5ae   :  { %5736 = vmatprep.subr.bf16.mxu0 %v8541_v52 }
 0x5b1   :  { %v6315_v58 = vpop.eup %6314 }
 0x5b2   :  { %v3006_v10 = vpop.xlane.xlu1 %3005  ;;  %v6317_v47 = vpop.eup %6316  ;;  %v3152_v46 = vmul.f32 %v6315_v58, %v8004_v4  ;;  %v8583_v4 = vld [vmem:[#allocation50_spill] sm:$0xff] }
 0x5b3   :  { %v8222_v17 = vpop.f32.mrf.mxu0  ;;  %6322 = vrcp.f32 %v3006_v10  ;;  %v3154_v14 = vmul.f32 %v6317_v47, %v7991_v31 }
 0x5b4   :  { %6324 = vrcp.f32 %v3012_v15 }
 0x5b5   :  { %v6319_v60 = vpop.eup %6318  ;;  %v5584_v18 = vpop.f32.mrf.mxu0 }
 0x5b6   :  { %v3009_v6 = vpop.xlane.xlu0 %3008  ;;  %v6321_v19 = vpop.eup %6320  ;;  %v3153_v3 = vmul.f32 %v6319_v60, %v8011_v25 }
 0x5b7   :  { %v3015_v2 = vpop.xlane.xlu1 %3014  ;;  %6326 = vrcp.f32 %v3009_v6  ;;  %v3155_v11 = vmul.f32 %v6321_v19, %v8007_v43  ;;  %v8228_v32 = vpop.f32.mrf.mxu0 }
 0x5b8   :  { %6328 = vrcp.f32 %v3015_v2  ;;  %v3192_v63 = vpack.c.bf16 %v3153_v3, %v3152_v46 }
 0x5b9   :  { %v3193_v37 = vpack.c.bf16 %v3155_v11, %v3154_v14  ;;  %v5585_v20 = vpop.f32.mrf.mxu0 }
 0x5ba   :  { %5727 = vmatmul.mubr.msk.bf16.vlgmr.msra.gmra.mxu0 %vm2463_vm3, %v3192_v63  ;;  %v3024_v31 = vpop.xlane.xlu0 %3023 }
 0x5bb   :  { %5733 = vmatmul.mubr.msk.bf16.vlgmr.msra.gmra.mxu1 %vm2463_vm3, %v3193_v37  ;;  %5737 = vmatpush3.bf16.msra.mxu0 %v8582_v49 }
 0x5bc   :  { %5743 = vmatpush3.bf16.msra.mxu1 %v8583_v4  ;;  %5738 = vmatprep.mubr.msk.bf16.mxu0 %vm6490_vm1, %v8541_v52 }
 0x5bd   :  { %5744 = vmatprep.mubr.msk.bf16.mxu1 %vm6490_vm1, %v8541_v52  ;;  %5748 = vmatprep.subr.bf16.mxu0 %v8541_v52 }
 0x5be   :  { %v3018_v43 = vpop.xlane.xlu1 %3017  ;;  %5754 = vmatprep.subr.bf16.mxu1 %v8541_v52 }
 0x5bf   :  { %6330 = vrcp.f32 %v3018_v43 }
 0x5c0   :  { %v6323_v25 = vpop.eup %6322  ;;  %6332 = vrcp.f32 %v3024_v31 }
 0x5c1   :  { %v3021_v59 = vpop.xlane.xlu0 %3020  ;;  %v6325_v38 = vpop.eup %6324  ;;  %v3156_v26 = vmul.f32 %v6323_v25, %v8044_v23 }
 0x5c2   :  { %v3027_v51 = vpop.xlane.xlu1 %3026  ;;  %6334 = vrcp.f32 %v3021_v59  ;;  %v3158_v48 = vmul.f32 %v6325_v38, %v8029_v53 }
 0x5c3   :  { %6336 = vrcp.f32 %v3027_v51 }
 0x5c4   :  { %v6327_v56 = vpop.eup %6326  ;;  %v8242_v24 = vpop.f32.mrf.mxu1 }
 0x5c5   :  { %v6329_v13 = vpop.eup %6328  ;;  %v3157_v0 = vmul.f32 %v6327_v56, %v8051_v39  ;;  %v8585_v39 = vld [vmem:[#allocation51_spill] sm:$0xff] }
 0x5c6   :  { %v3159_v21 = vmul.f32 %v6329_v13, %v8046_v57  ;;  %v3036_v22 = vpop.xlane.xlu0 %3035  ;;  %v5590_v9 = vpop.f32.mrf.mxu1 }
 0x5c7   :  { %v3194_v44 = vpack.c.bf16 %v3157_v0, %v3156_v26 }
 0x5c8   :  { %v3195_v54 = vpack.c.bf16 %v3159_v21, %v3158_v48  ;;  %v8246_v27 = vpop.f32.mrf.mxu1 }
 0x5c9   :  { %5739 = vmatmul.mubr.msk.bf16.vlgmr.msra.gmra.mxu0 %vm2463_vm3, %v3194_v44  ;;  %v3030_v23 = vpop.xlane.xlu1 %3029 }
 0x5ca   :  { %5745 = vmatmul.mubr.msk.bf16.vlgmr.msra.gmra.mxu1 %vm2463_vm3, %v3195_v54  ;;  %5749 = vmatpush3.bf16.msra.mxu0 %v8584_v36  ;;  %v5591_v5 = vpop.f32.mrf.mxu1  ;;  %6338 = vrcp.f32 %v3030_v23  ;;  %v3033_v53 = vpop.xlane.xlu0 %3032 }
 0x5cb   :  { %5755 = vmatpush3.bf16.msra.mxu1 %v8585_v39  ;;  %5750 = vmatprep.mubr.msk.bf16.mxu0 %vm6490_vm1, %v8541_v52  ;;  %6340 = vrcp.f32 %v3033_v53 }
 0x5cc   :  { %5756 = vmatprep.mubr.msk.bf16.mxu1 %vm6490_vm1, %v8541_v52  ;;  %5760 = vmatprep.subr.bf16.mxu0 %v8541_v52  ;;  %6342 = vrcp.f32 %v3036_v22  ;;  %v6331_v57 = vpop.eup %6330 }
 0x5cd   :  { %5766 = vmatprep.subr.bf16.mxu1 %v8541_v52  ;;  %v3039_v40 = vpop.xlane.xlu1 %3038  ;;  %v6333_v50 = vpop.eup %6332  ;;  %v3160_v29 = vmul.f32 %v6331_v57, %v8071_v33 }
 0x5ce   :  { %6344 = vrcp.f32 %v3039_v40  ;;  %v3162_v28 = vmul.f32 %v6333_v50, %v8061_v42  ;;  %v4611_v16 = vpop.permute.xlu0 %4610 }
 0x5cf   :  { %v6335_v62 = vpop.eup %6334 }
 0x5d0   :  { %v6337_v41 = vpop.eup %6336  ;;  %v3161_v8 = vmul.f32 %v6335_v62, %v8077_v30 }
 0x5d1   :  { %v3163_v7 = vmul.f32 %v6337_v41, %v8073_v45  ;;  %v4658_v10 = vpop.permute.xlu1 %4657 }
 0x5d2   :  { %v3196_v61 = vpack.c.bf16 %v3161_v8, %v3160_v29 }
 0x5d3   :  { %v3197_v35 = vpack.c.bf16 %v3163_v7, %v3162_v28 }
 0x5d4   :  { %v8262_v15 = vpop.f32.mrf.mxu0  ;;  %5751 = vmatmul.mubr.msk.bf16.vlgmr.msra.gmra.mxu0 %vm2463_vm3, %v3196_v61 }
 0x5d5   :  { %5757 = vmatmul.mubr.msk.bf16.vlgmr.msra.gmra.mxu1 %vm2463_vm3, %v3197_v35  ;;  %5761 = vmatpush3.bf16.msra.mxu0 %v4611_v16 }
 0x5d6   :  { %5767 = vmatpush3.bf16.msra.mxu1 %v4658_v10  ;;  %v5596_v58 = vpop.f32.mrf.mxu0  ;;  %5762 = vmatprep.mubr.msk.bf16.mxu0 %vm6490_vm1, %v8541_v52 }
 0x5d7   :  { %v6339_v33 = vpop.eup %6338  ;;  %5768 = vmatprep.mubr.msk.bf16.mxu1 %vm6490_vm1, %v8541_v52 }
 0x5d8   :  { %v6341_v42 = vpop.eup %6340  ;;  %v3164_v45 = vmul.f32 %v6339_v33, %v8093_v12  ;;  %v8271_v30 = vpop.f32.mrf.mxu0 }
 0x5d9   :  { %v6343_v47 = vpop.eup %6342  ;;  %v3165_v60 = vmul.f32 %v6341_v42, %v8096_v34 }
 0x5da   :  { %v5597_v18 = vpop.f32.mrf.mxu0  ;;  %v3166_v46 = vmul.f32 %v6343_v47, %v8085_v1 }
 0x5db   :  { %v6345_v6 = vpop.eup %6344  ;;  %v3198_v19 = vpack.c.bf16 %v3165_v60, %v3164_v45 }
 0x5dc   :  { %v3167_v3 = vmul.f32 %v6345_v6, %v8102_v55  ;;  %v8276_v2 = vpop.f32.mrf.mxu0 }
 0x5dd   :  { %5763 = vmatmul.mubr.msk.bf16.vlgmr.msra.gmra.mxu0 %vm2463_vm3, %v3198_v19 }
 0x5de   :  { %v3199_v52 = vpack.c.bf16 %v3167_v3, %v3166_v46  ;;  %v5608_v14 = vpop.f32.mrf.mxu0 }
 0x5e0   :  { %v8279_v11 = vpop.f32.mrf.mxu0  ;;  %5769 = vmatmul.mubr.msk.bf16.vlgmr.msra.gmra.mxu1 %vm2463_vm3, %v3199_v52 }
 0x5e2   :  { %v8282_v12 = vpop.f32.mrf.mxu1  ;;  %v5609_v34 = vpop.f32.mrf.mxu0 }
 0x5e4   :  { %v5602_v63 = vpop.f32.mrf.mxu1  ;;  %v8284_v37 = vpop.f32.mrf.mxu0 }
 0x5e6   :  { %v8286_v20 = vpop.f32.mrf.mxu1  ;;  %v5620_v1 = vpop.f32.mrf.mxu0 }
 0x5e8   :  { %v5603_v55 = vpop.f32.mrf.mxu1  ;;  %v8288_v49 = vpop.f32.mrf.mxu0 }
 0x5ea   :  { %v5621_v4 = vpop.f32.mrf.mxu0 }
 0x5f0   :  { %v8290_v31 = vpop.f32.mrf.mxu1 }
 0x5f2   :  { %v5614_v43 = vpop.f32.mrf.mxu1 }
 0x5f4   :  { %v8292_v25 = vpop.f32.mrf.mxu1 }
 0x5f6   :  { %v5615_v59 = vpop.f32.mrf.mxu1 }
 0x5fc   :  { %v8294_v38 = vpop.f32.mrf.mxu1 }
 0x5fe   :  { %v5626_v51 = vpop.f32.mrf.mxu1 }
 0x5ff   :  { %v6056_v51 = vld [vmem:[#allocation10 + $0x8] sm:$0xff]  }
 0x600   :  { %v8296_v56 = vpop.f32.mrf.mxu1  ;;  %5772 = vmatprep.subr.bf16.mxu0 %v6056_v51 }
 0x601   :  { %5773 = vmatpush3.bf16.msra.mxu0 %v6056_v51 }
 0x602   :  { %v5627_v13 = vpop.f32.mrf.mxu1 }
 0x608   :  { %v3663_v26 = vpop.f32.mrf.mxu1 }
 0x60a   :  { %v5638_v0 = vpop.f32.mrf.mxu1 }
 0x60b   :  { %v3616_v48 = vpop.f32.mrf.mxu0 }
 0x60c   :  { %v3666_v21 = vpop.f32.mrf.mxu1 }
 0x60d   :  { %v5934_v22 = vpack.i.bf16 %v3666_v21, %v3663_v26  ;;  %v5632_v44 = vpop.f32.mrf.mxu0 }
 0x60e   :  { %v5639_v9 = vpop.f32.mrf.mxu1 }
 0x60f   :  { %5935 = vrot.lane.b32.xlu1 %v5934_v22, %s6482_s15  ;;  %v3619_v54 = vpop.f32.mrf.mxu0 }
 0x610   :  { %v5939_v36 = vpack.i.bf16 %v3619_v54, %v3616_v48 }
 0x611   :  { %v5633_v23 = vpop.f32.mrf.mxu0 }
 0x612   :  { %5940 = vrot.lane.b32.xlu0 %v5939_v36, %s6482_s15 }
 0x613   :  { %v3710_v39 = vpop.f32.mrf.mxu0  ;;  %v3757_v5 = vpop.f32.mrf.mxu1 }
 0x615   :  { %v5644_v53 = vpop.f32.mrf.mxu0  ;;  %v5650_v57 = vpop.f32.mrf.mxu1 }
 0x617   :  { %v3713_v40 = vpop.f32.mrf.mxu0  ;;  %v3760_v50 = vpop.f32.mrf.mxu1 }
 0x618   :  { %v5949_v62 = vpack.i.bf16 %v3713_v40, %v3710_v39  ;;  %v5944_v41 = vpack.i.bf16 %v3760_v50, %v3757_v5 }
 0x619   :  { %v5645_v29 = vpop.f32.mrf.mxu0  ;;  %v5651_v8 = vpop.f32.mrf.mxu1 }
 0x61a   :  { %5945 = vrot.lane.b32.xlu1 %v5944_v41, %s6482_s15  ;;  %5950 = vrot.lane.b32.xlu0 %v5949_v62, %s6482_s15 }
 0x61b   :  { %v3804_v28 = vpop.f32.mrf.mxu0  ;;  %v3851_v7 = vpop.f32.mrf.mxu1 }
 0x61d   :  { %v5656_v61 = vpop.f32.mrf.mxu0  ;;  %v5662_v35 = vpop.f32.mrf.mxu1 }
 0x61f   :  { %v3807_v16 = vpop.f32.mrf.mxu0  ;;  %v3854_v10 = vpop.f32.mrf.mxu1 }
 0x620   :  { %v5959_v58 = vpack.i.bf16 %v3807_v16, %v3804_v28  ;;  %v5954_v33 = vpack.i.bf16 %v3854_v10, %v3851_v7 }
 0x621   :  { %v5657_v42 = vpop.f32.mrf.mxu0  ;;  %v5663_v45 = vpop.f32.mrf.mxu1 }
 0x622   :  { %5955 = vrot.lane.b32.xlu1 %v5954_v33, %s6482_s15  ;;  %5960 = vrot.lane.b32.xlu0 %v5959_v58, %s6482_s15  ;;  %v6057_v45 = vld [vmem:[#allocation10] sm:$0xff]  }
 0x623   :  { %v8304_v47 = vpop.f32.mrf.mxu0  ;;  %v8306_v60 = vpop.f32.mrf.mxu1  ;;  %5774 = vmatprep.subr.bf16.mxu0 %v6057_v45 }
 0x624   :  { %5775 = vmatpush3.bf16.msra.mxu0 %v6057_v45 }
 0x625   :  { %v5668_v18 = vpop.f32.mrf.mxu0  ;;  %v5674_v6 = vpop.f32.mrf.mxu1 }
 0x627   :  { %v8308_v19 = vpop.f32.mrf.mxu0  ;;  %v8310_v46 = vpop.f32.mrf.mxu1 }
 0x628   :  { %v6014_v3 = vpack.i.bf16 %v8308_v19, %v8304_v47  ;;  %v6019_v52 = vpack.i.bf16 %v8310_v46, %v8306_v60 }
 0x629   :  { %v5669_v14 = vpop.f32.mrf.mxu0  ;;  %v5675_v34 = vpop.f32.mrf.mxu1 }
 0x62b   :  { %v3992_v63 = vpop.f32.mrf.mxu0  ;;  %v4039_v1 = vpop.f32.mrf.mxu1 }
 0x62d   :  { %v5680_v55 = vpop.f32.mrf.mxu0  ;;  %v5686_v4 = vpop.f32.mrf.mxu1 }
 0x62f   :  { %v3995_v43 = vpop.f32.mrf.mxu0  ;;  %v4042_v59 = vpop.f32.mrf.mxu1 }
 0x630   :  { %v5969_v13 = vpack.i.bf16 %v3995_v43, %v3992_v63  ;;  %v5964_v26 = vpack.i.bf16 %v4042_v59, %v4039_v1 }
 0x631   :  { %v5681_v0 = vpop.f32.mrf.mxu0  ;;  %v5687_v48 = vpop.f32.mrf.mxu1 }
 0x632   :  { %5965 = vrot.lane.b32.xlu1 %v5964_v26, %s6494_s19  ;;  %5970 = vrot.lane.b32.xlu0 %v5969_v13, %s6494_s19 }
 0x633   :  { %v4086_v21 = vpop.f32.mrf.mxu0  ;;  %v4133_v22 = vpop.f32.mrf.mxu1 }
 0x635   :  { %v5692_v44 = vpop.f32.mrf.mxu0  ;;  %v5698_v9 = vpop.f32.mrf.mxu1 }
 0x637   :  { %v4089_v54 = vpop.f32.mrf.mxu0  ;;  %v4136_v36 = vpop.f32.mrf.mxu1 }
 0x638   :  { %v5979_v23 = vpack.i.bf16 %v4089_v54, %v4086_v21  ;;  %v5974_v39 = vpack.i.bf16 %v4136_v36, %v4133_v22 }
 0x639   :  { %v5693_v5 = vpop.f32.mrf.mxu0  ;;  %v5699_v53 = vpop.f32.mrf.mxu1 }
 0x63a   :  { %5975 = vrot.lane.b32.xlu1 %v5974_v39, %s6494_s19  ;;  %5980 = vrot.lane.b32.xlu0 %v5979_v23, %s6494_s19 }
 0x658   :  { %v4227_v57 = vpop.f32.mrf.mxu1 }
 0x65a   :  { %v5710_v40 = vpop.f32.mrf.mxu1 }
 0x65c   :  { %v4180_v50 = vpop.f32.mrf.mxu0  ;;  %v4230_v62 = vpop.f32.mrf.mxu1 }
 0x65d   :  { %v5999_v13 = vpack.i.bf16 %v4230_v62, %v4227_v57 }
 0x65e   :  { %v5704_v41 = vpop.f32.mrf.mxu0  ;;  %v5711_v29 = vpop.f32.mrf.mxu1 }
 0x660   :  { %v4183_v8 = vpop.f32.mrf.mxu0 }
 0x661   :  { %v5994_v51 = vpack.i.bf16 %v4183_v8, %v4180_v50 }
 0x662   :  { %v5705_v28 = vpop.f32.mrf.mxu0 }
 0x668   :  { %v4321_v7 = vpop.f32.mrf.mxu1 }
 0x66a   :  { %v5722_v61 = vpop.f32.mrf.mxu1 }
 0x66c   :  { %v4274_v35 = vpop.f32.mrf.mxu0  ;;  %v4324_v16 = vpop.f32.mrf.mxu1 }
 0x66e   :  { %v5716_v10 = vpop.f32.mrf.mxu0  ;;  %v5723_v58 = vpop.f32.mrf.mxu1 }
 0x670   :  { %v4277_v33 = vpop.f32.mrf.mxu0 }
 0x671   :  { %v6034_v47 = vpack.i.bf16 %v4277_v33, %v4274_v35 }
 0x672   :  { %v5717_v42 = vpop.f32.mrf.mxu0 }
 0x67a   :  { %v4368_v18 = vpop.f32.mrf.mxu0 }
 0x67b   :  { %v4415_v6 = vpop.f32.mrf.mxu1 }
 0x67c   :  { %v5728_v14 = vpop.f32.mrf.mxu0 }
 0x67d   :  { %v5734_v34 = vpop.f32.mrf.mxu1 }
 0x67e   :  { %v4371_v63 = vpop.f32.mrf.mxu0 }
 0x67f   :  { %v5989_v1 = vpack.i.bf16 %v4371_v63, %v4368_v18  ;;  %v4418_v55 = vpop.f32.mrf.mxu1 }
 0x680   :  { %v5984_v4 = vpack.i.bf16 %v4418_v55, %v4415_v6  ;;  %v5729_v43 = vpop.f32.mrf.mxu0 }
 0x681   :  { %v5735_v59 = vpop.f32.mrf.mxu1  ;;  %5990 = vrot.lane.b32.xlu0 %v5989_v1, %s6495_s22  ;;  %v5936_v33 = vpop.permute.xlu1 %5935 }
 0x682   :  { %5985 = vrot.lane.b32.xlu1 %v5984_v4, %s6495_s22  ;;  %v5938_v63 = vunpack.i.h.bf16 %v5936_v33  ;;  %v5937_v1 = vunpack.i.l.bf16 %v5936_v33 }
 0x684   :  { %v5941_v35 = vpop.permute.xlu0 %5940 }
 0x685   :  { %5995 = vrot.lane.b32.xlu0 %v5994_v51, %s6494_s19  ;;  %v5943_v4 = vunpack.i.h.bf16 %v5941_v35  ;;  %v5942_v43 = vunpack.i.l.bf16 %v5941_v35 }
 0x686   :  { %6000 = vrot.lane.b32.xlu1 %v5999_v13, %s6494_s19 }
 0x689   :  { %v4462_v26 = vpop.f32.mrf.mxu0 }
 0x68a   :  { %v4509_v0 = vpop.f32.mrf.mxu1 }
 0x68b   :  { %v5740_v48 = vpop.f32.mrf.mxu0 }
 0x68c   :  { %v5746_v21 = vpop.f32.mrf.mxu1  ;;  %v4899_v48 = vsel %vm721_vm2, %v8246_v27, %v5938_v63 }
 0x68d   :  { %v4465_v22 = vpop.f32.mrf.mxu0  ;;  %v4898_v21 = vsel %vm721_vm2, %v8242_v24, %v5937_v1 }
 0x68e   :  { %v6009_v44 = vpack.i.bf16 %v4465_v22, %v4462_v26  ;;  %v4512_v9 = vpop.f32.mrf.mxu1 }
 0x68f   :  { %v6004_v54 = vpack.i.bf16 %v4512_v9, %v4509_v0  ;;  %v5741_v36 = vpop.f32.mrf.mxu0  ;;  %v4896_v9 = vsel %vm721_vm2, %v8222_v17, %v5942_v43 }
 0x690   :  { %v5747_v23 = vpop.f32.mrf.mxu1  ;;  %6010 = vrot.lane.b32.xlu0 %v6009_v44, %s6495_s22  ;;  %v4897_v44 = vsel %vm721_vm2, %v8228_v32, %v5943_v4 }
 0x691   :  { %6005 = vrot.lane.b32.xlu1 %v6004_v54, %s6495_s22 }
 0x694   :  { %6015 = vrot.lane.b32.xlu0 %v6014_v3, %s6482_s15  ;;  %v4556_v39 = vpop.f32.mrf.mxu0  ;;  %v6039_v3 = vpack.i.bf16 %v4324_v16, %v4321_v7  ;;  %v5951_v7 = vpop.permute.xlu0 %5950 }
 0x695   :  { %6020 = vrot.lane.b32.xlu1 %v6019_v52, %s6482_s15  ;;  %v4603_v5 = vpop.f32.mrf.mxu1  ;;  %v5946_v16 = vpop.permute.xlu1 %5945 }
 0x696   :  { %v5752_v53 = vpop.f32.mrf.mxu0 }
 0x697   :  { %v5758_v57 = vpop.f32.mrf.mxu1 }
 0x698   :  { %v4559_v40 = vpop.f32.mrf.mxu0  ;;  %v8340_v18 = vpop.permute.xlu0 %5960 }
 0x699   :  { %v6029_v50 = vpack.i.bf16 %v4559_v40, %v4556_v39  ;;  %v4606_v62 = vpop.f32.mrf.mxu1  ;;  %v8342_v6 = vpop.permute.xlu1 %5955 }
 0x69a   :  { %v6024_v41 = vpack.i.bf16 %v4606_v62, %v4603_v5  ;;  %v5753_v29 = vpop.f32.mrf.mxu0 }
 0x69b   :  { %v5759_v8 = vpop.f32.mrf.mxu1  ;;  %6030 = vrot.lane.b32.xlu0 %v6029_v50, %s6495_s22  ;;  %v5948_v29 = vunpack.i.h.bf16 %v5946_v16 }
 0x69c   :  { %6025 = vrot.lane.b32.xlu1 %v6024_v41, %s6495_s22  ;;  %v5947_v8 = vunpack.i.l.bf16 %v5946_v16 }
 0x69d   :  { %v4650_v19 = vpop.f32.mrf.mxu0 }
 0x69f   :  { %v5764_v28 = vpop.f32.mrf.mxu0  ;;  %6035 = vrot.lane.b32.xlu0 %v6034_v47, %s6494_s19 }
 0x6a0   :  { %6040 = vrot.lane.b32.xlu1 %v6039_v3, %s6494_s19  ;;  %v4697_v60 = vpop.f32.mrf.mxu1  ;;  %v5952_v3 = vunpack.i.l.bf16 %v5951_v7 }
 0x6a1   :  { %v4653_v46 = vpop.f32.mrf.mxu0 }
 0x6a2   :  { %v6044_v52 = vpack.i.bf16 %v4653_v46, %v4650_v19  ;;  %v5770_v61 = vpop.f32.mrf.mxu1  ;;  %v5953_v19 = vunpack.i.h.bf16 %v5951_v7  ;;  %v4900_v35 = vsel %vm721_vm2, %v8262_v15, %v5952_v3 }
 0x6a3   :  { %v5765_v10 = vpop.f32.mrf.mxu0 }
 0x6a4   :  { %6045 = vrot.lane.b32.xlu0 %v6044_v52, %s6495_s22  ;;  %v4700_v58 = vpop.f32.mrf.mxu1  ;;  %v5971_v14 = vpop.permute.xlu0 %5970  ;;  %v4903_v10 = vsel %vm721_vm2, %v8286_v20, %v5948_v29 }
 0x6a5   :  { %v6049_v42 = vpack.i.bf16 %v4700_v58, %v4697_v60  ;;  %v5966_v34 = vpop.permute.xlu1 %5965  ;;  %v5973_v51 = vunpack.i.h.bf16 %v5971_v14  ;;  %v5972_v13 = vunpack.i.l.bf16 %v5971_v14  ;;  %v4902_v58 = vsel %vm721_vm2, %v8282_v12, %v5947_v8 }
 0x6a6   :  { %v5771_v45 = vpop.f32.mrf.mxu1  ;;  %v5968_v26 = vunpack.i.h.bf16 %v5966_v34  ;;  %v5967_v0 = vunpack.i.l.bf16 %v5966_v34 }
 0x6a7   :  { %6050 = vrot.lane.b32.xlu1 %v6049_v42, %s6495_s22  ;;  %v4912_v39 = vsel %vm2463_vm3, %v4896_v9, %v5972_v13  ;;  %v4913_v5 = vsel %vm2463_vm3, %v4897_v44, %v5973_v51  ;;  %v4901_v45 = vsel %vm721_vm2, %v8271_v30, %v5953_v19  ;;  %v5958_v51 = vunpack.i.h.bf16 %v8342_v6 }
 0x6a8   :  { %v4915_v57 = vsel %vm2463_vm3, %v4899_v48, %v5968_v26  ;;  %v4914_v24 = vsel %vm2463_vm3, %v4898_v21, %v5967_v0  ;;  %v5957_v13 = vunpack.i.l.bf16 %v8342_v6  ;;  %v5963_v0 = vunpack.i.h.bf16 %v8340_v18 }
 0x6a9   :  { %v5962_v48 = vunpack.i.l.bf16 %v8340_v18 }
 0x6aa   :  { %v4905_v6 = vsel %vm721_vm2, %v8279_v11, %v5963_v0 }
 0x6ac   :  { %v5981_v55 = vpop.permute.xlu0 %5980  ;;  %v5976_v59 = vpop.permute.xlu1 %5975 }
 0x6ad   :  { %v5983_v60 = vunpack.i.h.bf16 %v5981_v55  ;;  %v5982_v46 = vunpack.i.l.bf16 %v5981_v55  ;;  %v5978_v52 = vunpack.i.h.bf16 %v5976_v59  ;;  %v5977_v61 = vunpack.i.l.bf16 %v5976_v59 }
 0x6af   :  { %v4916_v14 = vsel %vm2463_vm3, %v4900_v35, %v5982_v46  ;;  %v4917_v34 = vsel %vm2463_vm3, %v4901_v45, %v5983_v60  ;;  %v4919_v20 = vsel %vm2463_vm3, %v4903_v10, %v5978_v52  ;;  %v4918_v12 = vsel %vm2463_vm3, %v4902_v58, %v5977_v61 }
 0x6f3   :  { %v5991_v22 = vpop.permute.xlu0 %5990 }
 0x6f4   :  { %v5986_v54 = vpop.permute.xlu1 %5985  ;;  %v5993_v36 = vunpack.i.h.bf16 %v5991_v22  ;;  %v5992_v23 = vunpack.i.l.bf16 %v5991_v22 }
 0x6f5   :  { %v5988_v53 = vunpack.i.h.bf16 %v5986_v54  ;;  %v5987_v27 = vunpack.i.l.bf16 %v5986_v54 }
 0x6f6   :  { %v4929_v40 = vsel %vm4928_vm4, %v4912_v39, %v5992_v23  ;;  %v4930_v32 = vsel %vm4928_vm4, %v4913_v5, %v5993_v36  ;;  %v4907_v36 = vsel %vm721_vm2, %v8292_v25, %v5958_v51  ;;  %v4906_v23 = vsel %vm721_vm2, %v8290_v31, %v5957_v13 }
 0x6f7   :  { %v4932_v50 = vsel %vm4928_vm4, %v4915_v57, %v5988_v53  ;;  %v4931_v17 = vsel %vm4928_vm4, %v4914_v24, %v5987_v27  ;;  %v4945_v62 = vpack.c.bf16 %v4930_v32, %v4929_v40  ;;  %v5996_v47 = vpop.permute.xlu0 %5995  ;;  %v4904_v5 = vsel %vm721_vm2, %v8276_v2, %v5962_v48 }
 0x6f8   :  { %v4946_v41 = vpack.c.bf16 %v4932_v50, %v4931_v17  ;;  %v6001_v28 = vpop.permute.xlu1 %6000  ;;  %v5998_v22 = vunpack.i.h.bf16 %v5996_v47  ;;  %v5997_v44 = vunpack.i.l.bf16 %v5996_v47 }
 0x6f9   :  { %5776 = vmatprep.mubr.msk.bf16.mxu0 %vm120_vm0, %v4945_v62  ;;  %v6003_v9 = vunpack.i.h.bf16 %v6001_v28  ;;  %v6002_v54 = vunpack.i.l.bf16 %v6001_v28 }
 0x6fa   :  { %5777 = vmatmul.mubr.msk.bf16.vlgmr.msra.gmra.mxu0 %vm120_vm0, %v4946_v41  ;;  %v4920_v57 = vsel %vm2463_vm3, %v4904_v5, %v5997_v44  ;;  %v4921_v24 = vsel %vm2463_vm3, %v4905_v6, %v5998_v22 }
 0x6fb   :  { %v4923_v25 = vsel %vm2463_vm3, %v4907_v36, %v6003_v9  ;;  %v4922_v31 = vsel %vm2463_vm3, %v4906_v23, %v6002_v54 }
 0x702   :  { %v6011_v42 = vpop.permute.xlu0 %6010 }
 0x703   :  { %v6006_v33 = vpop.permute.xlu1 %6005  ;;  %v6013_v7 = vunpack.i.h.bf16 %v6011_v42  ;;  %v6012_v16 = vunpack.i.l.bf16 %v6011_v42 }
 0x704   :  { %v6008_v63 = vunpack.i.h.bf16 %v6006_v33  ;;  %v6007_v1 = vunpack.i.l.bf16 %v6006_v33 }
 0x705   :  { %v4933_v55 = vsel %vm4928_vm4, %v4916_v14, %v6012_v16  ;;  %v4934_v30 = vsel %vm4928_vm4, %v4917_v34, %v6013_v7 }
 0x706   :  { %v4936_v4 = vsel %vm4928_vm4, %v4919_v20, %v6008_v63  ;;  %v4935_v15 = vsel %vm4928_vm4, %v4918_v12, %v6007_v1  ;;  %v4947_v43 = vpack.c.bf16 %v4934_v30, %v4933_v55  ;;  %v6016_v26 = vpop.permute.xlu0 %6015 }
 0x707   :  { %v4948_v59 = vpack.c.bf16 %v4936_v4, %v4935_v15  ;;  %v6021_v21 = vpop.permute.xlu1 %6020  ;;  %v6018_v29 = vunpack.i.h.bf16 %v6016_v26  ;;  %v6017_v8 = vunpack.i.l.bf16 %v6016_v26 }
 0x708   :  { %5780 = vmatprep.mubr.msk.bf16.mxu0 %vm120_vm0, %v4947_v43  ;;  %v6023_v60 = vunpack.i.h.bf16 %v6021_v21  ;;  %v6022_v46 = vunpack.i.l.bf16 %v6021_v21 }
 0x709   :  { %5781 = vmatmul.mubr.msk.bf16.gmra.mxu0 %vm120_vm0, %v4948_v59  ;;  %v4909_v52 = vsel %vm721_vm2, %v8288_v49, %v6018_v29  ;;  %v4908_v61 = vsel %vm721_vm2, %v8284_v37, %v6017_v8 }
 0x70a   :  { %v4911_v16 = vsel %vm721_vm2, %v8296_v56, %v6023_v60  ;;  %v4910_v37 = vsel %vm721_vm2, %v8294_v38, %v6022_v46  ;;  %v5209_v38 = vld [vmem:[%s8453_s8] ss:$0 sm:$0xff]  ;;  %s6496_s8 = smov [#allocation11]  }
 0x70b   :  { %s5118_s25 = sshll.u32 %s6496_s8, 4  ;;  %s5119_s25 = int_to_ptr.vmem [resolvable:$true] %s5118_s25 }
 0x70c   :  { %s6451_s1 = scalar_lea.vmem %s5119_s25, 2048  ;;  %p6456_p12 = scmp.lt.s32.totalorder %s5119_s25, %s5119_s25 }
 0x70d   :  { %v6031_v39 = vpop.permute.xlu0 %6030  ;;  %p6452_p11 = scmp.ne.s32.totalorder %s5119_s25, %s6451_s1  ;;  %p6457_p13 = scmp.lt.s32.totalorder %s6451_s1, %s6451_s1 }
 0x70e   :  { %v6026_v53 = vpop.permute.xlu1 %6025  ;;  %v6033_v18 = vunpack.i.h.bf16 %v6031_v39  ;;  %v6032_v27 = vunpack.i.l.bf16 %v6031_v39 }
 0x70f   :  { %v6028_v40 = vunpack.i.h.bf16 %v6026_v53  ;;  %v6027_v32 = vunpack.i.l.bf16 %v6026_v53  ;;  %p6458_p0 = por %p6457_p13, %p6456_p12 }
 0x710   :  { %v4937_v50 = vsel %vm4928_vm4, %v4920_v57, %v6032_v27  ;;  %v4938_v11 = vsel %vm4928_vm4, %v4921_v24, %v6033_v18 }
 0x711   :  { %v4940_v17 = vsel %vm4928_vm4, %v4923_v25, %v6028_v40  ;;  %v4939_v2 = vsel %vm4928_vm4, %v4922_v31, %v6027_v32  ;;  %v4949_v62 = vpack.c.bf16 %v4938_v11, %v4937_v50  ;;  %v6036_v41 = vpop.permute.xlu0 %6035  ;;  %p6459_p1 = pnand %p6458_p0, %p6452_p11 }
 0x712   :  { %v4950_v47 = vpack.c.bf16 %v4940_v17, %v4939_v2  ;;  %v6041_v19 = vpop.permute.xlu1 %6040  ;;  %v6038_v3 = vunpack.i.h.bf16 %v6036_v41  ;;  %v6037_v28 = vunpack.i.l.bf16 %v6036_v41 }
 0x713   :  { %5784 = vmatprep.mubr.msk.bf16.mxu0 %vm120_vm0, %v4949_v62  ;;  %v6043_v58 = vunpack.i.h.bf16 %v6041_v19  ;;  %v6042_v42 = vunpack.i.l.bf16 %v6041_v19 }
 0x714   :  { %5785 = vmatmul.mubr.msk.bf16.gmra.mxu0 %vm120_vm0, %v4950_v47  ;;  %v4924_v33 = vsel %vm2463_vm3, %v4908_v61, %v6037_v28  ;;  %v4925_v7 = vsel %vm2463_vm3, %v4909_v52, %v6038_v3 }
 0x715   :  { %v4927_v12 = vsel %vm2463_vm3, %v4911_v16, %v6043_v58  ;;  %v4926_v55 = vsel %vm2463_vm3, %v4910_v37, %v6042_v42 }
 0x716   :  { %v6046_v10 = vpop.permute.xlu0 %6045 }
 0x717   :  { %v6048_v45 = vunpack.i.h.bf16 %v6046_v10  ;;  %v6047_v35 = vunpack.i.l.bf16 %v6046_v10 }
 0x719   :  { %v4941_v14 = vsel %vm4928_vm4, %v4924_v33, %v6047_v35  ;;  %v4942_v34 = vsel %vm4928_vm4, %v4925_v7, %v6048_v45  ;;  %v6051_v49 = vpop.permute.xlu1 %6050 }
 0x71a   :  { %v4951_v63 = vpack.c.bf16 %v4942_v34, %v4941_v14  ;;  %v6053_v1 = vunpack.i.h.bf16 %v6051_v49  ;;  %v6052_v20 = vunpack.i.l.bf16 %v6051_v49 }
 0x71c   :  { %v4944_v30 = vsel %vm4928_vm4, %v4927_v12, %v6053_v1  ;;  %v4943_v4 = vsel %vm4928_vm4, %v4926_v55, %v6052_v20  ;;  %5788 = vmatprep.mubr.msk.bf16.mxu0 %vm120_vm0, %v4951_v63 }
 0x71d   :  { %v4952_v56 = vpack.c.bf16 %v4944_v30, %v4943_v4 }
 0x71f   :  { %5789 = vmatmul.mubr.msk.bf16.gmra.mxu0 %vm120_vm0, %v4952_v56 }
 0x7ba   :  { %v5778_v15 = vpop.f32.mrf.mxu0 }
 0x7bb   :  { %v5043_v43 = vadd.f32 %v5778_v15, %v5209_v38 }
 0x7bc   :  { %v5034_v59 = vpop.f32.mrf.mxu0 }
 0x7bd   :  { %5099 = vst.msk [vmem:[#allocation11 + $0x10] sm:$0xff] %vm120_vm0, %v5043_v43  ;;  %v5035_v51 = vadd.f32 %v5209_v38, %v5034_v59 }
 0x7be   :  { %v5779_v13 = vpop.f32.mrf.mxu0 }
 0x7bf   :  { %5097 = vst.msk [vmem:[#allocation11] sm:$0xff] %vm120_vm0, %v5035_v51  ;;  %v5046_v26 = vadd.f32 %v5779_v13, %v5209_v38 }
 0x7c0   :  { %v5037_v0 = vpop.f32.mrf.mxu0 }
 0x7c1   :  { %5100 = vst.msk [vmem:[#allocation11 + $0x18] sm:$0xff] %vm120_vm0, %v5046_v26  ;;  %v5038_v48 = vadd.f32 %v5209_v38, %v5037_v0 }
 0x7c3   :  { %5098 = vst.msk [vmem:[#allocation11 + $0x8] sm:$0xff] %vm120_vm0, %v5038_v48 }
 0x7c9   :  { %v5782_v21 = vpop.f32.mrf.mxu0 }
 0x7ca   :  { %v5059_v22 = vadd.f32 %v5782_v21, %v5209_v38 }
 0x7cb   :  { %v5050_v44 = vpop.f32.mrf.mxu0 }
 0x7cc   :  { %5103 = vst.msk [vmem:[#allocation11 + $0x30] sm:$0xff] %vm120_vm0, %v5059_v22  ;;  %v5051_v9 = vadd.f32 %v5209_v38, %v5050_v44 }
 0x7cd   :  { %v5783_v54 = vpop.f32.mrf.mxu0 }
 0x7ce   :  { %5101 = vst.msk [vmem:[#allocation11 + $0x20] sm:$0xff] %vm120_vm0, %v5051_v9  ;;  %v5062_v36 = vadd.f32 %v5783_v54, %v5209_v38 }
 0x7cf   :  { %v5053_v23 = vpop.f32.mrf.mxu0 }
 0x7d0   :  { %5104 = vst.msk [vmem:[#allocation11 + $0x38] sm:$0xff] %vm120_vm0, %v5062_v36  ;;  %v5054_v39 = vadd.f32 %v5209_v38, %v5053_v23 }
 0x7d2   :  { %5102 = vst.msk [vmem:[#allocation11 + $0x28] sm:$0xff] %vm120_vm0, %v5054_v39 }
 0x7d4   :  { %v5786_v6 = vpop.f32.mrf.mxu0 }
 0x7d5   :  { %v5075_v5 = vadd.f32 %v5786_v6, %v5209_v38 }
 0x7d6   :  { %v5066_v53 = vpop.f32.mrf.mxu0 }
 0x7d7   :  { %5107 = vst.msk [vmem:[#allocation11 + $0x50] sm:$0xff] %vm120_vm0, %v5075_v5  ;;  %v5067_v18 = vadd.f32 %v5209_v38, %v5066_v53 }
 0x7d8   :  { %v5787_v27 = vpop.f32.mrf.mxu0 }
 0x7d9   :  { %5105 = vst.msk [vmem:[#allocation11 + $0x40] sm:$0xff] %vm120_vm0, %v5067_v18  ;;  %v5078_v57 = vadd.f32 %v5787_v27, %v5209_v38 }
 0x7da   :  { %v5069_v24 = vpop.f32.mrf.mxu0 }
 0x7db   :  { %5108 = vst.msk [vmem:[#allocation11 + $0x58] sm:$0xff] %vm120_vm0, %v5078_v57  ;;  %v5070_v40 = vadd.f32 %v5209_v38, %v5069_v24 }
 0x7dd   :  { %5106 = vst.msk [vmem:[#allocation11 + $0x48] sm:$0xff] %vm120_vm0, %v5070_v40 }
 0x7df   :  { %v5790_v32 = vpop.f32.mrf.mxu0 }
 0x7e0   :  { %v5091_v25 = vadd.f32 %v5790_v32, %v5209_v38 }
 0x7e1   :  { %v5082_v31 = vpop.f32.mrf.mxu0 }
 0x7e2   :  { %5111 = vst.msk [vmem:[#allocation11 + $0x70] sm:$0xff] %vm120_vm0, %v5091_v25  ;;  %v5083_v50 = vadd.f32 %v5209_v38, %v5082_v31 }
 0x7e3   :  { %v5791_v11 = vpop.f32.mrf.mxu0 }
 0x7e4   :  { %5109 = vst.msk [vmem:[#allocation11 + $0x60] sm:$0xff] %vm120_vm0, %v5083_v50  ;;  %v5094_v17 = vadd.f32 %v5791_v11, %v5209_v38 }
 0x7e5   :  { %v5085_v2 = vpop.f32.mrf.mxu0 }
 0x7e6   :  { %5112 = vst.msk [vmem:[#allocation11 + $0x78] sm:$0xff] %vm120_vm0, %v5094_v17  ;;  %v5086_v62 = vadd.f32 %v5209_v38, %v5085_v2 }
 0x7e8   :  { %5110 = vst.msk [vmem:[#allocation11 + $0x68] sm:$0xff] %vm120_vm0, %v5086_v62 }
 0x7e9   :  { %6462 = shalt.err (!%p6459_p1)
}
 0x7ea   :  { %5124 = dma.vmem_to_hbm [thread:$0]  %s5119_s25, 2048, %s8454_s9, [#allocation4], %s6481_s14, %s6481_s14, %s6482_s15  }
 0x7eb   :  { %6477 = dma.done.wait [#allocation4], 2048  }
 0x7ec   :  { %6478 = vsyncadd [#allocation4], 4294965248 }
 0x7ed   :  { %5128 = vsyncpa [#allocation3], 1 }
 0x7ee   :  { %5129 = vsyncpa [#allocation6], 1 }
 0x7ef   :  { %5130 = vsyncpa [#allocation9], 1 }
 0x7f0   :  { %5131 = vsyncpa [#allocation4], 1 }

</bundles_post_ra>
